<compile_context>
chip_gen: v5e
topology: v5e:2x2
jax: 0.10.0
libtpu: 0.0.40
codegen_flags: <defaults>
</compile_context>

<pallas_src>
import math
import functools

import jax
import jax.numpy as jnp
from jax.experimental import pallas as pl
from jax.experimental.pallas import tpu as pltpu


def _round_up(x, m):
    return ((x + m - 1) // m) * m


# ---------------------------------------------------------------------------
# Fused kernel: all layers in one body, batch-tiled (possibly ragged) grid.
# refs = (x_ref, w0, t0, w1, t1, ..., w_{L-1}, t_{L-1}, o_ref)
# ---------------------------------------------------------------------------
def _fused_mlp_kernel(*refs, num_layers):
    x_ref = refs[0]
    o_ref = refs[-1]
    h = x_ref[...].astype(jnp.float32)
    inv_sqrt2 = jnp.float32(1.0 / math.sqrt(2.0))
    for l in range(num_layers):  # static unroll — activations stay on-chip
        w = refs[1 + 2 * l][...].astype(jnp.float32)   # BN-folded weight
        t = refs[2 + 2 * l][...]                       # folded bias/BN shift, f32
        z = jnp.dot(h, w, preferred_element_type=jnp.float32) + t
        # Exact GELU: 0.5 * z * (1 + erf(z / sqrt(2)))  (nn.GELU default)
        h = 0.5 * z * (1.0 + jax.lax.erf(z * inv_sqrt2))
    o_ref[...] = h.astype(o_ref.dtype)


# ---------------------------------------------------------------------------
# One-time parameter prep: fold eval-mode BN + bias, pad per layer.
#   layer l weight:  (prev_padded_width, round_up(out_l, 128))   [last: out_l]
#   layer l shift :  (1, same padded out width)
# Padded weight columns / shift entries are zero, so padded activation lanes
# stay exactly zero through every layer (gelu(0) == 0).
# ---------------------------------------------------------------------------
def fold_and_pad_params(params, in_features, *, eps=1e-5, param_dtype=jnp.float32):
    ws, shifts = [], []
    prev_pad = in_features                  # layer-0 contraction at true width
    num_layers = len(params)
    for li, p in enumerate(params):
        d_in, d_out = p["w"].shape
        inv_std = p["gamma"] / jnp.sqrt(p["var"] + eps)
        w_fold = (p["w"] * inv_std[None, :]).astype(jnp.float32)
        shift = ((p["b"] - p["mean"]) * inv_std + p["beta"]).astype(jnp.float32)
        # Intermediate outputs lane-padded to 128 (lane-dense on-chip math);
        # FINAL layer stays at true width so the kernel writes (B, d_out)
        # directly with no post-kernel slice pass.
        out_pad = d_out if li == num_layers - 1 else _round_up(d_out, 128)
        w_p = jnp.zeros((prev_pad, out_pad), jnp.float32).at[:d_in, :d_out].set(w_fold)
        t_p = jnp.zeros((1, out_pad), jnp.float32).at[0, :d_out].set(shift)
        ws.append(w_p.astype(param_dtype))
        shifts.append(t_p)                  # shifts kept f32 (VPU math in f32)
        prev_pad = out_pad
    return ws, shifts


# ---------------------------------------------------------------------------
# Wrapper
# ---------------------------------------------------------------------------
def surv_forward_pallas(x, w_list, shift_list, *, tile_b=1024):
    """Fused SurvModelBase eval forward.  x: (B, in_features), unpadded."""
    B, in_features = x.shape
    num_layers = len(w_list)
    d_out = int(w_list[-1].shape[1])

    # --- batch tiling: ragged last tile, no host-side batch padding ---------
    tb = min(int(tile_b), _round_up(B, 8))
    if B >= 16 and pl.cdiv(B, tb) < 2:
        # ensure >=2 grid tiles so v7x's two TensorCores both get work
        tb = max(8, _round_up(pl.cdiv(B, 2), 8))
    grid = (pl.cdiv(B, tb),)

    # --- specs ---------------------------------------------------------------
    # x: batch-tiled, last block dim == full array dim (legal & unpadded)
    in_specs = [pl.BlockSpec((tb, in_features), lambda i: (i, 0))]
    args = [x]
    for w, t in zip(w_list, shift_list):
        # resident full blocks (constant index_map)
        in_specs.append(pl.BlockSpec(tuple(w.shape), lambda i: (0, 0)))
        in_specs.append(pl.BlockSpec(tuple(t.shape), lambda i: (0, 0)))
        args += [w, t]

    # --- explicit VMEM budget (Pallas double-buffers even resident blocks) ---
    itemsize = jnp.dtype(x.dtype).itemsize
    resident = sum(int(a.size) * jnp.dtype(a.dtype).itemsize
                   for a in list(w_list) + list(shift_list))
    widest = max(int(w.shape[1]) for w in w_list)
    est = (2 * resident                          # params, double-buffered
           + 2 * tb * in_features * itemsize     # x tile double-buffer
           + 2 * tb * d_out * itemsize           # out tile double-buffer
           + 4 * tb * widest * 4)                # f32 working activations
    vmem_limit = int(min(64 * 1024 * 1024, max(32 * 1024 * 1024, 2 * est)))

    kernel = functools.partial(_fused_mlp_kernel, num_layers=num_layers)
    return pl.pallas_call(
        kernel,
        out_shape=jax.ShapeDtypeStruct((B, d_out), x.dtype),
        grid=grid,
        in_specs=in_specs,
        # true-width output write (no extra HBM slice pass afterwards)
        out_specs=pl.BlockSpec((tb, d_out), lambda i: (i, 0)),
        compiler_params=pltpu.CompilerParams(
            dimension_semantics=("parallel",),   # megacore-shard batch tiles
            vmem_limit_bytes=vmem_limit),
    )(*args)


# ---------------------------------------------------------------------------
# Deterministic parameter init matching SurvModelBase shapes (residual=False).
# ---------------------------------------------------------------------------
def init_params(key, in_features, layers):
    params = []
    prev = in_features
    for out_features in layers:
        key, kw, kb, kg, kbe, km, kv = jax.random.split(key, 7)
        w = jax.random.normal(kw, (prev, out_features), jnp.float32) * (
            1.0 / math.sqrt(prev))
        b = jax.random.normal(kb, (out_features,), jnp.float32) * 0.05
        gamma = 1.0 + 0.1 * jax.random.normal(kg, (out_features,), jnp.float32)
        beta = 0.1 * jax.random.normal(kbe, (out_features,), jnp.float32)
        r_mean = 0.1 * jax.random.normal(km, (out_features,), jnp.float32)
        r_var = 1.0 + 0.1 * jnp.abs(
            jax.random.normal(kv, (out_features,), jnp.float32))
        params.append(dict(w=w, b=b, gamma=gamma, beta=beta,
                           mean=r_mean, var=r_var))
        prev = out_features
    return params


def reference_forward(x, params, eps=1e-5):
    """Pure-JAX reference (eval-mode block: linear -> BN(running stats) -> GELU)."""
    for p in params:
        z = x @ p["w"] + p["b"]
        z = (z - p["mean"]) / jnp.sqrt(p["var"] + eps) * p["gamma"] + p["beta"]
        x = 0.5 * z * (1.0 + jax.lax.erf(z / math.sqrt(2.0)))
    return x


if __name__ == "__main__":
    key = jax.random.PRNGKey(0)
    k_x, k_p = jax.random.split(key)

    batch = 200                # exercises ragged last tile + 2-tile batch split
    in_features = 32           # stands in for len(self.x[0]) (tabular features)
    layers = [90, 64, 32]      # module default widths (incl. non-aligned 90)

    x = jax.random.normal(k_x, (batch, in_features), jnp.float32)
    params = init_params(k_p, in_features, layers)

    # One-time BN/bias folding + padding (would be precomputed in real use).
    w_list, shift_list = fold_and_pad_params(params, in_features)

    fwd = jax.jit(surv_forward_pallas, static_argnames=("tile_b",))
    out = jax.block_until_ready(fwd(x, w_list, shift_list))

    ref = reference_forward(x, params)
    assert out.shape == (batch, layers[-1]), out.shape
    max_err = float(jnp.max(jnp.abs(out - ref)))
    assert jnp.allclose(out, ref, atol=1e-4, rtol=1e-4), max_err

    print("KERNEL_OK")
</pallas_src>

<mosaic_0001>
module attributes {stable_mosaic.version = 11 : i64} {
  func.func @_fused_mlp_kernel(%arg0: i32, %arg1: memref<104x32xf32, #tpu.memory_space<vmem>>, %arg2: memref<32x128xf32, #tpu.memory_space<vmem>>, %arg3: memref<1x128xf32, #tpu.memory_space<vmem>>, %arg4: memref<128x128xf32, #tpu.memory_space<vmem>>, %arg5: memref<1x128xf32, #tpu.memory_space<vmem>>, %arg6: memref<128x32xf32, #tpu.memory_space<vmem>>, %arg7: memref<1x32xf32, #tpu.memory_space<vmem>>, %arg8: memref<104x32xf32, #tpu.memory_space<vmem>>) attributes {dimension_semantics = [#tpu.dimension_semantics<parallel>], iteration_bounds = array<i64: 2>, scalar_prefetch = 0 : i64, scratch_operands = 0 : i64, tpu.core_type = #tpu.core_type<tc>, window_params = [{transform_indices = @transform_0, window_bounds = array<i64: 104, 32>}, {pipeline_mode = #tpu.pipeline_mode<synchronous>, transform_indices = @transform_1, window_bounds = array<i64: 32, 128>}, {pipeline_mode = #tpu.pipeline_mode<synchronous>, transform_indices = @transform_2, window_bounds = array<i64: 1, 128>}, {pipeline_mode = #tpu.pipeline_mode<synchronous>, transform_indices = @transform_3, window_bounds = array<i64: 128, 128>}, {pipeline_mode = #tpu.pipeline_mode<synchronous>, transform_indices = @transform_4, window_bounds = array<i64: 1, 128>}, {pipeline_mode = #tpu.pipeline_mode<synchronous>, transform_indices = @transform_5, window_bounds = array<i64: 128, 32>}, {pipeline_mode = #tpu.pipeline_mode<synchronous>, transform_indices = @transform_6, window_bounds = array<i64: 1, 32>}, {transform_indices = @transform_7, window_bounds = array<i64: 104, 32>}]} {
    %c0 = arith.constant 0 : index
    %c0_0 = arith.constant 0 : index
    %0 = vector.load %arg1[%c0, %c0_0] : memref<104x32xf32, #tpu.memory_space<vmem>>, vector<104x32xf32>
    %c0_1 = arith.constant 0 : index
    %c0_2 = arith.constant 0 : index
    %1 = vector.load %arg2[%c0_1, %c0_2] : memref<32x128xf32, #tpu.memory_space<vmem>>, vector<32x128xf32>
    %c0_3 = arith.constant 0 : index
    %c0_4 = arith.constant 0 : index
    %2 = vector.load %arg3[%c0_3, %c0_4] : memref<1x128xf32, #tpu.memory_space<vmem>>, vector<1x128xf32>
    %cst = arith.constant dense<0.000000e+00> : vector<104x128xf32>
    %3 = tpu.matmul %0, %1, %cst {dimension_numbers = #tpu.dot_dimension_numbers<[1], [0], [0], [1], [0, 0, 1, 1], [], []>} : vector<104x32xf32>, vector<32x128xf32>, vector<104x128xf32> -> vector<104x128xf32>
    %4 = vector.broadcast %2 : vector<1x128xf32> to vector<104x128xf32>
    %5 = arith.addf %3, %4 : vector<104x128xf32>
    %cst_5 = arith.constant 5.000000e-01 : f32
    %6 = vector.broadcast %cst_5 : f32 to vector<104x128xf32>
    %7 = arith.mulf %6, %5 : vector<104x128xf32>
    %cst_6 = arith.constant 0.707106769 : f32
    %8 = vector.broadcast %cst_6 : f32 to vector<104x128xf32>
    %9 = arith.mulf %5, %8 : vector<104x128xf32>
    %10 = math.erf %9 : vector<104x128xf32>
    %cst_7 = arith.constant 1.000000e+00 : f32
    %11 = vector.broadcast %cst_7 : f32 to vector<104x128xf32>
    %12 = arith.addf %11, %10 : vector<104x128xf32>
    %13 = arith.mulf %7, %12 : vector<104x128xf32>
    %c0_8 = arith.constant 0 : index
    %c0_9 = arith.constant 0 : index
    %14 = vector.load %arg4[%c0_8, %c0_9] : memref<128x128xf32, #tpu.memory_space<vmem>>, vector<128x128xf32>
    %c0_10 = arith.constant 0 : index
    %c0_11 = arith.constant 0 : index
    %15 = vector.load %arg5[%c0_10, %c0_11] : memref<1x128xf32, #tpu.memory_space<vmem>>, vector<1x128xf32>
    %cst_12 = arith.constant dense<0.000000e+00> : vector<104x128xf32>
    %16 = tpu.matmul %13, %14, %cst_12 {dimension_numbers = #tpu.dot_dimension_numbers<[1], [0], [0], [1], [0, 0, 1, 1], [], []>} : vector<104x128xf32>, vector<128x128xf32>, vector<104x128xf32> -> vector<104x128xf32>
    %17 = vector.broadcast %15 : vector<1x128xf32> to vector<104x128xf32>
    %18 = arith.addf %16, %17 : vector<104x128xf32>
    %cst_13 = arith.constant 5.000000e-01 : f32
    %19 = vector.broadcast %cst_13 : f32 to vector<104x128xf32>
    %20 = arith.mulf %19, %18 : vector<104x128xf32>
    %cst_14 = arith.constant 0.707106769 : f32
    %21 = vector.broadcast %cst_14 : f32 to vector<104x128xf32>
    %22 = arith.mulf %18, %21 : vector<104x128xf32>
    %23 = math.erf %22 : vector<104x128xf32>
    %cst_15 = arith.constant 1.000000e+00 : f32
    %24 = vector.broadcast %cst_15 : f32 to vector<104x128xf32>
    %25 = arith.addf %24, %23 : vector<104x128xf32>
    %26 = arith.mulf %20, %25 : vector<104x128xf32>
    %c0_16 = arith.constant 0 : index
    %c0_17 = arith.constant 0 : index
    %27 = vector.load %arg6[%c0_16, %c0_17] : memref<128x32xf32, #tpu.memory_space<vmem>>, vector<128x32xf32>
    %c0_18 = arith.constant 0 : index
    %c0_19 = arith.constant 0 : index
    %28 = vector.load %arg7[%c0_18, %c0_19] : memref<1x32xf32, #tpu.memory_space<vmem>>, vector<1x32xf32>
    %cst_20 = arith.constant dense<0.000000e+00> : vector<104x32xf32>
    %29 = tpu.matmul %26, %27, %cst_20 {dimension_numbers = #tpu.dot_dimension_numbers<[1], [0], [0], [1], [0, 0, 1, 1], [], []>} : vector<104x128xf32>, vector<128x32xf32>, vector<104x32xf32> -> vector<104x32xf32>
    %30 = vector.broadcast %28 : vector<1x32xf32> to vector<104x32xf32>
    %31 = arith.addf %29, %30 : vector<104x32xf32>
    %cst_21 = arith.constant 5.000000e-01 : f32
    %32 = vector.broadcast %cst_21 : f32 to vector<104x32xf32>
    %33 = arith.mulf %32, %31 : vector<104x32xf32>
    %cst_22 = arith.constant 0.707106769 : f32
    %34 = vector.broadcast %cst_22 : f32 to vector<104x32xf32>
    %35 = arith.mulf %31, %34 : vector<104x32xf32>
    %36 = math.erf %35 : vector<104x32xf32>
    %cst_23 = arith.constant 1.000000e+00 : f32
    %37 = vector.broadcast %cst_23 : f32 to vector<104x32xf32>
    %38 = arith.addf %37, %36 : vector<104x32xf32>
    %39 = arith.mulf %33, %38 : vector<104x32xf32>
    %c0_24 = arith.constant 0 : index
    %c0_25 = arith.constant 0 : index
    %40 = vector.load %arg8[%c0_24, %c0_25] : memref<104x32xf32, #tpu.memory_space<vmem>>, vector<104x32xf32>
    tpu.vector_store %arg8[%c0_24, %c0_25], %39 {strides = array<i32>} : memref<104x32xf32, #tpu.memory_space<vmem>>, vector<104x32xf32>,
    return
  }
  func.func @transform_0(%arg0: i32) -> (i32, i32) {
    %c0_i32 = arith.constant 0 : i32
    %c0_i32_0 = arith.constant 0 : i32
    return %arg0, %c0_i32 : i32, i32
  }
  func.func @transform_1(%arg0: i32) -> (i32, i32) {
    %c0_i32 = arith.constant 0 : i32
    %c0_i32_0 = arith.constant 0 : i32
    %c0_i32_1 = arith.constant 0 : i32
    return %c0_i32, %c0_i32_0 : i32, i32
  }
  func.func @transform_2(%arg0: i32) -> (i32, i32) {
    %c0_i32 = arith.constant 0 : i32
    %c0_i32_0 = arith.constant 0 : i32
    %c0_i32_1 = arith.constant 0 : i32
    return %c0_i32, %c0_i32_0 : i32, i32
  }
  func.func @transform_3(%arg0: i32) -> (i32, i32) {
    %c0_i32 = arith.constant 0 : i32
    %c0_i32_0 = arith.constant 0 : i32
    %c0_i32_1 = arith.constant 0 : i32
    return %c0_i32, %c0_i32_0 : i32, i32
  }
  func.func @transform_4(%arg0: i32) -> (i32, i32) {
    %c0_i32 = arith.constant 0 : i32
    %c0_i32_0 = arith.constant 0 : i32
    %c0_i32_1 = arith.constant 0 : i32
    return %c0_i32, %c0_i32_0 : i32, i32
  }
  func.func @transform_5(%arg0: i32) -> (i32, i32) {
    %c0_i32 = arith.constant 0 : i32
    %c0_i32_0 = arith.constant 0 : i32
    %c0_i32_1 = arith.constant 0 : i32
    return %c0_i32, %c0_i32_0 : i32, i32
  }
  func.func @transform_6(%arg0: i32) -> (i32, i32) {
    %c0_i32 = arith.constant 0 : i32
    %c0_i32_0 = arith.constant 0 : i32
    %c0_i32_1 = arith.constant 0 : i32
    return %c0_i32, %c0_i32_0 : i32, i32
  }
  func.func @transform_7(%arg0: i32) -> (i32, i32) {
    %c0_i32 = arith.constant 0 : i32
    %c0_i32_0 = arith.constant 0 : i32
    return %arg0, %c0_i32 : i32, i32
  }
}

</mosaic_0001>

<bundles_post_ra>
// kernel: surv_forward_pallas.1
= control target key start
LH: loop header
LB: loop body
LE: loop exit
PB: predicated region body
PF: predicated region fallthrough
CT: control target
= control target key end

     0   :  { %s2971_s24 = smov 0   ;;  %s2973_s25 = smov 0   ;;  %s4349_s0 = inlined_call_operand.vmem [shape: f32[200,32], index: 0, kind: input, shape index: {}]   ;;  %s4350_s1 = inlined_call_operand.vmem [shape: f32[32,128], index: 1, kind: input, shape index: {}]   ;;  %s4351_s2 = inlined_call_operand.vmem [shape: f32[1,128], index: 2, kind: input, shape index: {}]   ;;  %s4352_s3 = inlined_call_operand.vmem [shape: f32[128,128], index: 3, kind: input, shape index: {}]   ;;  %s4353_s4 = inlined_call_operand.vmem [shape: f32[1,128], index: 4, kind: input, shape index: {}]   ;;  %s4354_s5 = inlined_call_operand.vmem [shape: f32[128,32], index: 5, kind: input, shape index: {}]   ;;  %s4355_s6 = inlined_call_operand.vmem [shape: f32[1,32], index: 6, kind: input, shape index: {}]   ;;  %s4356_s7 = inlined_call_operand.vmem [shape: f32[200,32], index: 7, kind: output, shape index: {}]  }
   0x1   :  { %s2975_s26 = smov 0  }
   0x2 LB: > { %s2984_s27 = sadd.s32 4294967295, %s2897_s26   ;;  %s2986_s28 = sadd.s32 1, %s2897_s26   ;;  %s2897_s26 = sphi %s2975_s26, %s4371_s26   ;;  %s2893_s25 = sphi %s2973_s25, %s4370_s25   ;;  %s2889_s24 = sphi %s2971_s24, %s4369_s24  }
   0x3   : > { %s173_s29 = ssub.s32 %s2897_s26, %s2986_s28  ;;  %s176_s30 = sadd.s32 1, %s2893_s25 }
   0x4   : > { %p174_p0 = scmp.eq.s32.totalorder %s173_s29, 0  ;;  %p186_p1 = scmp.ne.s32.totalorder %s2893_s25, %s2889_s24 }
   0x5   : > { %p187_p2 = scmp.eq.s32.totalorder %s2984_s27, 1  ;;  %p2567_p3 = scmp.ge.s32.totalorder %s2897_s26, 1 }
   0x6   : > { %s2994_s8 = scalar_select %p174_p0, %s2893_s25, %s176_s30  }
   0x7   : > { %p2996_p4 = por %p187_p2, %p186_p1  ;;  %p246_p5 = scmp.lt.s32.totalorder %s2897_s26, 3 }
   0x9   : > { %p247_p6 = pnand %p2567_p3, %p246_p5 }
   0xa   : > { %s3007_s14 = smul.u32 (!%p247_p6), 13, %s2984_s27  ;;  %s278_s13 = sand.u32 (!%p247_p6), 1, %s2889_s24  }
   0xb   : > { %250 = sbr.rel (%p247_p6) target bundleno = 769 (0x301), region = 48 }
   0xc   : > { %p286_p7 = scmp.lt.s32.totalorder (!%p247_p6), %s3007_s14, 24  ;;  %s2666_s24 = smul.u32 (!%p247_p6), 104, %s278_s13 }
   0xe   : > { %s3947_s15 = scalar_lea.vmem (!%p247_p6), [#allocation2], %s2666_s24  }
  0x10   : > { %v316_v0 = vld [vmem:[%s4350_s1 + $0x18] sm:$0xff]  ;;  %v315_v1 = vld [vmem:[%s4350_s1 + $0x10] sm:$0xff]  ;;  %v314_v2 = vld [vmem:[%s4350_s1 + $0x8] sm:$0xff]  ;;  %s287_s19 = scalar_select %p286_p7, %s3007_s14, 24  ;;  %vm321_vm0 = vcmask 261120  }
  0x11   : > { %373 = vmatpush.msra.mxu0 %v316_v0  ;;  %v313_v3 = vld [vmem:[%s4350_s1] sm:$0xff]  ;;  %v1004_v17 = vld [vmem:[%s4352_s3 + $0x78] sm:$0xff]  ;;  %v1003_v18 = vld [vmem:[%s4352_s3 + $0x70] sm:$0xff]  ;;  %s2306_s16 = ssub.s32 (%p2996_p4), 25, %s3007_s14  ;;  %s2633_s17 = smul.u32 (%p2996_p4), 104, %s2984_s27 }
  0x12   : > { %s2568_s20 = sshll.u32 %s287_s19, 3  ;;  %1009 = vmatpush.msra.mxu1 %v1004_v17  ;;  %2634 = vmatpush.msra.mxu3 %v1004_v17  ;;  %v1002_v19 = vld [vmem:[%s4352_s3 + $0x68] sm:$0xff]  ;;  %v3045_v20 = vld [vmem:[%s4351_s2] ss:$0 sm:$0xff]  ;;  %v1000_v22 = vld [vmem:[%s4352_s3 + $0x58] sm:$0xff]  ;;  %p2307_p8 = scmp.lt.s32.totalorder (%p2996_p4), %s2306_s16, 13 }
  0x13   : > { %374 = vmatpush.msra.mxu0 %v315_v1  ;;  %s289_s23 = scalar_lea.vmem %s4349_s0, %s2568_s20  ;;  %v1001_v21 = vld [vmem:[%s4352_s3 + $0x60] sm:$0xff]  ;;  %v999_v25 = vld [vmem:[%s4352_s3 + $0x50] sm:$0xff]  ;;  %v998_v27 = vld [vmem:[%s4352_s3 + $0x48] sm:$0xff]  ;;  %s4263_s20 = scalar_lea.vmem (%p2996_p4), %s4356_s7, %s2633_s17  }
  0x14   : > { %v300_v4 = vld [vmem:[%s289_s23] sm:$0xff]  ;;  %v301_v5 = vld [vmem:[%s289_s23 + $0x8] sm:$0xff]  ;;  %v302_v6 = vld [vmem:[%s289_s23 + $0x10] sm:$0xff]  ;;  %1010 = vmatpush.msra.mxu1 %v1003_v18  ;;  %2635 = vmatpush.msra.mxu3 %v1003_v18 }
  0x15   : > { %375 = vmatpush.msra.mxu0 %v314_v2  ;;  %v303_v7 = vld [vmem:[%s289_s23 + $0x18] sm:$0xff]  ;;  %v304_v8 = vld [vmem:[%s289_s23 + $0x20] sm:$0xff]  ;;  %v305_v9 = vld [vmem:[%s289_s23 + $0x28] sm:$0xff] }
  0x16   : > { %v306_v10 = vld [vmem:[%s289_s23 + $0x30] sm:$0xff]  ;;  %v307_v11 = vld [vmem:[%s289_s23 + $0x38] sm:$0xff]  ;;  %v308_v12 = vld [vmem:[%s289_s23 + $0x40] sm:$0xff]  ;;  %1011 = vmatpush.msra.mxu1 %v1002_v19  ;;  %2636 = vmatpush.msra.mxu3 %v1002_v19 }
  0x17   : > { %376 = vmatpush.msra.mxu0 %v313_v3  ;;  %v309_v13 = vld [vmem:[%s289_s23 + $0x48] sm:$0xff]  ;;  %v310_v14 = vld [vmem:[%s289_s23 + $0x50] sm:$0xff]  ;;  %v311_v15 = vld [vmem:[%s289_s23 + $0x58] sm:$0xff] }
  0x18   : > { %2569 = vmatmul.msk.f32.vlgmr.msra.gmra.mxu0 %vm321_vm0, %v300_v4  ;;  %v312_v16 = vld [vmem:[%s289_s23 + $0x60] sm:$0xff]  ;;  %1012 = vmatpush.msra.mxu1 %v1001_v21  ;;  %v996_v31 = vld [vmem:[%s4352_s3 + $0x38] sm:$0xff]  ;;  %v995_v35 = vld [vmem:[%s4352_s3 + $0x30] sm:$0xff] }
  0x19   : > { %2637 = vmatpush.msra.mxu3 %v1001_v21  ;;  %v997_v29 = vld [vmem:[%s4352_s3 + $0x40] sm:$0xff]  ;;  %v994_v39 = vld [vmem:[%s4352_s3 + $0x28] sm:$0xff]  ;;  %v992_v47 = vld [vmem:[%s4352_s3 + $0x18] sm:$0xff] }
  0x1a   : > { %1013 = vmatpush.msra.mxu1 %v1000_v22  ;;  %v993_v43 = vld [vmem:[%s4352_s3 + $0x20] sm:$0xff]  ;;  %v991_v52 = vld [vmem:[%s4352_s3 + $0x10] sm:$0xff]  ;;  %v990_v57 = vld [vmem:[%s4352_s3 + $0x8] sm:$0xff] }
  0x1b   : > { %2638 = vmatpush.msra.mxu3 %v1000_v22  ;;  %v989_v62 = vld [vmem:[%s4352_s3] sm:$0xff] }
  0x1c   : > { %1014 = vmatpush.msra.mxu1 %v999_v25 }
  0x1d   : > { %2639 = vmatpush.msra.mxu3 %v999_v25 }
  0x1e   : > { %1015 = vmatpush.msra.mxu1 %v998_v27 }
  0x1f   : > { %2640 = vmatpush.msra.mxu3 %v998_v27 }
  0x20   : > { %2570 = vmatmul.msk.f32.gmra.mxu0 %vm321_vm0, %v301_v5  ;;  %1016 = vmatpush.msra.mxu1 %v997_v29 }
  0x21   : > { %2641 = vmatpush.msra.mxu3 %v997_v29 }
  0x22   : > { %1017 = vmatpush.msra.mxu1 %v996_v31 }
  0x23   : > { %2642 = vmatpush.msra.mxu3 %v996_v31 }
  0x24   : > { %1018 = vmatpush.msra.mxu1 %v995_v35 }
  0x25   : > { %2643 = vmatpush.msra.mxu3 %v995_v35 }
  0x26   : > { %1019 = vmatpush.msra.mxu1 %v994_v39 }
  0x27   : > { %2644 = vmatpush.msra.mxu3 %v994_v39 }
  0x28   : > { %2571 = vmatmul.msk.f32.gmra.mxu0 %vm321_vm0, %v302_v6  ;;  %1020 = vmatpush.msra.mxu1 %v993_v43 }
  0x29   : > { %2645 = vmatpush.msra.mxu3 %v993_v43 }
  0x2a   : > { %1021 = vmatpush.msra.mxu1 %v992_v47 }
  0x2b   : > { %2646 = vmatpush.msra.mxu3 %v992_v47 }
  0x2c   : > { %1022 = vmatpush.msra.mxu1 %v991_v52 }
  0x2d   : > { %2647 = vmatpush.msra.mxu3 %v991_v52 }
  0x2e   : > { %1023 = vmatpush.msra.mxu1 %v990_v57 }
  0x2f   : > { %2648 = vmatpush.msra.mxu3 %v990_v57 }
  0x30   : > { %2572 = vmatmul.msk.f32.gmra.mxu0 %vm321_vm0, %v303_v7  ;;  %1024 = vmatpush.msra.mxu1 %v989_v62 }
  0x31   : > { %2649 = vmatpush.msra.mxu3 %v989_v62 }
  0x38   : > { %2573 = vmatmul.msk.f32.gmra.mxu0 %vm321_vm0, %v304_v8 }
  0x40   : > { %2574 = vmatmul.msk.f32.gmra.mxu0 %vm321_vm0, %v305_v9 }
  0x48   : > { %2575 = vmatmul.msk.f32.gmra.mxu0 %vm321_vm0, %v306_v10 }
  0x50   : > { %2576 = vmatmul.msk.f32.gmra.mxu0 %vm321_vm0, %v307_v11 }
  0x58   : > { %2577 = vmatmul.msk.f32.gmra.mxu0 %vm321_vm0, %v308_v12 }
  0x60   : > { %2578 = vmatmul.msk.f32.gmra.mxu0 %vm321_vm0, %v309_v13 }
  0x68   : > { %2579 = vmatmul.msk.f32.gmra.mxu0 %vm321_vm0, %v310_v14 }
  0x70   : > { %2580 = vmatmul.msk.f32.gmra.mxu0 %vm321_vm0, %v311_v15 }
  0x78   : > { %2581 = vmatmul.msk.f32.gmra.mxu0 %vm321_vm0, %v312_v16 }
  0x95   : > { %v378_v23 = vpop.f32.mrf.mxu0 }
  0x96   : > { %v3054_v24 = vadd.f32 %v3045_v20, %v378_v23 }
  0x98   : > { %v3060_v26 = vmul.f32 0.70710677, %v3054_v24 }
  0x9a   : > { %v443_v28 = vmul.f32 %v3060_v26, %v3060_v26 }
  0x9c   : > { %v3070_v30 = vmin.f32 %v443_v28, 16.0 }
  0x9d   : > { %v381_v32 = vpop.f32.mrf.mxu0 }
  0x9e   : > { %v445_v33 = vmul.f32 2.1237322e-06, %v3070_v30  ;;  %v3077_v34 = vadd.f32 %v3045_v20, %v381_v32  ;;  %v456_v36 = vmul.f32 3.8918573e-05, %v3070_v30 }
  0xa0   : > { %v446_v37 = vadd.f32 0.00028619796, %v445_v33  ;;  %v3084_v38 = vmul.f32 0.70710677, %v3077_v34  ;;  %v457_v40 = vadd.f32 0.001143296, %v456_v36 }
  0xa2   : > { %v447_v41 = vmul.f32 %v446_v37, %v3070_v30  ;;  %v483_v42 = vmul.f32 %v3084_v38, %v3084_v38  ;;  %v458_v44 = vmul.f32 %v457_v40, %v3070_v30 }
  0xa4   : > { %v448_v45 = vadd.f32 0.0036580483, %v447_v41  ;;  %v3096_v46 = vmin.f32 %v483_v42, 16.0  ;;  %v459_v49 = vadd.f32 0.014752088, %v458_v44 }
  0xa5   : > { %v384_v48 = vpop.f32.mrf.mxu0 }
  0xa6   : > { %v485_v50 = vmul.f32 2.1237322e-06, %v3096_v46  ;;  %v3103_v51 = vadd.f32 %v3045_v20, %v384_v48  ;;  %v496_v53 = vmul.f32 3.8918573e-05, %v3096_v46  ;;  %v460_v54 = vmul.f32 %v459_v49, %v3070_v30 }
  0xa7   : > { %v449_v55 = vmul.f32 %v448_v45, %v3070_v30 }
  0xa8   : > { %v486_v56 = vadd.f32 0.00028619796, %v485_v50  ;;  %v3115_v58 = vmul.f32 0.70710677, %v3103_v51  ;;  %v461_v59 = vadd.f32 0.112945676, %v460_v54 }
  0xa9   : > { %v497_v60 = vadd.f32 0.001143296, %v496_v53  ;;  %v450_v2 = vadd.f32 0.05243302, %v449_v55 }
  0xaa   : > { %v487_v61 = vmul.f32 %v486_v56, %v3096_v46  ;;  %v523_v63 = vmul.f32 %v3115_v58, %v3115_v58  ;;  %v462_v0 = vmul.f32 %v461_v59, %v3070_v30 }
  0xab   : > { %v498_v1 = vmul.f32 %v497_v60, %v3096_v46  ;;  %v451_v13 = vmul.f32 %v450_v2, %v3070_v30 }
  0xac   : > { %v488_v3 = vadd.f32 0.0036580483, %v487_v61  ;;  %v3125_v4 = vmin.f32 %v523_v63, 16.0  ;;  %v463_v6 = vadd.f32 0.4994258, %v462_v0 }
  0xad   : > { %v387_v5 = vpop.f32.mrf.mxu0  ;;  %v499_v7 = vadd.f32 0.014752088, %v498_v1  ;;  %v452_v23 = vadd.f32 0.18741608, %v451_v13 }
  0xae   : > { %v3128_v8 = vadd.f32 %v3045_v20, %v387_v5  ;;  %v525_v9 = vmul.f32 2.1237322e-06, %v3125_v4  ;;  %v464_v10 = vmul.f32 %v463_v6, %v3070_v30  ;;  %v536_v12 = vmul.f32 3.8918573e-05, %v3125_v4 }
  0xaf   : > { %v500_v11 = vmul.f32 %v499_v7, %v3096_v46  ;;  %v489_v14 = vmul.f32 %v488_v3, %v3096_v46  ;;  %v453_v40 = vmul.f32 %v452_v23, %v3070_v30 }
  0xb0   : > { %v526_v15 = vadd.f32 0.00028619796, %v525_v9  ;;  %v3137_v16 = vmul.f32 0.70710677, %v3128_v8  ;;  %v465_v17 = vadd.f32 1.0, %v464_v10 }
  0xb1   : > { %v501_v18 = vadd.f32 0.112945676, %v500_v11  ;;  %v537_v19 = vadd.f32 0.001143296, %v536_v12  ;;  %v490_v27 = vadd.f32 0.05243302, %v489_v14 }
  0xb2   : > { %v527_v21 = vmul.f32 %v526_v15, %v3125_v4  ;;  %v563_v22 = vmul.f32 %v3137_v16, %v3137_v16  ;;  %2759 = vrcp.f32 %v465_v17  ;;  %v454_v30 = vadd.f32 1.1283791, %v453_v40 }
  0xb3   : > { %v502_v25 = vmul.f32 %v501_v18, %v3096_v46  ;;  %v538_v32 = vmul.f32 %v537_v19, %v3125_v4  ;;  %v491_v43 = vmul.f32 %v490_v27, %v3096_v46  ;;  %v475_v59 = vand.u32 2147483647, %v465_v17 }
  0xb4   : > { %v528_v28 = vadd.f32 0.0036580483, %v527_v21  ;;  %v3143_v29 = vmin.f32 %v563_v22, 16.0  ;;  %v477_v60 = vand.u32 2147483648, %v465_v17  ;;  %vm471_vm2 = vweird.f32 %v465_v17 }
  0xb5   : > { %v390_v31 = vpop.f32.mrf.mxu0  ;;  %v503_v37 = vadd.f32 0.4994258, %v502_v25  ;;  %v539_v39 = vadd.f32 0.014752088, %v538_v32  ;;  %v492_v56 = vadd.f32 0.18741608, %v491_v43  ;;  %v455_v7 = vmul.f32 %v454_v30, %v3060_v26 }
  0xb6   : > { %v3147_v33 = vadd.f32 %v3045_v20, %v390_v31  ;;  %v529_v35 = vmul.f32 %v528_v28, %v3125_v4  ;;  %v565_v36 = vmul.f32 2.1237322e-06, %v3143_v29  ;;  %v576_v2 = vmul.f32 3.8918573e-05, %v3143_v29 }
  0xb7   : > { %v504_v44 = vmul.f32 %v503_v37, %v3096_v46  ;;  %v540_v45 = vmul.f32 %v539_v39, %v3125_v4  ;;  %v493_v9 = vmul.f32 %v492_v56, %v3096_v46  ;;  %vm476_vm4 = vcmp.eq.f32.partialorder %v475_v59, 8.507059e+37 }
  0xb8   : > { %v3153_v41 = vmul.f32 0.70710677, %v3147_v33  ;;  %v2760_v42 = vpop.eup %2759  ;;  %v530_v47 = vadd.f32 0.05243302, %v529_v35  ;;  %v566_v50 = vadd.f32 0.00028619796, %v565_v36 }
  0xb9   : > { %v467_v49 = vmul.f32 %v2760_v42, %v465_v17  ;;  %v3160_v52 = vadd.f32 1.0, %v504_v44  ;;  %v541_v53 = vadd.f32 0.112945676, %v540_v45  ;;  %vm472_vm1 = vweird.f32 %v2760_v42 }
  0xba   : > { %v603_v48 = vmul.f32 %v3153_v41, %v3153_v41  ;;  %v531_v61 = vmul.f32 %v530_v47, %v3125_v4  ;;  %v567_v0 = vmul.f32 %v566_v50, %v3143_v29  ;;  %vm473_vm3 = vmor %vm471_vm2, %vm472_vm1  ;;  %v478_v10 = vor.u32 1.1754944e-38, %v477_v60 }
  0xbb   : > { %v468_v55 = vsub.f32 1.0, %v467_v49  ;;  %2761 = vrcp.f32 %v3160_v52  ;;  %v542_v1 = vmul.f32 %v541_v53, %v3125_v4  ;;  %v577_v21 = vadd.f32 0.001143296, %v576_v2 }
  0xbc   : > { %v3162_v54 = vmin.f32 %v603_v48, 16.0  ;;  %v532_v11 = vadd.f32 0.18741608, %v531_v61  ;;  %v568_v18 = vadd.f32 0.0036580483, %v567_v0  ;;  %v417_v46 = vmul.f32 0.5, %v3054_v24 }
  0xbd   : > { %v393_v57 = vpop.f32.mrf.mxu0  ;;  %v469_v63 = vmul.f32 %v2760_v42, %v468_v55  ;;  %v543_v14 = vadd.f32 0.4994258, %v542_v1  ;;  %v494_v25 = vadd.f32 1.1283791, %v493_v9  ;;  %v578_v31 = vmul.f32 %v577_v21, %v3143_v29 }
  0xbe   : > { %v3167_v62 = vadd.f32 %v3045_v20, %v393_v57  ;;  %v605_v3 = vmul.f32 2.1237322e-06, %v3162_v54  ;;  %v533_v32 = vmul.f32 %v532_v11, %v3125_v4  ;;  %v515_v37 = vand.u32 2147483647, %v3160_v52 }
  0xbf   : > { %v470_v6 = vadd.f32 %v2760_v42, %v469_v63  ;;  %v544_v28 = vmul.f32 %v543_v14, %v3125_v4  ;;  %v569_v39 = vmul.f32 %v568_v18, %v3143_v29  ;;  %v517_v45 = vand.u32 2147483648, %v3160_v52 }
  0xc0   : > { %v3174_v5 = vmul.f32 0.70710677, %v3167_v62  ;;  %v606_v22 = vadd.f32 0.00028619796, %v605_v3  ;;  %v579_v47 = vadd.f32 0.014752088, %v578_v31  ;;  %v495_v50 = vmul.f32 %v494_v25, %v3084_v38 }
  0xc1   : > { %v474_v13 = vsel %vm473_vm3, %v2760_v42, %v470_v6  ;;  %v2762_v15 = vpop.eup %2761  ;;  %v3193_v24 = vadd.f32 1.0, %v544_v28  ;;  %vm511_vm6 = vweird.f32 %v3160_v52  ;;  %v534_v55 = vadd.f32 1.1283791, %v533_v32 }
  0xc2   : > { %v643_v12 = vmul.f32 %v3174_v5, %v3174_v5  ;;  %v479_v19 = vsel %vm476_vm4, %v478_v10, %v474_v13  ;;  %v507_v26 = vmul.f32 %v2762_v15, %v3160_v52  ;;  %v607_v43 = vmul.f32 %v606_v22, %v3162_v54 }
  0xc3   : > { %v480_v17 = vmul.f32 %v479_v19, %v455_v7  ;;  %vm512_vm5 = vweird.f32 %v2762_v15  ;;  %2763 = vrcp.f32 %v3193_v24  ;;  %v518_v57 = vor.u32 1.1754944e-38, %v517_v45 }
  0xc4   : > { %v3180_v23 = vmin.f32 %v643_v12, 16.0  ;;  %v508_v42 = vsub.f32 1.0, %v507_v26  ;;  %vm513_vm7 = vmor %vm511_vm6, %vm512_vm5  ;;  %v580_v59 = vmul.f32 %v579_v47, %v3143_v29  ;;  %v570_v60 = vadd.f32 0.05243302, %v569_v39 }
  0xc5   : > { %v396_v27 = vpop.f32.mrf.mxu0  ;;  %v2582_v36 = vclamps-f32 %v480_v17, 1.0  ;;  %v608_v61 = vadd.f32 0.0036580483, %v607_v43  ;;  %vm516_vm8 = vcmp.eq.f32.partialorder %v515_v37, 8.507059e+37  ;;  %v616_v7 = vmul.f32 3.8918573e-05, %v3162_v54 }
  0xc6   : > { %v3188_v35 = vadd.f32 %v3045_v20, %v396_v27  ;;  %v645_v40 = vmul.f32 2.1237322e-06, %v3180_v23  ;;  %v509_v48 = vmul.f32 %v2762_v15, %v508_v42  ;;  %v581_v6 = vadd.f32 0.112945676, %v580_v59 }
  0xc7   : > { %v963_v44 = vadd.f32 1.0, %v2582_v36  ;;  %v418_v9 = vmul.f32 0.5, %v3077_v34  ;;  %v535_v10 = vmul.f32 %v534_v55, %v3115_v58  ;;  %v571_v13 = vmul.f32 %v570_v60, %v3143_v29 }
  0xc8   : > { %v3198_v4 = vmul.f32 0.70710677, %v3188_v35  ;;  %v646_v53 = vadd.f32 0.00028619796, %v645_v40  ;;  %v510_v30 = vadd.f32 %v2762_v15, %v509_v48  ;;  %v609_v14 = vmul.f32 %v608_v61, %v3162_v54 }
  0xc9   : > { %v976_v49 = vmul.f32 %v963_v44, %v417_v46  ;;  %v2764_v2 = vpop.eup %2763  ;;  %v555_v21 = vand.u32 2147483647, %v3193_v24  ;;  %v557_v22 = vand.u32 2147483648, %v3193_v24  ;;  %v582_v34 = vmul.f32 %v581_v6, %v3143_v29 }
  0xca   : > { %v683_v56 = vmul.f32 %v3198_v4, %v3198_v4  ;;  %v514_v0 = vsel %vm513_vm7, %v2762_v15, %v510_v30  ;;  %v647_v52 = vmul.f32 %v646_v53, %v3180_v23  ;;  %v547_v12 = vmul.f32 %v2764_v2, %v3193_v24 }
  0xcb   : > { %1025 = vmatmul.f32.vlgmr.msra.gmra.mxu1 %v976_v49  ;;  %v519_v1 = vsel %vm516_vm8, %v518_v57, %v514_v0  ;;  %v617_v46 = vadd.f32 0.001143296, %v616_v7  ;;  %vm552_vm9 = vweird.f32 %v2764_v2  ;;  %v583_v28 = vadd.f32 0.4994258, %v582_v34 }
  0xcc   : > { %v520_v3 = vmul.f32 %v519_v1, %v495_v50  ;;  %v3213_v11 = vmin.f32 %v683_v56, 16.0  ;;  %v548_v19 = vsub.f32 1.0, %v547_v12  ;;  %v648_v58 = vadd.f32 0.0036580483, %v647_v52 }
  0xcd   : > { %v399_v63 = vpop.f32.mrf.mxu0  ;;  %vm551_vm10 = vweird.f32 %v3193_v24  ;;  %v618_v37 = vmul.f32 %v617_v46, %v3162_v54  ;;  %v558_v42 = vor.u32 1.1754944e-38, %v557_v22  ;;  %v584_v43 = vmul.f32 %v583_v28, %v3143_v29 }
  0xce   : > { %v3207_v38 = vadd.f32 %v3045_v20, %v399_v63  ;;  %v2583_v18 = vclamps-f32 %v520_v3, 1.0  ;;  %v685_v25 = vmul.f32 2.1237322e-06, %v3213_v11  ;;  %v549_v27 = vmul.f32 %v2764_v2, %v548_v19  ;;  %vm553_vm11 = vmor %vm551_vm10, %vm552_vm9 }
  0xcf   : > { %v649_v44 = vmul.f32 %v648_v58, %v3180_v23  ;;  %v619_v47 = vadd.f32 0.014752088, %v618_v37  ;;  %v656_v48 = vmul.f32 3.8918573e-05, %v3180_v23  ;;  %vm556_vm12 = vcmp.eq.f32.partialorder %v555_v21, 8.507059e+37 }
  0xd0   : > { %v3219_v15 = vmul.f32 0.70710677, %v3207_v38  ;;  %v964_v26 = vadd.f32 1.0, %v2583_v18  ;;  %v550_v40 = vadd.f32 %v2764_v2, %v549_v27  ;;  %v686_v49 = vadd.f32 0.00028619796, %v685_v25 }
  0xd1   : > { %v572_v53 = vadd.f32 0.18741608, %v571_v13  ;;  %v3241_v55 = vadd.f32 1.0, %v584_v43  ;;  %v610_v56 = vadd.f32 0.05243302, %v609_v14  ;;  %v620_v60 = vmul.f32 %v619_v47, %v3162_v54 }
  0xd2   : > { %v723_v17 = vmul.f32 %v3219_v15, %v3219_v15  ;;  %v977_v32 = vmul.f32 %v964_v26, %v418_v9  ;;  %v554_v50 = vsel %vm553_vm11, %v2764_v2, %v550_v40  ;;  %v650_v61 = vadd.f32 0.05243302, %v649_v44 }
  0xd3   : > { %v559_v30 = vsel %vm556_vm12, %v558_v42, %v554_v50  ;;  %2765 = vrcp.f32 %v3241_v55  ;;  %v657_v0 = vadd.f32 0.001143296, %v656_v48  ;;  %v687_v1 = vmul.f32 %v686_v49, %v3213_v11 }
  0xd4   : > { %v3227_v31 = vmin.f32 %v723_v17, 16.0  ;;  %1028 = vmatmul.f32.gmra.mxu1 %v977_v32  ;;  %v560_v59 = vmul.f32 %v559_v30, %v535_v10  ;;  %v419_v3 = vmul.f32 0.5, %v3103_v51  ;;  %v573_v6 = vmul.f32 %v572_v53, %v3143_v29 }
  0xd5   : > { %v402_v36 = vpop.f32.mrf.mxu0  ;;  %v621_v9 = vadd.f32 0.112945676, %v620_v60  ;;  %v611_v10 = vmul.f32 %v610_v56, %v3162_v54  ;;  %v651_v18 = vmul.f32 %v650_v61, %v3180_v23  ;;  %v658_v51 = vmul.f32 %v657_v0, %v3180_v23 }
  0xd6   : > { %v3232_v39 = vadd.f32 %v3045_v20, %v402_v36  ;;  %v725_v45 = vmul.f32 2.1237322e-06, %v3227_v31  ;;  %v2584_v52 = vclamps-f32 %v560_v59, 1.0  ;;  %v688_v22 = vadd.f32 0.0036580483, %v687_v1 }
  0xd7   : > { %v622_v21 = vmul.f32 %v621_v9, %v3162_v54  ;;  %v574_v46 = vadd.f32 1.1283791, %v573_v6  ;;  %v612_v25 = vadd.f32 0.18741608, %v611_v10  ;;  %v652_v32 = vadd.f32 0.18741608, %v651_v18 }
  0xd8   : > { %v3239_v24 = vmul.f32 0.70710677, %v3232_v39  ;;  %v726_v63 = vadd.f32 0.00028619796, %v725_v45  ;;  %v965_v13 = vadd.f32 1.0, %v2584_v52  ;;  %v689_v42 = vmul.f32 %v688_v22, %v3213_v11 }
  0xd9   : > { %v2766_v58 = vpop.eup %2765  ;;  %v623_v26 = vadd.f32 0.4994258, %v622_v21  ;;  %v659_v40 = vadd.f32 0.014752088, %v658_v51  ;;  %v595_v45 = vand.u32 2147483647, %v3241_v55  ;;  %v575_v59 = vmul.f32 %v574_v46, %v3137_v16 }
  0xda   : > { %v763_v57 = vmul.f32 %v3239_v24, %v3239_v24  ;;  %v727_v19 = vmul.f32 %v726_v63, %v3227_v31  ;;  %v978_v29 = vmul.f32 %v965_v13, %v419_v3  ;;  %v587_v28 = vmul.f32 %v2766_v58, %v3241_v55 }
  0xdb   : > { %v624_v37 = vmul.f32 %v623_v26, %v3162_v54  ;;  %vm592_vm13 = vweird.f32 %v2766_v58  ;;  %v597_v48 = vand.u32 2147483648, %v3241_v55  ;;  %v613_v61 = vmul.f32 %v612_v25, %v3162_v54 }
  0xdc   : > { %v3248_v2 = vmin.f32 %v763_v57, 16.0  ;;  %1031 = vmatmul.f32.gmra.mxu1 %v978_v29  ;;  %v728_v36 = vadd.f32 0.0036580483, %v727_v19  ;;  %v588_v44 = vsub.f32 1.0, %v587_v28  ;;  %v660_v57 = vmul.f32 %v659_v40, %v3180_v23 }
  0xdd   : > { %v405_v7 = vpop.f32.mrf.mxu0  ;;  %v3274_v50 = vadd.f32 1.0, %v624_v37  ;;  %vm591_vm14 = vweird.f32 %v3241_v55  ;;  %v653_v1 = vmul.f32 %v652_v32, %v3180_v23  ;;  %v598_v3 = vor.u32 1.1754944e-38, %v597_v48 }
  0xde   : > { %v765_v12 = vmul.f32 2.1237322e-06, %v3248_v2  ;;  %v3255_v14 = vadd.f32 %v3045_v20, %v405_v7  ;;  %v589_v30 = vmul.f32 %v2766_v58, %v588_v44  ;;  %v729_v60 = vmul.f32 %v728_v36, %v3227_v31  ;;  %vm593_vm15 = vmor %vm591_vm14, %vm592_vm13 }
  0xdf   : > { %2767 = vrcp.f32 %v3274_v50  ;;  %v690_v16 = vadd.f32 0.05243302, %v689_v42  ;;  %vm596_vm1 = vcmp.eq.f32.partialorder %v595_v45, 8.507059e+37  ;;  %v661_v9 = vadd.f32 0.112945676, %v660_v57 }
  0xe0   : > { %v3262_v34 = vmul.f32 0.70710677, %v3255_v14  ;;  %v766_v17 = vadd.f32 0.00028619796, %v765_v12  ;;  %v590_v0 = vadd.f32 %v2766_v58, %v589_v30  ;;  %v730_v10 = vadd.f32 0.05243302, %v729_v60 }
  0xe1   : > { %v420_v55 = vmul.f32 0.5, %v3128_v8  ;;  %v662_v19 = vmul.f32 %v661_v9, %v3180_v23  ;;  %v614_v51 = vadd.f32 1.1283791, %v613_v61  ;;  %v654_v22 = vadd.f32 1.1283791, %v653_v1 }
  0xe2   : > { %v803_v27 = vmul.f32 %v3262_v34, %v3262_v34  ;;  %v767_v47 = vmul.f32 %v766_v17, %v3248_v2  ;;  %v594_v7 = vsel %vm593_vm15, %v2766_v58, %v590_v0  ;;  %v691_v26 = vmul.f32 %v690_v16, %v3213_v11 }
  0xe3   : > { %v599_v12 = vsel %vm596_vm1, %v598_v3, %v594_v7  ;;  %v696_v8 = vmul.f32 3.8918573e-05, %v3213_v11  ;;  %v663_v32 = vadd.f32 0.4994258, %v662_v19  ;;  %v736_v36 = vmul.f32 3.8918573e-05, %v3227_v31 }
  0xe4   : > { %v3269_v43 = vmin.f32 %v803_v27, 16.0  ;;  %v768_v52 = vadd.f32 0.0036580483, %v767_v47  ;;  %v600_v18 = vmul.f32 %v599_v12, %v575_v59  ;;  %v731_v27 = vmul.f32 %v730_v10, %v3227_v31 }
  0xe5   : > { %v408_v49 = vpop.f32.mrf.mxu0  ;;  %v2768_v21 = vpop.eup %2767  ;;  %v635_v44 = vand.u32 2147483647, %v3274_v50  ;;  %v637_v48 = vand.u32 2147483648, %v3274_v50  ;;  %v697_v57 = vadd.f32 0.001143296, %v696_v8  ;;  %v615_v59 = vmul.f32 %v614_v51, %v3153_v41 }
  0xe6   : > { %v805_v53 = vmul.f32 2.1237322e-06, %v3269_v43  ;;  %v3278_v56 = vadd.f32 %v3045_v20, %v408_v49  ;;  %v769_v29 = vmul.f32 %v768_v52, %v3248_v2  ;;  %v2585_v46 = vclamps-f32 %v600_v18, 1.0 }
  0xe7   : > { %v627_v25 = vmul.f32 %v2768_v21, %v3274_v50  ;;  %v664_v49 = vmul.f32 %v663_v32, %v3180_v23  ;;  %vm632_vm2 = vweird.f32 %v2768_v21  ;;  %v692_v0 = vadd.f32 0.18741608, %v691_v26 }
  0xe8   : > { %v806_v63 = vadd.f32 0.00028619796, %v805_v53  ;;  %v3289_v6 = vmul.f32 0.70710677, %v3278_v56  ;;  %v966_v40 = vadd.f32 1.0, %v2585_v46  ;;  %vm631_vm3 = vweird.f32 %v3274_v50 }
  0xe9   : > { %v628_v42 = vsub.f32 1.0, %v627_v25  ;;  %v770_v45 = vadd.f32 0.05243302, %v769_v29  ;;  %v3315_v61 = vadd.f32 1.0, %v664_v49  ;;  %v732_v23 = vadd.f32 0.18741608, %v731_v27  ;;  %vm633_vm4 = vmor %vm631_vm3, %vm632_vm2 }
  0xea   : > { %v843_v54 = vmul.f32 %v3289_v6, %v3289_v6  ;;  %v807_v13 = vmul.f32 %v806_v63, %v3269_v43  ;;  %v979_v53 = vmul.f32 %v966_v40, %v420_v55  ;;  %v737_v63 = vadd.f32 0.001143296, %v736_v36 }
  0xeb   : > { %v629_v30 = vmul.f32 %v2768_v21, %v628_v42  ;;  %v638_v16 = vor.u32 1.1754944e-38, %v637_v48  ;;  %2769 = vrcp.f32 %v3315_v61  ;;  %v771_v7 = vmul.f32 %v770_v45, %v3248_v2 }
  0xec   : > { %v3297_v58 = vmin.f32 %v843_v54, 16.0  ;;  %v808_v37 = vadd.f32 0.0036580483, %v807_v13  ;;  %1034 = vmatmul.f32.gmra.mxu1 %v979_v53  ;;  %vm636_vm5 = vcmp.eq.f32.partialorder %v635_v44, 8.507059e+37  ;;  %v698_v10 = vmul.f32 %v697_v57, %v3213_v11 }
  0xed   : > { %v411_v17 = vpop.f32.mrf.mxu0  ;;  %v630_v52 = vadd.f32 %v2768_v21, %v629_v30  ;;  %v738_v55 = vmul.f32 %v737_v63, %v3227_v31  ;;  %v776_v50 = vmul.f32 3.8918573e-05, %v3248_v2  ;;  %v421_v51 = vmul.f32 0.5, %v3147_v33 }
  0xee   : > { %v3304_v28 = vadd.f32 %v3045_v20, %v411_v17  ;;  %v845_v47 = vmul.f32 2.1237322e-06, %v3297_v58  ;;  %v809_v1 = vmul.f32 %v808_v37, %v3269_v43  ;;  %v655_v29 = vmul.f32 %v654_v22, %v3174_v5 }
  0xef   : > { %v634_v9 = vsel %vm633_vm4, %v2768_v21, %v630_v52  ;;  %v3331_v21 = vmul.f32 0.5, %v3167_v62  ;;  %v693_v26 = vmul.f32 %v692_v0, %v3213_v11  ;;  %v772_v46 = vadd.f32 0.18741608, %v771_v7 }
  0xf0   : > { %v3313_v60 = vmul.f32 0.70710677, %v3304_v28  ;;  %v846_v3 = vadd.f32 0.00028619796, %v845_v47  ;;  %v639_v12 = vsel %vm636_vm5, %v638_v16, %v634_v9  ;;  %v810_v13 = vadd.f32 0.05243302, %v809_v1 }
  0xf1   : > { %v640_v18 = vmul.f32 %v639_v12, %v615_v59  ;;  %v699_v8 = vadd.f32 0.014752088, %v698_v10  ;;  %v2770_v27 = vpop.eup %2769  ;;  %v733_v32 = vmul.f32 %v732_v23, %v3227_v31  ;;  %v777_v37 = vadd.f32 0.001143296, %v776_v50 }
  0xf2   : > { %v883_v54 = vmul.f32 %v3313_v60, %v3313_v60  ;;  %v847_v17 = vmul.f32 %v846_v3, %v3297_v58  ;;  %v811_v33 = vmul.f32 %v810_v13, %v3269_v43  ;;  %v667_v40 = vmul.f32 %v2770_v27, %v3315_v61 }
  0xf3   : > { %v2586_v25 = vclamps-f32 %v640_v18, 1.0  ;;  %v675_v42 = vand.u32 2147483647, %v3315_v61  ;;  %v700_v44 = vmul.f32 %v699_v8, %v3213_v11  ;;  %v677_v49 = vand.u32 2147483648, %v3315_v61 }
  0xf4   : > { %v3337_v36 = vmin.f32 %v883_v54, 16.0  ;;  %v848_v22 = vadd.f32 0.0036580483, %v847_v17  ;;  %v668_v48 = vsub.f32 1.0, %v667_v40  ;;  %v778_v53 = vmul.f32 %v777_v37, %v3248_v2 }
  0xf5   : > { %v414_v41 = vpop.f32.mrf.mxu0  ;;  %v967_v62 = vadd.f32 1.0, %v2586_v25  ;;  %vm672_vm6 = vweird.f32 %v2770_v27  ;;  %v701_v57 = vadd.f32 0.112945676, %v700_v44  ;;  %v816_v52 = vmul.f32 3.8918573e-05, %v3269_v43 }
  0xf6   : > { %v3327_v19 = vadd.f32 %v3045_v20, %v414_v41  ;;  %v739_v20 = vadd.f32 0.014752088, %v738_v55  ;;  %v885_v30 = vmul.f32 2.1237322e-06, %v3337_v36  ;;  %v669_v63 = vmul.f32 %v2770_v27, %v668_v48 }
  0xf7   : > { %v980_v47 = vmul.f32 %v967_v62, %v421_v51  ;;  %v779_v1 = vadd.f32 0.014752088, %v778_v53  ;;  %vm671_vm7 = vweird.f32 %v3315_v61  ;;  %vm3354_vm8 = vcmp.eq.f32.partialorder %v675_v42, 8.507059e+37 }
  0xf8   : > { %v3342_v5 = vmul.f32 0.70710677, %v3327_v19  ;;  %v740_v45 = vmul.f32 %v739_v20, %v3227_v31  ;;  %v702_v3 = vmul.f32 %v701_v57, %v3213_v11  ;;  %v670_v41 = vadd.f32 %v2770_v27, %v669_v63  ;;  %vm673_vm9 = vmor %vm671_vm7, %vm672_vm6 }
  0xf9   : > { %1037 = vmatmul.f32.gmra.mxu1 %v980_v47  ;;  %v678_v7 = vor.u32 1.1754944e-38, %v677_v49  ;;  %v780_v9 = vmul.f32 %v779_v1, %v3248_v2  ;;  %v817_v10 = vadd.f32 0.001143296, %v816_v52  ;;  %v849_v12 = vmul.f32 %v848_v22, %v3297_v58 }
  0xfa   : > { %v741_v59 = vadd.f32 0.112945676, %v740_v45  ;;  %v923_v0 = vmul.f32 %v3342_v5, %v3342_v5  ;;  %v886_v54 = vadd.f32 0.00028619796, %v885_v30  ;;  %v703_v55 = vadd.f32 0.4994258, %v702_v3 }
  0xfb   : > { %v674_v50 = vsel %vm673_vm9, %v2770_v27, %v670_v41  ;;  %v781_v18 = vadd.f32 0.112945676, %v780_v9  ;;  %v818_v51 = vmul.f32 %v817_v10, %v3269_v43  ;;  %v773_v17 = vmul.f32 %v772_v46, %v3248_v2 }
  0xfc   : > { %v742_v16 = vmul.f32 %v741_v59, %v3227_v31  ;;  %v3363_v13 = vmin.f32 %v923_v0, 16.0  ;;  %v679_v25 = vsel %vm3354_vm8, %v678_v7, %v674_v50  ;;  %v704_v8 = vmul.f32 %v703_v55, %v3213_v11 }
  0xfd   : > { %v812_v37 = vadd.f32 0.18741608, %v811_v33  ;;  %v680_v62 = vmul.f32 %v679_v25, %v655_v29  ;;  %v782_v40 = vmul.f32 %v781_v18, %v3248_v2  ;;  %v819_v22 = vadd.f32 0.014752088, %v818_v51 }
  0xfe   : > { %v743_v61 = vadd.f32 0.4994258, %v742_v16  ;;  %v694_v27 = vadd.f32 1.1283791, %v693_v26  ;;  %v850_v42 = vadd.f32 0.05243302, %v849_v12  ;;  %v887_v46 = vmul.f32 %v886_v54, %v3337_v36 }
  0xff   : > { %v3372_v44 = vadd.f32 1.0, %v704_v8  ;;  %v734_v47 = vadd.f32 1.1283791, %v733_v32  ;;  %v2587_v48 = vclamps-f32 %v680_v62, 1.0  ;;  %v925_v49 = vmul.f32 2.1237322e-06, %v3363_v13 }
 0x100   : > { %v744_v20 = vmul.f32 %v743_v61, %v3227_v31  ;;  %v783_v11 = vadd.f32 0.4994258, %v782_v40  ;;  %v820_v31 = vmul.f32 %v819_v22, %v3269_v43  ;;  %v856_v29 = vmul.f32 3.8918573e-05, %v3297_v58 }
 0x101   : > { %2771 = vrcp.f32 %v3372_v44  ;;  %v774_v33 = vadd.f32 1.1283791, %v773_v17  ;;  %v813_v26 = vmul.f32 %v812_v37, %v3269_v43  ;;  %v968_v53 = vadd.f32 1.0, %v2587_v48 }
 0x102   : > { %v3374_v45 = vadd.f32 1.0, %v744_v20  ;;  %v3384_v32 = vmul.f32 0.5, %v3188_v35  ;;  %v3387_v30 = vmul.f32 0.5, %v3207_v38  ;;  %v851_v57 = vmul.f32 %v850_v42, %v3297_v58 }
 0x103   : > { %v695_v59 = vmul.f32 %v694_v27, %v3198_v4  ;;  %v888_v63 = vadd.f32 0.0036580483, %v887_v46  ;;  %v981_v0 = vmul.f32 %v968_v53, %v3331_v21  ;;  %v926_v1 = vadd.f32 0.00028619796, %v925_v49 }
 0x104   : > { %2773 = vrcp.f32 %v3374_v45  ;;  %v735_v52 = vmul.f32 %v734_v47, %v3219_v15  ;;  %v784_v23 = vmul.f32 %v783_v11, %v3248_v2  ;;  %v821_v3 = vadd.f32 0.112945676, %v820_v31 }
 0x105   : > { %v857_v16 = vadd.f32 0.001143296, %v856_v29  ;;  %v3395_v35 = vmul.f32 %v774_v33, %v3239_v24  ;;  %v3397_v41 = vadd.f32 1.1283791, %v813_v26  ;;  %1040 = vmatmul.f32.gmra.mxu1 %v981_v0  ;;  %v715_v38 = vand.u32 2147483647, %v3372_v44 }
 0x106   : > { %v896_v4 = vmul.f32 3.8918573e-05, %v3337_v36  ;;  %v3401_v9 = vadd.f32 0.18741608, %v851_v57  ;;  %v3403_v21 = vadd.f32 1.0, %v784_v23  ;;  %v822_v15 = vmul.f32 %v821_v3, %v3269_v43 }
 0x107   : > { %v2772_v7 = vpop.eup %2771  ;;  %v858_v2 = vmul.f32 %v857_v16, %v3297_v58  ;;  %v889_v24 = vmul.f32 %v888_v63, %v3337_v36  ;;  %v927_v12 = vmul.f32 %v926_v1, %v3363_v13  ;;  %vm711_vm10 = vweird.f32 %v3372_v44 }
 0x108   : > { %v707_v54 = vmul.f32 %v2772_v7, %v3372_v44  ;;  %v897_v55 = vadd.f32 0.001143296, %v896_v4  ;;  %v717_v61 = vand.u32 2147483648, %v3372_v44  ;;  %2775 = vrcp.f32 %v3403_v21 }
 0x109   : > { %vm3414_vm11 = vcmp.eq.f32.partialorder %v715_v38, 8.507059e+37  ;;  %v755_v17 = vand.u32 2147483647, %v3374_v45  ;;  %v936_v25 = vmul.f32 3.8918573e-05, %v3363_v13  ;;  %vm712_vm12 = vweird.f32 %v2772_v7 }
 0x10a   : > { %v2774_v10 = vpop.eup %2773  ;;  %v708_v18 = vsub.f32 1.0, %v707_v54  ;;  %v823_v20 = vadd.f32 0.4994258, %v822_v15  ;;  %v859_v37 = vadd.f32 0.014752088, %v858_v2  ;;  %v898_v62 = vmul.f32 %v897_v55, %v3337_v36  ;;  %vm713_vm15 = vmor %vm711_vm10, %vm712_vm12 }
 0x10b   : > { %v747_v50 = vmul.f32 %v2774_v10, %v3374_v45  ;;  %vm752_vm13 = vweird.f32 %v2774_v10  ;;  %v757_v22 = vand.u32 2147483648, %v3374_v45  ;;  %v718_v49 = vor.u32 1.1754944e-38, %v717_v61 }
 0x10c   : > { %v709_v40 = vmul.f32 %v2772_v7, %v708_v18  ;;  %v824_v42 = vmul.f32 %v823_v20, %v3269_v43  ;;  %v860_v47 = vmul.f32 %v859_v37, %v3297_v58  ;;  %v899_v46 = vadd.f32 0.014752088, %v898_v62 }
 0x10d   : > { %v748_v8 = vsub.f32 1.0, %v747_v50  ;;  %vm751_vm14 = vweird.f32 %v3374_v45  ;;  %v937_v11 = vadd.f32 0.001143296, %v936_v25  ;;  %v758_v43 = vor.u32 1.1754944e-38, %v757_v22 }
 0x10e   : > { %v710_v48 = vadd.f32 %v2772_v7, %v709_v40  ;;  %v2776_v31 = vpop.eup %2775  ;;  %v3427_v33 = vadd.f32 1.0, %v824_v42  ;;  %v861_v26 = vadd.f32 0.112945676, %v860_v47  ;;  %v900_v53 = vmul.f32 %v899_v46, %v3337_v36  ;;  %vm753_vm1 = vmor %vm751_vm14, %vm752_vm13 }
 0x10f   : > { %v749_v27 = vmul.f32 %v2774_v10, %v748_v8  ;;  %v787_v63 = vmul.f32 %v2776_v31, %v3403_v21  ;;  %v938_v0 = vmul.f32 %v937_v11, %v3363_v13  ;;  %vm756_vm2 = vcmp.eq.f32.partialorder %v755_v17, 8.507059e+37 }
 0x110   : > { %v714_v57 = vsel %vm713_vm15, %v2772_v7, %v710_v48  ;;  %2777 = vrcp.f32 %v3427_v33  ;;  %v795_v16 = vand.u32 2147483647, %v3403_v21  ;;  %v797_v4 = vand.u32 2147483648, %v3403_v21 }
 0x111   : > { %v750_v29 = vadd.f32 %v2774_v10, %v749_v27  ;;  %v719_v45 = vsel %vm3414_vm11, %v718_v49, %v714_v57  ;;  %v788_v3 = vsub.f32 1.0, %v787_v63  ;;  %v862_v7 = vmul.f32 %v861_v26, %v3297_v58 }
 0x112   : > { %v720_v44 = vmul.f32 %v719_v45, %v695_v59  ;;  %v901_v15 = vadd.f32 0.112945676, %v900_v53  ;;  %vm792_vm3 = vweird.f32 %v2776_v31  ;;  %v939_v55 = vadd.f32 0.014752088, %v938_v0 }
 0x113   : > { %v754_v1 = vsel %vm753_vm1, %v2774_v10, %v750_v29  ;;  %v789_v54 = vmul.f32 %v2776_v31, %v788_v3  ;;  %v890_v61 = vadd.f32 0.05243302, %v889_v24  ;;  %vm791_vm4 = vweird.f32 %v3403_v21 }
 0x114   : > { %v759_v23 = vsel %vm756_vm2, %v758_v43, %v754_v1  ;;  %v2588_v2 = vclamps-f32 %v720_v44, 1.0  ;;  %v863_v10 = vadd.f32 0.4994258, %v862_v7  ;;  %v902_v59 = vmul.f32 %v901_v15, %v3337_v36  ;;  %vm793_vm5 = vmor %vm791_vm4, %vm792_vm3 }
 0x115   : > { %v760_v38 = vmul.f32 %v759_v23, %v735_v52  ;;  %v790_v51 = vadd.f32 %v2776_v31, %v789_v54  ;;  %v940_v52 = vmul.f32 %v939_v55, %v3363_v13  ;;  %v928_v25 = vadd.f32 0.0036580483, %v927_v12 }
 0x116   : > { %v969_v50 = vadd.f32 1.0, %v2588_v2  ;;  %v2778_v17 = vpop.eup %2777  ;;  %v798_v8 = vor.u32 1.1754944e-38, %v797_v4  ;;  %v864_v20 = vmul.f32 %v863_v10, %v3297_v58  ;;  %v903_v37 = vadd.f32 0.4994258, %v902_v59 }
 0x117   : > { %v2589_v18 = vclamps-f32 %v760_v38, 1.0  ;;  %v794_v24 = vsel %vm793_vm5, %v2776_v31, %v790_v51  ;;  %vm796_vm6 = vcmp.eq.f32.partialorder %v795_v16, 8.507059e+37  ;;  %v827_v21 = vmul.f32 %v2778_v17, %v3427_v33 }
 0x118   : > { %v982_v62 = vmul.f32 %v969_v50, %v3384_v32  ;;  %v891_v40 = vmul.f32 %v890_v61, %v3337_v36  ;;  %v799_v22 = vsel %vm796_vm6, %v798_v8, %v794_v24  ;;  %v3446_v27 = vadd.f32 1.0, %v864_v20 }
 0x119   : > { %v904_v42 = vmul.f32 %v903_v37, %v3337_v36  ;;  %v970_v12 = vadd.f32 1.0, %v2589_v18  ;;  %v800_v47 = vmul.f32 %v799_v22, %v3395_v35  ;;  %v828_v46 = vsub.f32 1.0, %v827_v21 }
 0x11a   : > { %1043 = vmatmul.f32.gmra.mxu1 %v982_v62  ;;  %v941_v48 = vadd.f32 0.112945676, %v940_v52  ;;  %v929_v49 = vmul.f32 %v928_v25, %v3363_v13  ;;  %v835_v32 = vand.u32 2147483647, %v3427_v33  ;;  %v837_v11 = vand.u32 2147483648, %v3427_v33 }
 0x11b   : > { %2779 = vrcp.f32 %v3446_v27  ;;  %v829_v31 = vmul.f32 %v2778_v17, %v828_v46  ;;  %vm832_vm7 = vweird.f32 %v2778_v17  ;;  %v3454_v29 = vadd.f32 1.0, %v904_v42 }
 0x11c   : > { %v942_v26 = vmul.f32 %v941_v48, %v3363_v13  ;;  %v892_v53 = vadd.f32 0.18741608, %v891_v40  ;;  %vm831_vm8 = vweird.f32 %v3427_v33  ;;  %v983_v35 = vmul.f32 %v970_v12, %v3387_v30 }
 0x11d   : > { %v2590_v57 = vclamps-f32 %v800_v47, 1.0  ;;  %v830_v43 = vadd.f32 %v2778_v17, %v829_v31  ;;  %2781 = vrcp.f32 %v3454_v29  ;;  %v930_v63 = vadd.f32 0.05243302, %v929_v49  ;;  %vm833_vm9 = vmor %vm831_vm8, %vm832_vm7 }
 0x11e   : > { %v838_v0 = vor.u32 1.1754944e-38, %v837_v11  ;;  %v943_v45 = vadd.f32 0.4994258, %v942_v26  ;;  %v815_v1 = vmul.f32 %v3397_v41, %v3262_v34  ;;  %v853_v44 = vmul.f32 %v3401_v9, %v3297_v58 }
 0x11f   : > { %v834_v23 = vsel %vm833_vm9, %v2778_v17, %v830_v43  ;;  %vm836_vm10 = vcmp.eq.f32.partialorder %v835_v32, 8.507059e+37  ;;  %v971_v16 = vadd.f32 1.0, %v2590_v57  ;;  %v425_v7 = vmul.f32 0.5, %v3232_v39 }
 0x120   : > { %v839_v33 = vsel %vm836_vm10, %v838_v0, %v834_v23  ;;  %v944_v30 = vmul.f32 %v943_v45, %v3363_v13  ;;  %v893_v15 = vmul.f32 %v892_v53, %v3337_v36  ;;  %v931_v34 = vmul.f32 %v930_v63, %v3363_v13 }
 0x121   : > { %v2780_v3 = vpop.eup %2779  ;;  %v840_v38 = vmul.f32 %v839_v33, %v815_v1  ;;  %v426_v9 = vmul.f32 0.5, %v3255_v14  ;;  %v854_v2 = vadd.f32 1.1283791, %v853_v44  ;;  %v875_v61 = vand.u32 2147483647, %v3446_v27 }
 0x122   : > { %1046 = vmatmul.f32.gmra.mxu1 %v983_v35  ;;  %v867_v4 = vmul.f32 %v2780_v3, %v3446_v27  ;;  %v3469_v41 = vadd.f32 1.0, %v944_v30  ;;  %v877_v10 = vand.u32 2147483648, %v3446_v27  ;;  %v984_v39 = vmul.f32 %v971_v16, %v425_v7 }
 0x123   : > { %v2782_v58 = vpop.eup %2781  ;;  %v2591_v54 = vclamps-f32 %v840_v38, 1.0  ;;  %vm872_vm11 = vweird.f32 %v2780_v3  ;;  %v894_v18 = vadd.f32 1.1283791, %v893_v15  ;;  %v932_v51 = vadd.f32 0.18741608, %v931_v34 }
 0x124   : > { %v868_v55 = vsub.f32 1.0, %v867_v4  ;;  %v907_v59 = vmul.f32 %v2782_v58, %v3454_v29  ;;  %2783 = vrcp.f32 %v3469_v41  ;;  %vm871_vm12 = vweird.f32 %v3446_v27  ;;  %v3494_v38 = vld [vmem:[%s4353_s4] ss:$0 sm:$0xff] }
 0x125   : > { %v972_v36 = vadd.f32 1.0, %v2591_v54  ;;  %v917_v25 = vand.u32 2147483648, %v3454_v29  ;;  %vm873_vm13 = vmor %vm871_vm12, %vm872_vm11  ;;  %v878_v8 = vor.u32 1.1754944e-38, %v877_v10  ;;  %vm912_vm14 = vweird.f32 %v2782_v58 }
 0x126   : > { %v869_v50 = vmul.f32 %v2780_v3, %v868_v55  ;;  %v908_v52 = vsub.f32 1.0, %v907_v59  ;;  %v915_v37 = vand.u32 2147483647, %v3454_v29  ;;  %v855_v62 = vmul.f32 %v854_v2, %v3289_v6 }
 0x127   : > { %v985_v17 = vmul.f32 %v972_v36, %v426_v9  ;;  %vm876_vm15 = vcmp.eq.f32.partialorder %v875_v61, 8.507059e+37  ;;  %v933_v40 = vmul.f32 %v932_v51, %v3363_v13  ;;  %vm911_vm1 = vweird.f32 %v3454_v29 }
 0x128   : > { %v870_v14 = vadd.f32 %v2780_v3, %v869_v50  ;;  %v909_v20 = vmul.f32 %v2782_v58, %v908_v52  ;;  %vm913_vm2 = vmor %vm911_vm1, %vm912_vm14  ;;  %v918_v12 = vor.u32 1.1754944e-38, %v917_v25  ;;  %v895_v46 = vmul.f32 %v894_v18, %v3313_v60 }
 0x129   : > { %1052 = vmatmul.f32.vlgmr.msra.gmra.mxu3 %v985_v17  ;;  %vm916_vm3 = vcmp.eq.f32.partialorder %v915_v37, 8.507059e+37  ;;  %v427_v11 = vmul.f32 0.5, %v3278_v56  ;;  %v934_v31 = vadd.f32 1.1283791, %v933_v40  ;;  %v957_v26 = vand.u32 2147483648, %v3469_v41 }
 0x12a   : > { %1049 = vmatmul.f32.gmra.mxu1 %v984_v39  ;;  %v874_v24 = vsel %vm873_vm13, %v2780_v3, %v870_v14  ;;  %v2784_v21 = vpop.eup %2783  ;;  %v910_v42 = vadd.f32 %v2782_v58, %v909_v20  ;;  %v955_v35 = vand.u32 2147483647, %v3469_v41  ;;  %vm951_vm5 = vweird.f32 %v3469_v41  ;;  %v1652_v39 = vld [vmem:[%s4354_s5 + $0x78] sm:$0xff] }
 0x12b   : > { %v879_v22 = vsel %vm876_vm15, %v878_v8, %v874_v24  ;;  %v947_v47 = vmul.f32 %v2784_v21, %v3469_v41  ;;  %vm952_vm4 = vweird.f32 %v2784_v21  ;;  %v958_v60 = vor.u32 1.1754944e-38, %v957_v26  ;;  %1657 = vmatpush.msra.mxu2 %v1652_v39  ;;  %2650 = vmatpush.msrb.mxu3 %v1652_v39 }
 0x12c   : > { %v880_v27 = vmul.f32 %v879_v22, %v855_v62  ;;  %v914_v48 = vsel %vm913_vm2, %v2782_v58, %v910_v42  ;;  %vm953_vm6 = vmor %vm951_vm5, %vm952_vm4  ;;  %v935_v0 = vmul.f32 %v934_v31, %v3342_v5  ;;  %vm956_vm7 = vcmp.eq.f32.partialorder %v955_v35, 8.507059e+37 }
 0x12d   : > { %v919_v49 = vsel %vm916_vm3, %v918_v12, %v914_v48  ;;  %v948_v32 = vsub.f32 1.0, %v947_v47  ;;  %v428_v44 = vmul.f32 0.5, %v3304_v28  ;;  %v429_v16 = vmul.f32 0.5, %v3327_v19 }
 0x12e   : > { %v2592_v6 = vclamps-f32 %v880_v27, 1.0  ;;  %v920_v13 = vmul.f32 %v919_v49, %v895_v46  ;;  %v1651_v49 = vld [vmem:[%s4354_s5 + $0x70] sm:$0xff] }
 0x12f   : > { %v949_v29 = vmul.f32 %v2784_v21, %v948_v32  ;;  %1658 = vmatpush.msra.mxu2 %v1651_v49  ;;  %2651 = vmatpush.msrb.mxu3 %v1651_v49 }
 0x130   : > { %v973_v53 = vadd.f32 1.0, %v2592_v6  ;;  %v2593_v57 = vclamps-f32 %v920_v13, 1.0 }
 0x131   : > { %v950_v63 = vadd.f32 %v2784_v21, %v949_v29 }
 0x132   : > { %v986_v43 = vmul.f32 %v973_v53, %v427_v11  ;;  %v974_v56 = vadd.f32 1.0, %v2593_v57  ;;  %v1650_v53 = vld [vmem:[%s4354_s5 + $0x68] sm:$0xff] }
 0x133   : > { %v954_v45 = vsel %vm953_vm6, %v2784_v21, %v950_v63  ;;  %1659 = vmatpush.msra.mxu2 %v1650_v53  ;;  %2652 = vmatpush.msrb.mxu3 %v1650_v53 }
 0x134   : > { %1055 = vmatmul.f32.gmra.mxu3 %v986_v43  ;;  %v959_v1 = vsel %vm956_vm7, %v958_v60, %v954_v45  ;;  %v987_v3 = vmul.f32 %v974_v56, %v428_v44  ;;  %v1649_v43 = vld [vmem:[%s4354_s5 + $0x60] sm:$0xff]  ;;  %v1648_v56 = vld [vmem:[%s4354_s5 + $0x58] sm:$0xff] }
 0x135   : > { %v960_v23 = vmul.f32 %v959_v1, %v935_v0  ;;  %1660 = vmatpush.msra.mxu2 %v1649_v43  ;;  %2653 = vmatpush.msrb.mxu3 %v1649_v43  ;;  %v1640_v43 = vld [vmem:[%s4354_s5 + $0x18] sm:$0xff] }
 0x137   : > { %v2594_v33 = vclamps-f32 %v960_v23, 1.0  ;;  %1661 = vmatpush.msra.mxu2 %v1648_v56  ;;  %2654 = vmatpush.msrb.mxu3 %v1648_v56  ;;  %v1647_v23 = vld [vmem:[%s4354_s5 + $0x50] sm:$0xff] }
 0x139   : > { %v975_v30 = vadd.f32 1.0, %v2594_v33  ;;  %1662 = vmatpush.msra.mxu2 %v1647_v23  ;;  %2655 = vmatpush.msrb.mxu3 %v1647_v23  ;;  %v1639_v23 = vld [vmem:[%s4354_s5 + $0x10] sm:$0xff] }
 0x13b   : > { %v988_v5 = vmul.f32 %v975_v30, %v429_v16 }
 0x13c   : > { %1058 = vmatmul.f32.gmra.mxu3 %v987_v3 }
 0x144   : > { %1061 = vmatmul.f32.gmra.mxu3 %v988_v5 }
 0x148   : > { %v1026_v4 = vpop.f32.mrf.mxu1 }
 0x149   : > { %v3497_v7 = vadd.f32 %v3494_v38, %v1026_v4 }
 0x14b   : > { %v3500_v28 = vmul.f32 0.70710677, %v3497_v7 }
 0x14d   : > { %v1091_v15 = vmul.f32 %v3500_v28, %v3500_v28 }
 0x14f   : > { %v3504_v34 = vmin.f32 %v1091_v15, 16.0  ;;  %v1646_v15 = vld [vmem:[%s4354_s5 + $0x48] sm:$0xff] }
 0x150   : > { %1663 = vmatpush.msra.mxu2 %v1646_v15  ;;  %2656 = vmatpush.msrb.mxu3 %v1646_v15 }
 0x151   : > { %v1093_v19 = vmul.f32 2.1237322e-06, %v3504_v34  ;;  %v1029_v41 = vpop.f32.mrf.mxu1  ;;  %v1104_v55 = vmul.f32 3.8918573e-05, %v3504_v34 }
 0x152   : > { %v3508_v58 = vadd.f32 %v3494_v38, %v1029_v41 }
 0x153   : > { %v1094_v9 = vadd.f32 0.00028619796, %v1093_v19  ;;  %v1105_v59 = vadd.f32 0.001143296, %v1104_v55 }
 0x154   : > { %v3511_v2 = vmul.f32 0.70710677, %v3508_v58 }
 0x155   : > { %v1095_v61 = vmul.f32 %v1094_v9, %v3504_v34  ;;  %v1106_v50 = vmul.f32 %v1105_v59, %v3504_v34 }
 0x156   : > { %v1131_v54 = vmul.f32 %v3511_v2, %v3511_v2 }
 0x157   : > { %v1096_v18 = vadd.f32 0.0036580483, %v1095_v61  ;;  %v1107_v17 = vadd.f32 0.014752088, %v1106_v50 }
 0x158   : > { %v3517_v10 = vmin.f32 %v1131_v54, 16.0 }
 0x159   : > { %v1032_v52 = vpop.f32.mrf.mxu1  ;;  %v1108_v25 = vmul.f32 %v1107_v17, %v3504_v34  ;;  %v1097_v20 = vmul.f32 %v1096_v18, %v3504_v34 }
 0x15a   : > { %v1133_v36 = vmul.f32 2.1237322e-06, %v3517_v10  ;;  %v3525_v14 = vadd.f32 %v3494_v38, %v1032_v52  ;;  %v1144_v8 = vmul.f32 3.8918573e-05, %v3517_v10 }
 0x15b   : > { %v1109_v24 = vadd.f32 0.112945676, %v1108_v25  ;;  %v1098_v27 = vadd.f32 0.05243302, %v1097_v20 }
 0x15c   : > { %v1134_v51 = vadd.f32 0.00028619796, %v1133_v36  ;;  %v3531_v37 = vmul.f32 0.70710677, %v3525_v14  ;;  %v1145_v21 = vadd.f32 0.001143296, %v1144_v8 }
 0x15d   : > { %v1110_v22 = vmul.f32 %v1109_v24, %v3504_v34  ;;  %v1099_v13 = vmul.f32 %v1098_v27, %v3504_v34 }
 0x15e   : > { %v1135_v62 = vmul.f32 %v1134_v51, %v3517_v10  ;;  %v1171_v40 = vmul.f32 %v3531_v37, %v3531_v37  ;;  %v1146_v42 = vmul.f32 %v1145_v21, %v3517_v10  ;;  %v1644_v51 = vld [vmem:[%s4354_s5 + $0x38] sm:$0xff] }
 0x15f   : > { %v1111_v46 = vadd.f32 0.4994258, %v1110_v22  ;;  %v1100_v0 = vadd.f32 0.18741608, %v1099_v13 }
 0x160   : > { %v3538_v12 = vmin.f32 %v1171_v40, 16.0  ;;  %v1136_v47 = vadd.f32 0.0036580483, %v1135_v62  ;;  %v1147_v48 = vadd.f32 0.014752088, %v1146_v42  ;;  %v1643_v62 = vld [vmem:[%s4354_s5 + $0x30] sm:$0xff] }
 0x161   : > { %v1112_v32 = vmul.f32 %v1111_v46, %v3504_v34  ;;  %v1101_v5 = vmul.f32 %v1100_v0, %v3504_v34  ;;  %v1645_v34 = vld [vmem:[%s4354_s5 + $0x40] sm:$0xff]  ;;  %v1642_v42 = vld [vmem:[%s4354_s5 + $0x28] sm:$0xff] }
 0x162   : > { %v1173_v6 = vmul.f32 2.1237322e-06, %v3538_v12  ;;  %v1148_v11 = vmul.f32 %v1147_v48, %v3517_v10  ;;  %v1184_v31 = vmul.f32 3.8918573e-05, %v3538_v12  ;;  %v1137_v29 = vmul.f32 %v1136_v47, %v3517_v10  ;;  %1664 = vmatpush.msra.mxu2 %v1645_v34  ;;  %2657 = vmatpush.msrb.mxu3 %v1645_v34 }
 0x163   : > { %v3552_v35 = vadd.f32 1.0, %v1112_v32  ;;  %v1102_v50 = vadd.f32 1.1283791, %v1101_v5 }
 0x164   : > { %v1174_v26 = vadd.f32 0.00028619796, %v1173_v6  ;;  %v1149_v57 = vadd.f32 0.112945676, %v1148_v11  ;;  %v1185_v63 = vadd.f32 0.001143296, %v1184_v31  ;;  %1665 = vmatpush.msra.mxu2 %v1644_v51  ;;  %2658 = vmatpush.msrb.mxu3 %v1644_v51 }
 0x165   : > { %2785 = vrcp.f32 %v3552_v35  ;;  %v1138_v44 = vadd.f32 0.05243302, %v1137_v29  ;;  %v1123_v25 = vand.u32 2147483647, %v3552_v35  ;;  %v1125_v8 = vand.u32 2147483648, %v3552_v35  ;;  %v1641_v11 = vld [vmem:[%s4354_s5 + $0x20] sm:$0xff] }
 0x166   : > { %v1175_v60 = vmul.f32 %v1174_v26, %v3538_v12  ;;  %v1150_v45 = vmul.f32 %v1149_v57, %v3517_v10  ;;  %v1186_v1 = vmul.f32 %v1185_v63, %v3538_v12  ;;  %1666 = vmatpush.msra.mxu2 %v1643_v62  ;;  %2659 = vmatpush.msrb.mxu3 %v1643_v62  ;;  %vm1119_vm9 = vweird.f32 %v3552_v35 }
 0x167   : > { %v1139_v54 = vmul.f32 %v1138_v44, %v3517_v10  ;;  %v1103_v47 = vmul.f32 %v1102_v50, %v3500_v28  ;;  %v1126_v46 = vor.u32 1.1754944e-38, %v1125_v8  ;;  %vm1124_vm11 = vcmp.eq.f32.partialorder %v1123_v25, 8.507059e+37 }
 0x168   : > { %v1151_v3 = vadd.f32 0.4994258, %v1150_v45  ;;  %v1187_v33 = vadd.f32 0.014752088, %v1186_v1  ;;  %v1176_v30 = vadd.f32 0.0036580483, %v1175_v60  ;;  %1667 = vmatpush.msra.mxu2 %v1642_v42  ;;  %2660 = vmatpush.msrb.mxu3 %v1642_v42 }
 0x169   : > { %v1035_v16 = vpop.f32.mrf.mxu1  ;;  %v1140_v17 = vadd.f32 0.18741608, %v1139_v54  ;;  %v1065_v45 = vmul.f32 0.5, %v3497_v7  ;;  %v1638_v7 = vld [vmem:[%s4354_s5 + $0x8] sm:$0xff] }
 0x16a   : > { %v3569_v4 = vadd.f32 %v3494_v38, %v1035_v16  ;;  %v1152_v19 = vmul.f32 %v1151_v3, %v3517_v10  ;;  %v1188_v41 = vmul.f32 %v1187_v33, %v3538_v12  ;;  %v1177_v59 = vmul.f32 %v1176_v30, %v3538_v12  ;;  %1668 = vmatpush.msra.mxu2 %v1641_v11 }
 0x16b   : > { %v2786_v9 = vpop.eup %2785  ;;  %v1141_v49 = vmul.f32 %v1140_v17, %v3517_v10  ;;  %2661 = vmatpush.msrb.mxu3 %v1641_v11 }
 0x16c   : > { %v3578_v55 = vmul.f32 0.70710677, %v3569_v4  ;;  %v1115_v61 = vmul.f32 %v2786_v9, %v3552_v35  ;;  %v3585_v39 = vadd.f32 1.0, %v1152_v19  ;;  %v1189_v36 = vadd.f32 0.112945676, %v1188_v41  ;;  %1669 = vmatpush.msra.mxu2 %v1640_v43 }
 0x16d   : > { %vm1120_vm8 = vweird.f32 %v2786_v9  ;;  %v1178_v40 = vadd.f32 0.05243302, %v1177_v59  ;;  %2662 = vmatpush.msrb.mxu3 %v1640_v43  ;;  %v1142_v1 = vadd.f32 1.1283791, %v1141_v49  ;;  %v1637_v59 = vld [vmem:[%s4354_s5] sm:$0xff] }
 0x16e   : > { %v1211_v18 = vmul.f32 %v3578_v55, %v3578_v55  ;;  %v1116_v52 = vsub.f32 1.0, %v1115_v61  ;;  %2787 = vrcp.f32 %v3585_v39  ;;  %v1190_v21 = vmul.f32 %v1189_v36, %v3538_v12  ;;  %vm1121_vm10 = vmor %vm1119_vm9, %vm1120_vm8  ;;  %1670 = vmatpush.msra.mxu2 %v1639_v23 }
 0x16f   : > { %v1179_v26 = vmul.f32 %v1178_v40, %v3538_v12  ;;  %2663 = vmatpush.msrb.mxu3 %v1639_v23  ;;  %v1163_v15 = vand.u32 2147483647, %v3585_v39  ;;  %v1165_v19 = vand.u32 2147483648, %v3585_v39  ;;  %v1143_v34 = vmul.f32 %v1142_v1, %v3511_v2 }
 0x170   : > { %v3595_v20 = vmin.f32 %v1211_v18, 16.0  ;;  %v1117_v24 = vmul.f32 %v2786_v9, %v1116_v52  ;;  %v1191_v48 = vadd.f32 0.4994258, %v1190_v21  ;;  %1671 = vmatpush.msra.mxu2 %v1638_v7  ;;  %vm1159_vm13 = vweird.f32 %v3585_v39 }
 0x171   : > { %v1180_v3 = vadd.f32 0.18741608, %v1179_v26  ;;  %2664 = vmatpush.msrb.mxu3 %v1638_v7  ;;  %v1166_v2 = vor.u32 1.1754944e-38, %v1165_v19  ;;  %vm1164_vm15 = vcmp.eq.f32.partialorder %v1163_v15, 8.507059e+37 }
 0x172   : > { %v1213_v22 = vmul.f32 2.1237322e-06, %v3595_v20  ;;  %v1118_v27 = vadd.f32 %v2786_v9, %v1117_v24  ;;  %v1224_v6 = vmul.f32 3.8918573e-05, %v3595_v20  ;;  %v1192_v29 = vmul.f32 %v1191_v48, %v3538_v12  ;;  %1672 = vmatpush.msra.mxu2 %v1637_v59 }
 0x173   : > { %2665 = vmatpush.msrb.mxu3 %v1637_v59  ;;  %v1181_v8 = vmul.f32 %v1180_v3, %v3538_v12 }
 0x174   : > { %v1214_v32 = vadd.f32 0.00028619796, %v1213_v22  ;;  %v1122_v31 = vsel %vm1121_vm10, %v2786_v9, %v1118_v27  ;;  %v2788_v13 = vpop.eup %2787  ;;  %v1225_v35 = vadd.f32 0.001143296, %v1224_v6  ;;  %v3622_v0 = vadd.f32 1.0, %v1192_v29 }
 0x175   : > { %v1127_v53 = vsel %vm1124_vm11, %v1126_v46, %v1122_v31  ;;  %v1155_v60 = vmul.f32 %v2788_v13, %v3585_v39  ;;  %vm1160_vm12 = vweird.f32 %v2788_v13  ;;  %v1182_v49 = vadd.f32 1.1283791, %v1181_v8 }
 0x176   : > { %v1038_v28 = vpop.f32.mrf.mxu1  ;;  %v1215_v57 = vmul.f32 %v1214_v32, %v3595_v20  ;;  %v1128_v63 = vmul.f32 %v1127_v53, %v1103_v47  ;;  %v1226_v56 = vmul.f32 %v1225_v35, %v3595_v20  ;;  %2789 = vrcp.f32 %v3622_v0  ;;  %vm1161_vm14 = vmor %vm1159_vm13, %vm1160_vm12 }
 0x177   : > { %v3616_v10 = vadd.f32 %v3494_v38, %v1038_v28  ;;  %v1156_v30 = vsub.f32 1.0, %v1155_v60  ;;  %v1066_v47 = vmul.f32 0.5, %v3508_v58  ;;  %v1203_v28 = vand.u32 2147483647, %v3622_v0 }
 0x178   : > { %v2595_v33 = vclamps-f32 %v1128_v63, 1.0  ;;  %v1216_v16 = vadd.f32 0.0036580483, %v1215_v57  ;;  %v1227_v54 = vadd.f32 0.014752088, %v1226_v56  ;;  %v1205_v53 = vand.u32 2147483648, %v3622_v0 }
 0x179   : > { %v3627_v44 = vmul.f32 0.70710677, %v3616_v10  ;;  %v1157_v9 = vmul.f32 %v2788_v13, %v1156_v30  ;;  %vm1199_vm2 = vweird.f32 %v3622_v0  ;;  %vm1204_vm4 = vcmp.eq.f32.partialorder %v1203_v28, 8.507059e+37 }
 0x17a   : > { %v1611_v41 = vadd.f32 1.0, %v2595_v33  ;;  %v1228_v18 = vmul.f32 %v1227_v54, %v3595_v20  ;;  %v1217_v51 = vmul.f32 %v1216_v16, %v3595_v20  ;;  %v1206_v3 = vor.u32 1.1754944e-38, %v1205_v53 }
 0x17b   : > { %v1251_v5 = vmul.f32 %v3627_v44, %v3627_v44  ;;  %v1158_v50 = vadd.f32 %v2788_v13, %v1157_v9  ;;  %v1183_v33 = vmul.f32 %v1182_v49, %v3531_v37 }
 0x17c   : > { %v1624_v36 = vmul.f32 %v1611_v41, %v1065_v45  ;;  %v2790_v25 = vpop.eup %2789  ;;  %v1229_v24 = vadd.f32 0.112945676, %v1228_v18  ;;  %v1218_v46 = vadd.f32 0.05243302, %v1217_v51  ;;  %v1067_v18 = vmul.f32 0.5, %v3525_v14 }
 0x17d   : > { %v3641_v61 = vmin.f32 %v1251_v5, 16.0  ;;  %v1162_v62 = vsel %vm1161_vm14, %v2788_v13, %v1158_v50  ;;  %v1195_v40 = vmul.f32 %v2790_v25, %v3622_v0  ;;  %vm1200_vm1 = vweird.f32 %v2790_v25 }
 0x17e   : > { %1673 = vmatmul.f32.vlgmr.msra.gmra.mxu2 %v1624_v36  ;;  %v1167_v39 = vsel %vm1164_vm15, %v1166_v2, %v1162_v62  ;;  %v1230_v42 = vmul.f32 %v1229_v24, %v3595_v20  ;;  %v1219_v57 = vmul.f32 %v1218_v46, %v3595_v20  ;;  %vm1201_vm3 = vmor %vm1199_vm2, %vm1200_vm1 }
 0x17f   : > { %v1253_v52 = vmul.f32 2.1237322e-06, %v3641_v61  ;;  %v1264_v17 = vmul.f32 3.8918573e-05, %v3641_v61  ;;  %v1168_v22 = vmul.f32 %v1167_v39, %v1143_v34  ;;  %v1196_v6 = vsub.f32 1.0, %v1195_v40 }
 0x180   : > { %v1231_v11 = vadd.f32 0.4994258, %v1230_v42  ;;  %v1220_v16 = vadd.f32 0.18741608, %v1219_v57 }
 0x181   : > { %v1254_v21 = vadd.f32 0.00028619796, %v1253_v52  ;;  %v1265_v27 = vadd.f32 0.001143296, %v1264_v17  ;;  %v2596_v32 = vclamps-f32 %v1168_v22, 1.0  ;;  %v1197_v26 = vmul.f32 %v2790_v25, %v1196_v6 }
 0x182   : > { %v1041_v12 = vpop.f32.mrf.mxu1  ;;  %v1232_v58 = vmul.f32 %v1231_v11, %v3595_v20  ;;  %v1221_v37 = vmul.f32 %v1220_v16, %v3595_v20 }
 0x183   : > { %v1255_v48 = vmul.f32 %v1254_v21, %v3641_v61  ;;  %v1266_v31 = vmul.f32 %v1265_v27, %v3641_v61  ;;  %v3658_v13 = vadd.f32 %v3494_v38, %v1041_v12  ;;  %v1612_v29 = vadd.f32 1.0, %v2596_v32 }
 0x184   : > { %v1198_v56 = vadd.f32 %v2790_v25, %v1197_v26  ;;  %v1233_v45 = vadd.f32 1.0, %v1232_v58  ;;  %v1222_v21 = vadd.f32 1.1283791, %v1221_v37 }
 0x185   : > { %v1267_v35 = vadd.f32 0.014752088, %v1266_v31  ;;  %v1256_v43 = vadd.f32 0.0036580483, %v1255_v48  ;;  %v3665_v63 = vmul.f32 0.70710677, %v3658_v13  ;;  %v1625_v60 = vmul.f32 %v1612_v29, %v1066_v47 }
 0x186   : > { %v1202_v30 = vsel %vm1201_vm3, %v2790_v25, %v1198_v56  ;;  %2791 = vrcp.f32 %v1233_v45  ;;  %v1243_v40 = vand.u32 2147483647, %v1233_v45  ;;  %v1245_v22 = vand.u32 2147483648, %v1233_v45 }
 0x187   : > { %v1268_v1 = vmul.f32 %v1267_v35, %v3641_v61  ;;  %v1291_v23 = vmul.f32 %v3665_v63, %v3665_v63  ;;  %1676 = vmatmul.f32.gmra.mxu2 %v1625_v60  ;;  %v1257_v5 = vmul.f32 %v1256_v43, %v3641_v61  ;;  %v1207_v7 = vsel %vm1204_vm4, %v1206_v3, %v1202_v30 }
 0x188   : > { %v1208_v15 = vmul.f32 %v1207_v7, %v1183_v33  ;;  %vm1239_vm6 = vweird.f32 %v1233_v45  ;;  %v1223_v6 = vmul.f32 %v1222_v21, %v3578_v55  ;;  %vm1244_vm8 = vcmp.eq.f32.partialorder %v1243_v40, 8.507059e+37 }
 0x189   : > { %v3673_v0 = vmin.f32 %v1291_v23, 16.0  ;;  %v1269_v19 = vadd.f32 0.112945676, %v1268_v1  ;;  %v1258_v59 = vadd.f32 0.05243302, %v1257_v5  ;;  %v1246_v32 = vor.u32 1.1754944e-38, %v1245_v22 }
 0x18a   : > { %v2597_v9 = vclamps-f32 %v1208_v15, 1.0  ;;  %v1068_v23 = vmul.f32 0.5, %v3569_v4 }
 0x18b   : > { %v1293_v41 = vmul.f32 2.1237322e-06, %v3673_v0  ;;  %v1270_v54 = vmul.f32 %v1269_v19, %v3641_v61  ;;  %v1304_v34 = vmul.f32 3.8918573e-05, %v3673_v0  ;;  %v1259_v20 = vmul.f32 %v1258_v59, %v3641_v61 }
 0x18c   : > { %v2792_v50 = vpop.eup %2791  ;;  %v1613_v51 = vadd.f32 1.0, %v2597_v9 }
 0x18d   : > { %v1294_v36 = vadd.f32 0.00028619796, %v1293_v41  ;;  %v1271_v52 = vadd.f32 0.4994258, %v1270_v54  ;;  %v1305_v2 = vadd.f32 0.001143296, %v1304_v34  ;;  %v1235_v25 = vmul.f32 %v2792_v50, %v1233_v45 }
 0x18e   : > { %v1626_v8 = vmul.f32 %v1613_v51, %v1067_v18  ;;  %vm1240_vm5 = vweird.f32 %v2792_v50  ;;  %v1260_v49 = vadd.f32 0.18741608, %v1259_v20 }
 0x18f   : > { %v1295_v17 = vmul.f32 %v1294_v36, %v3673_v0  ;;  %v1272_v62 = vmul.f32 %v1271_v52, %v3641_v61  ;;  %v1306_v24 = vmul.f32 %v1305_v2, %v3673_v0  ;;  %v1236_v39 = vsub.f32 1.0, %v1235_v25  ;;  %vm1241_vm7 = vmor %vm1239_vm6, %vm1240_vm5 }
 0x190   : > { %1679 = vmatmul.f32.gmra.mxu2 %v1626_v8  ;;  %v1261_v55 = vmul.f32 %v1260_v49, %v3641_v61 }
 0x191   : > { %v1273_v42 = vadd.f32 1.0, %v1272_v62  ;;  %v1307_v14 = vadd.f32 0.014752088, %v1306_v24  ;;  %v1296_v27 = vadd.f32 0.0036580483, %v1295_v17  ;;  %v1237_v47 = vmul.f32 %v2792_v50, %v1236_v39 }
 0x192   : > { %v1262_v16 = vadd.f32 1.1283791, %v1261_v55 }
 0x193   : > { %2793 = vrcp.f32 %v1273_v42  ;;  %v1238_v46 = vadd.f32 %v2792_v50, %v1237_v47  ;;  %v1308_v48 = vmul.f32 %v1307_v14, %v3673_v0  ;;  %v1297_v11 = vmul.f32 %v1296_v27, %v3673_v0 }
 0x194   : > { %v1283_v7 = vand.u32 2147483647, %v1273_v42  ;;  %v1285_v15 = vand.u32 2147483648, %v1273_v42  ;;  %vm1279_vm10 = vweird.f32 %v1273_v42  ;;  %v1263_v2 = vmul.f32 %v1262_v16, %v3627_v44 }
 0x195   : > { %v1242_v26 = vsel %vm1241_vm7, %v2792_v50, %v1238_v46  ;;  %v1309_v28 = vadd.f32 0.112945676, %v1308_v48  ;;  %v1298_v43 = vadd.f32 0.05243302, %v1297_v11 }
 0x196   : > { %v1247_v53 = vsel %vm1244_vm8, %v1246_v32, %v1242_v26  ;;  %v1286_v51 = vor.u32 1.1754944e-38, %v1285_v15  ;;  %vm1284_vm12 = vcmp.eq.f32.partialorder %v1283_v7, 8.507059e+37 }
 0x197   : > { %v1044_v12 = vpop.f32.mrf.mxu1  ;;  %v1248_v58 = vmul.f32 %v1247_v53, %v1223_v6  ;;  %v1310_v57 = vmul.f32 %v1309_v28, %v3673_v0  ;;  %v1299_v19 = vmul.f32 %v1298_v43, %v3673_v0  ;;  %v1069_v6 = vmul.f32 0.5, %v3616_v10 }
 0x198   : > { %v3688_v31 = vadd.f32 %v3494_v38, %v1044_v12 }
 0x199   : > { %v2794_v35 = vpop.eup %2793  ;;  %v2598_v56 = vclamps-f32 %v1248_v58, 1.0  ;;  %v1311_v1 = vadd.f32 0.4994258, %v1310_v57  ;;  %v1300_v17 = vadd.f32 0.18741608, %v1299_v19 }
 0x19a   : > { %v3691_v29 = vmul.f32 0.70710677, %v3688_v31  ;;  %v1275_v45 = vmul.f32 %v2794_v35, %v1273_v42  ;;  %vm1280_vm9 = vweird.f32 %v2794_v35 }
 0x19b   : > { %v1614_v33 = vadd.f32 1.0, %v2598_v56  ;;  %v1312_v61 = vmul.f32 %v1311_v1, %v3673_v0  ;;  %vm1281_vm11 = vmor %vm1279_vm10, %vm1280_vm9  ;;  %v1301_v14 = vmul.f32 %v1300_v17, %v3673_v0 }
 0x19c   : > { %v1331_v60 = vmul.f32 %v3691_v29, %v3691_v29  ;;  %v1276_v30 = vsub.f32 1.0, %v1275_v45 }
 0x19d   : > { %v1627_v54 = vmul.f32 %v1614_v33, %v1068_v23  ;;  %v3706_v4 = vadd.f32 1.0, %v1312_v61  ;;  %v1302_v58 = vadd.f32 1.1283791, %v1301_v14 }
 0x19e   : > { %v3698_v3 = vmin.f32 %v1331_v60, 16.0  ;;  %v1277_v34 = vmul.f32 %v2794_v35, %v1276_v30 }
 0x19f   : > { %v1047_v5 = vpop.f32.mrf.mxu1  ;;  %1682 = vmatmul.f32.gmra.mxu2 %v1627_v54  ;;  %2795 = vrcp.f32 %v3706_v4  ;;  %v1323_v60 = vand.u32 2147483647, %v3706_v4  ;;  %v1325_v56 = vand.u32 2147483648, %v3706_v4  ;;  %vm1319_vm14 = vweird.f32 %v3706_v4 }
 0x1a0   : > { %v1333_v41 = vmul.f32 2.1237322e-06, %v3698_v3  ;;  %v3704_v9 = vadd.f32 %v3494_v38, %v1047_v5  ;;  %v1344_v37 = vmul.f32 3.8918573e-05, %v3698_v3  ;;  %v1278_v36 = vadd.f32 %v2794_v35, %v1277_v34 }
 0x1a1   : > { %v1303_v54 = vmul.f32 %v1302_v58, %v3665_v63  ;;  %vm1324_vm1 = vcmp.eq.f32.partialorder %v1323_v60, 8.507059e+37 }
 0x1a2   : > { %v3710_v59 = vmul.f32 0.70710677, %v3704_v9  ;;  %v1334_v50 = vadd.f32 0.00028619796, %v1333_v41  ;;  %v1345_v52 = vadd.f32 0.001143296, %v1344_v37  ;;  %v1282_v25 = vsel %vm1281_vm11, %v2794_v35, %v1278_v36 }
 0x1a3   : > { %v1287_v62 = vsel %vm1284_vm12, %v1286_v51, %v1282_v25  ;;  %v1326_v41 = vor.u32 1.1754944e-38, %v1325_v56 }
 0x1a4   : > { %v1371_v18 = vmul.f32 %v3710_v59, %v3710_v59  ;;  %v1288_v21 = vmul.f32 %v1287_v62, %v1263_v2  ;;  %v1346_v39 = vmul.f32 %v1345_v52, %v3698_v3  ;;  %v1335_v40 = vmul.f32 %v1334_v50, %v3698_v3 }
 0x1a5   : > { %v2796_v44 = vpop.eup %2795 }
 0x1a6   : > { %v3716_v8 = vmin.f32 %v1371_v18, 16.0  ;;  %v2599_v27 = vclamps-f32 %v1288_v21, 1.0  ;;  %v1347_v47 = vadd.f32 0.014752088, %v1346_v39  ;;  %v1315_v48 = vmul.f32 %v2796_v44, %v3706_v4 }
 0x1a7   : > { %v1050_v24 = vpop.f32.mrf.mxu1  ;;  %v1336_v11 = vadd.f32 0.0036580483, %v1335_v40  ;;  %vm1320_vm13 = vweird.f32 %v2796_v44 }
 0x1a8   : > { %v1373_v20 = vmul.f32 2.1237322e-06, %v3716_v8  ;;  %v3722_v22 = vadd.f32 %v3494_v38, %v1050_v24  ;;  %v1384_v42 = vmul.f32 3.8918573e-05, %v3716_v8  ;;  %v1615_v12 = vadd.f32 1.0, %v2599_v27  ;;  %vm1321_vm15 = vmor %vm1319_vm14, %vm1320_vm13 }
 0x1a9   : > { %v1348_v32 = vmul.f32 %v1347_v47, %v3698_v3  ;;  %v1316_v28 = vsub.f32 1.0, %v1315_v48  ;;  %v1337_v33 = vmul.f32 %v1336_v11, %v3698_v3 }
 0x1aa   : > { %v1374_v46 = vadd.f32 0.00028619796, %v1373_v20  ;;  %v3729_v49 = vmul.f32 0.70710677, %v3722_v22  ;;  %v1385_v53 = vadd.f32 0.001143296, %v1384_v42  ;;  %v1628_v55 = vmul.f32 %v1615_v12, %v1069_v6 }
 0x1ab   : > { %v1349_v57 = vadd.f32 0.112945676, %v1348_v32  ;;  %v1317_v43 = vmul.f32 %v2796_v44, %v1316_v28  ;;  %v1338_v51 = vadd.f32 0.05243302, %v1337_v33  ;;  %v1070_v42 = vmul.f32 0.5, %v3658_v13 }
 0x1ac   : > { %v1375_v26 = vmul.f32 %v1374_v46, %v3716_v8  ;;  %v1411_v0 = vmul.f32 %v3729_v49, %v3729_v49  ;;  %v1053_v35 = vpop.f32.mrf.mxu3  ;;  %1685 = vmatmul.f32.gmra.mxu2 %v1628_v55  ;;  %v1386_v23 = vmul.f32 %v1385_v53, %v3716_v8 }
 0x1ad   : > { %v3736_v10 = vadd.f32 %v3494_v38, %v1053_v35  ;;  %v1350_v1 = vmul.f32 %v1349_v57, %v3698_v3  ;;  %v1318_v7 = vadd.f32 %v2796_v44, %v1317_v43 }
 0x1ae   : > { %v3740_v45 = vmin.f32 %v1411_v0, 16.0  ;;  %v1376_v30 = vadd.f32 0.0036580483, %v1375_v26  ;;  %v1387_v61 = vadd.f32 0.014752088, %v1386_v23 }
 0x1af   : > { %v3746_v16 = vmul.f32 0.70710677, %v3736_v10  ;;  %v1351_v15 = vadd.f32 0.4994258, %v1350_v1  ;;  %v1322_v34 = vsel %vm1321_vm15, %v2796_v44, %v1318_v7  ;;  %v1339_v44 = vmul.f32 %v1338_v51, %v3698_v3 }
 0x1b0   : > { %v1413_v5 = vmul.f32 2.1237322e-06, %v3740_v45  ;;  %v1377_v36 = vmul.f32 %v1376_v30, %v3716_v8  ;;  %v1327_v18 = vsel %vm1324_vm1, %v1326_v41, %v1322_v34  ;;  %v1388_v17 = vmul.f32 %v1387_v61, %v3716_v8 }
 0x1b1   : > { %v1451_v19 = vmul.f32 %v3746_v16, %v3746_v16  ;;  %v1352_v37 = vmul.f32 %v1351_v15, %v3698_v3  ;;  %v1328_v52 = vmul.f32 %v1327_v18, %v1303_v54  ;;  %v1424_v48 = vmul.f32 3.8918573e-05, %v3740_v45 }
 0x1b2   : > { %v1414_v50 = vadd.f32 0.00028619796, %v1413_v5  ;;  %v1378_v21 = vadd.f32 0.05243302, %v1377_v36  ;;  %v1389_v27 = vadd.f32 0.112945676, %v1388_v17 }
 0x1b3   : > { %v3755_v4 = vmin.f32 %v1451_v19, 16.0  ;;  %v3757_v2 = vadd.f32 1.0, %v1352_v37  ;;  %v2600_v24 = vclamps-f32 %v1328_v52, 1.0  ;;  %v1340_v53 = vadd.f32 0.18741608, %v1339_v44 }
 0x1b4   : > { %v1415_v39 = vmul.f32 %v1414_v50, %v3740_v45  ;;  %v1379_v32 = vmul.f32 %v1378_v21, %v3716_v8  ;;  %v1390_v58 = vmul.f32 %v1389_v27, %v3716_v8  ;;  %v1425_v57 = vadd.f32 0.001143296, %v1424_v48 }
 0x1b5   : > { %v1453_v25 = vmul.f32 2.1237322e-06, %v3755_v4  ;;  %v1464_v63 = vmul.f32 3.8918573e-05, %v3755_v4  ;;  %2797 = vrcp.f32 %v3757_v2  ;;  %v1616_v14 = vadd.f32 1.0, %v2600_v24 }
 0x1b6   : > { %v1416_v11 = vadd.f32 0.0036580483, %v1415_v39  ;;  %v1391_v56 = vadd.f32 0.4994258, %v1390_v58  ;;  %v1380_v1 = vadd.f32 0.18741608, %v1379_v32  ;;  %v1341_v5 = vmul.f32 %v1340_v53, %v3698_v3 }
 0x1b7   : > { %v1056_v62 = vpop.f32.mrf.mxu3  ;;  %v1454_v40 = vadd.f32 0.00028619796, %v1453_v25  ;;  %v1465_v20 = vadd.f32 0.001143296, %v1464_v63  ;;  %v1629_v12 = vmul.f32 %v1616_v14, %v1070_v42  ;;  %vm1359_vm2 = vweird.f32 %v3757_v2 }
 0x1b8   : > { %v3770_v6 = vadd.f32 %v3494_v38, %v1056_v62  ;;  %v1417_v23 = vmul.f32 %v1416_v11, %v3740_v45  ;;  %v1392_v61 = vmul.f32 %v1391_v56, %v3716_v8  ;;  %v1365_v41 = vand.u32 2147483648, %v3757_v2 }
 0x1b9   : > { %v1455_v47 = vmul.f32 %v1454_v40, %v3755_v4  ;;  %v1466_v46 = vmul.f32 %v1465_v20, %v3755_v4  ;;  %1688 = vmatmul.f32.gmra.mxu2 %v1629_v12  ;;  %v1426_v54 = vmul.f32 %v1425_v57, %v3740_v45  ;;  %v1381_v36 = vmul.f32 %v1380_v1, %v3716_v8 }
 0x1ba   : > { %v3778_v43 = vmul.f32 0.70710677, %v3770_v6  ;;  %v3792_v3 = vadd.f32 1.0, %v1392_v61  ;;  %v1418_v50 = vadd.f32 0.05243302, %v1417_v23  ;;  %v1366_v40 = vor.u32 1.1754944e-38, %v1365_v41 }
 0x1bb   : > { %v1456_v26 = vadd.f32 0.0036580483, %v1455_v47  ;;  %v1467_v28 = vadd.f32 0.014752088, %v1466_v46  ;;  %v2798_v13 = vpop.eup %2797  ;;  %v1363_v51 = vand.u32 2147483647, %v3757_v2 }
 0x1bc   : > { %v1355_v55 = vmul.f32 %v2798_v13, %v3757_v2  ;;  %v1491_v34 = vmul.f32 %v3778_v43, %v3778_v43  ;;  %vm1360_vm3 = vweird.f32 %v2798_v13  ;;  %2799 = vrcp.f32 %v3792_v3 }
 0x1bd   : > { %v1457_v0 = vmul.f32 %v1456_v26, %v3755_v4  ;;  %v1468_v35 = vmul.f32 %v1467_v28, %v3755_v4  ;;  %v1342_v63 = vadd.f32 1.1283791, %v1341_v5  ;;  %vm1361_vm4 = vmor %vm1359_vm2, %vm1360_vm3  ;;  %v1427_v24 = vadd.f32 0.014752088, %v1426_v54 }
 0x1be   : > { %v1356_v30 = vsub.f32 1.0, %v1355_v55  ;;  %v3804_v8 = vmin.f32 %v1491_v34, 16.0  ;;  %v1382_v20 = vadd.f32 1.1283791, %v1381_v36  ;;  %vm1364_vm5 = vcmp.eq.f32.partialorder %v1363_v51, 8.507059e+37 }
 0x1bf   : > { %v1059_v60 = vpop.f32.mrf.mxu3  ;;  %v1469_v33 = vadd.f32 0.112945676, %v1468_v35  ;;  %v1458_v7 = vadd.f32 0.05243302, %v1457_v0  ;;  %v1419_v14 = vmul.f32 %v1418_v50, %v3740_v45  ;;  %v1343_v46 = vmul.f32 %v1342_v63, %v3691_v29 }
 0x1c0   : > { %v3783_v15 = vadd.f32 %v3494_v38, %v1059_v60  ;;  %v1357_v37 = vmul.f32 %v2798_v13, %v1356_v30  ;;  %v1428_v48 = vmul.f32 %v1427_v24, %v3740_v45  ;;  %v1071_v32 = vmul.f32 0.5, %v3688_v31 }
 0x1c1   : > { %v1470_v19 = vmul.f32 %v1469_v33, %v3755_v4  ;;  %v1459_v52 = vmul.f32 %v1458_v7, %v3755_v4  ;;  %v3820_v11 = vmul.f32 0.5, %v3704_v9  ;;  %v1383_v29 = vmul.f32 %v1382_v20, %v3710_v59 }
 0x1c2   : > { %v3798_v17 = vmul.f32 0.70710677, %v3783_v15  ;;  %v1358_v25 = vadd.f32 %v2798_v13, %v1357_v37  ;;  %v2800_v12 = vpop.eup %2799  ;;  %v1420_v53 = vadd.f32 0.18741608, %v1419_v14  ;;  %v1429_v9 = vadd.f32 0.112945676, %v1428_v48 }
 0x1c3   : > { %v1471_v18 = vadd.f32 0.4994258, %v1470_v19  ;;  %v1460_v27 = vadd.f32 0.18741608, %v1459_v52  ;;  %vm1400_vm6 = vweird.f32 %v2800_v12  ;;  %v1403_v60 = vand.u32 2147483647, %v3792_v3 }
 0x1c4   : > { %v1362_v39 = vsel %vm1361_vm4, %v2798_v13, %v1358_v25  ;;  %v1531_v2 = vmul.f32 %v3798_v17, %v3798_v17  ;;  %v1395_v13 = vmul.f32 %v2800_v12, %v3792_v3  ;;  %v1405_v56 = vand.u32 2147483648, %v3792_v3 }
 0x1c5   : > { %v1472_v62 = vmul.f32 %v1471_v18, %v3755_v4  ;;  %v1367_v47 = vsel %vm1364_vm5, %v1366_v40, %v1362_v39  ;;  %v1461_v58 = vmul.f32 %v1460_v27, %v3755_v4  ;;  %v1430_v33 = vmul.f32 %v1429_v9, %v3740_v45 }
 0x1c6   : > { %v1368_v28 = vmul.f32 %v1367_v47, %v1343_v46  ;;  %v3828_v0 = vmin.f32 %v1531_v2, 16.0  ;;  %v1396_v55 = vsub.f32 1.0, %v1395_v13  ;;  %v1504_v4 = vmul.f32 3.8918573e-05, %v3804_v8 }
 0x1c7   : > { %v1062_v21 = vpop.f32.mrf.mxu3  ;;  %v3806_v42 = vadd.f32 1.0, %v1472_v62  ;;  %v1462_v30 = vadd.f32 1.1283791, %v1461_v58  ;;  %vm1399_vm7 = vweird.f32 %v3792_v3  ;;  %v1431_v54 = vadd.f32 0.4994258, %v1430_v33 }
 0x1c8   : > { %v3809_v44 = vadd.f32 %v3494_v38, %v1062_v21  ;;  %v1493_v38 = vmul.f32 2.1237322e-06, %v3804_v8  ;;  %v2601_v35 = vclamps-f32 %v1368_v28, 1.0  ;;  %v1397_v59 = vmul.f32 %v2800_v12, %v1396_v55  ;;  %vm1401_vm8 = vmor %vm1399_vm7, %vm1400_vm6 }
 0x1c9   : > { %2801 = vrcp.f32 %v3806_v42  ;;  %v1533_v61 = vmul.f32 2.1237322e-06, %v3828_v0  ;;  %v1483_v37 = vand.u32 2147483647, %v3806_v42  ;;  %vm1404_vm9 = vcmp.eq.f32.partialorder %v1403_v60, 8.507059e+37 }
 0x1ca   : > { %v3823_v26 = vmul.f32 0.70710677, %v3809_v44  ;;  %v1494_v57 = vadd.f32 0.00028619796, %v1493_v38  ;;  %v1617_v23 = vadd.f32 1.0, %v2601_v35  ;;  %v1398_v41 = vadd.f32 %v2800_v12, %v1397_v59 }
 0x1cb   : > { %v1406_v36 = vor.u32 1.1754944e-38, %v1405_v56  ;;  %v1485_v50 = vand.u32 2147483648, %v3806_v42  ;;  %v1432_v51 = vmul.f32 %v1431_v54, %v3740_v45  ;;  %v1505_v52 = vadd.f32 0.001143296, %v1504_v4 }
 0x1cc   : > { %v1571_v31 = vmul.f32 %v3823_v26, %v3823_v26  ;;  %v1630_v19 = vmul.f32 %v1617_v23, %v1071_v32  ;;  %v1402_v18 = vsel %vm1401_vm8, %v2800_v12, %v1398_v41  ;;  %v1495_v62 = vmul.f32 %v1494_v57, %v3804_v8 }
 0x1cd   : > { %v1407_v63 = vsel %vm1404_vm9, %v1406_v36, %v1402_v18  ;;  %v3847_v21 = vadd.f32 1.0, %v1432_v51  ;;  %v1506_v39 = vmul.f32 %v1505_v52, %v3804_v8  ;;  %v1463_v40 = vmul.f32 %v1462_v30, %v3746_v16 }
 0x1ce   : > { %v3837_v7 = vmin.f32 %v1571_v31, 16.0  ;;  %1691 = vmatmul.f32.gmra.mxu2 %v1630_v19  ;;  %v1408_v24 = vmul.f32 %v1407_v63, %v1383_v29  ;;  %vm1479_vm11 = vweird.f32 %v3806_v42  ;;  %v1534_v14 = vadd.f32 0.00028619796, %v1533_v61 }
 0x1cf   : > { %v2802_v1 = vpop.eup %2801  ;;  %v1486_v27 = vor.u32 1.1754944e-38, %v1485_v50  ;;  %2803 = vrcp.f32 %v3847_v21  ;;  %v1544_v47 = vmul.f32 3.8918573e-05, %v3828_v0  ;;  %vm1484_vm13 = vcmp.eq.f32.partialorder %v1483_v37, 8.507059e+37 }
 0x1d0   : > { %v1475_v5 = vmul.f32 %v2802_v1, %v3806_v42  ;;  %vm1480_vm10 = vweird.f32 %v2802_v1  ;;  %v1573_v25 = vmul.f32 2.1237322e-06, %v3837_v7  ;;  %v2602_v2 = vclamps-f32 %v1408_v24, 1.0 }
 0x1d1   : > { %vm1481_vm12 = vmor %vm1479_vm11, %vm1480_vm10  ;;  %v1584_v12 = vmul.f32 3.8918573e-05, %v3837_v7  ;;  %v1496_v38 = vadd.f32 0.0036580483, %v1495_v62  ;;  %v1507_v16 = vadd.f32 0.014752088, %v1506_v39  ;;  %v1421_v13 = vmul.f32 %v1420_v53, %v3740_v45 }
 0x1d2   : > { %v1476_v34 = vsub.f32 1.0, %v1475_v5  ;;  %v1574_v48 = vadd.f32 0.00028619796, %v1573_v25  ;;  %v1618_v28 = vadd.f32 1.0, %v2602_v2  ;;  %v1535_v29 = vmul.f32 %v1534_v14, %v3828_v0 }
 0x1d3   : > { %v1508_v31 = vmul.f32 %v1507_v16, %v3804_v8  ;;  %v1545_v35 = vadd.f32 0.001143296, %v1544_v47  ;;  %v1585_v57 = vadd.f32 0.001143296, %v1584_v12  ;;  %v1497_v56 = vmul.f32 %v1496_v38, %v3804_v8 }
 0x1d4   : > { %v1477_v3 = vmul.f32 %v2802_v1, %v1476_v34  ;;  %v1631_v58 = vmul.f32 %v1618_v28, %v3820_v11  ;;  %v1575_v55 = vmul.f32 %v1574_v48, %v3837_v7  ;;  %v1074_v45 = vmul.f32 0.5, %v3736_v10 }
 0x1d5   : > { %v2804_v60 = vpop.eup %2803  ;;  %v1546_v23 = vmul.f32 %v1545_v35, %v3828_v0  ;;  %v1586_v11 = vmul.f32 %v1585_v57, %v3837_v7  ;;  %v1422_v33 = vadd.f32 1.1283791, %v1421_v13  ;;  %v1536_v4 = vadd.f32 0.0036580483, %v1535_v29 }
 0x1d6   : > { %v1478_v20 = vadd.f32 %v2802_v1, %v1477_v3  ;;  %1694 = vmatmul.f32.gmra.mxu2 %v1631_v58  ;;  %v1435_v53 = vmul.f32 %v2804_v60, %v3847_v21  ;;  %v1576_v61 = vadd.f32 0.0036580483, %v1575_v55  ;;  %v1498_v34 = vadd.f32 0.05243302, %v1497_v56 }
 0x1d7   : > { %v1547_v5 = vadd.f32 0.014752088, %v1546_v23  ;;  %v1587_v54 = vadd.f32 0.014752088, %v1586_v11  ;;  %v1445_v37 = vand.u32 2147483648, %v3847_v21  ;;  %vm1440_vm14 = vweird.f32 %v2804_v60 }
 0x1d8   : > { %v1482_v46 = vsel %vm1481_vm12, %v2802_v1, %v1478_v20  ;;  %v1509_v1 = vadd.f32 0.112945676, %v1508_v31  ;;  %v1436_v19 = vsub.f32 1.0, %v1435_v53  ;;  %v1443_v18 = vand.u32 2147483647, %v3847_v21 }
 0x1d9   : > { %v1487_v32 = vsel %vm1484_vm13, %v1486_v27, %v1482_v46  ;;  %v1548_v10 = vmul.f32 %v1547_v5, %v3828_v0  ;;  %v1588_v51 = vmul.f32 %v1587_v54, %v3837_v7  ;;  %v1537_v52 = vmul.f32 %v1536_v4, %v3828_v0 }
 0x1da   : > { %v1488_v42 = vmul.f32 %v1487_v32, %v1463_v40  ;;  %v1510_v30 = vmul.f32 %v1509_v1, %v3804_v8  ;;  %v1437_v50 = vmul.f32 %v2804_v60, %v1436_v19  ;;  %v1577_v63 = vmul.f32 %v1576_v61, %v3837_v7 }
 0x1db   : > { %v1549_v25 = vadd.f32 0.112945676, %v1548_v10  ;;  %vm1439_vm15 = vweird.f32 %v3847_v21  ;;  %v1589_v24 = vadd.f32 0.112945676, %v1588_v51  ;;  %v1423_v39 = vmul.f32 %v1422_v33, %v3729_v49 }
 0x1dc   : > { %v2604_v9 = vclamps-f32 %v1488_v42, 1.0  ;;  %v1511_v36 = vadd.f32 0.4994258, %v1510_v30  ;;  %v1438_v62 = vadd.f32 %v2804_v60, %v1437_v50  ;;  %vm1441_vm1 = vmor %vm1439_vm15, %vm1440_vm14  ;;  %v1446_v40 = vor.u32 1.1754944e-38, %v1445_v37 }
 0x1dd   : > { %v1550_v14 = vmul.f32 %v1549_v25, %v3828_v0  ;;  %v1499_v27 = vmul.f32 %v1498_v34, %v3804_v8  ;;  %vm1444_vm2 = vcmp.eq.f32.partialorder %v1443_v18, 8.507059e+37  ;;  %v1590_v47 = vmul.f32 %v1589_v24, %v3837_v7 }
 0x1de   : > { %v1620_v59 = vadd.f32 1.0, %v2604_v9  ;;  %v1512_v3 = vmul.f32 %v1511_v36, %v3804_v8  ;;  %v1442_v2 = vsel %vm1441_vm1, %v2804_v60, %v1438_v62  ;;  %v1538_v46 = vadd.f32 0.05243302, %v1537_v52 }
 0x1df   : > { %v1447_v48 = vsel %vm1444_vm2, %v1446_v40, %v1442_v2  ;;  %v1578_v12 = vadd.f32 0.05243302, %v1577_v63  ;;  %v1551_v21 = vadd.f32 0.4994258, %v1550_v14  ;;  %v1591_v38 = vadd.f32 0.4994258, %v1590_v47 }
 0x1e0   : > { %v1633_v41 = vmul.f32 %v1620_v59, %v1074_v45  ;;  %v1513_v20 = vadd.f32 1.0, %v1512_v3  ;;  %v1448_v32 = vmul.f32 %v1447_v48, %v1423_v39  ;;  %v1500_v28 = vadd.f32 0.18741608, %v1499_v27 }
 0x1e1   : > { %v1552_v16 = vmul.f32 %v1551_v21, %v3828_v0  ;;  %v1592_v13 = vmul.f32 %v1591_v38, %v3837_v7  ;;  %v1073_v42 = vmul.f32 0.5, %v3722_v22  ;;  %v1539_v29 = vmul.f32 %v1538_v46, %v3828_v0 }
 0x1e2   : > { %1700 = vmatmul.f32.vlgmr.msrb.gmra.mxu3 %v1633_v41  ;;  %2805 = vrcp.f32 %v1513_v20  ;;  %v2603_v49 = vclamps-f32 %v1448_v32, 1.0  ;;  %v1579_v58 = vmul.f32 %v1578_v12, %v3837_v7  ;;  %v1501_v57 = vmul.f32 %v1500_v28, %v3804_v8 }
 0x1e3   : > { %v1553_v35 = vadd.f32 1.0, %v1552_v16  ;;  %v1593_v55 = vadd.f32 1.0, %v1592_v13  ;;  %v1540_v1 = vadd.f32 0.18741608, %v1539_v29  ;;  %v1525_v53 = vand.u32 2147483648, %v1513_v20 }
 0x1e4   : > { %v1619_v31 = vadd.f32 1.0, %v2603_v49  ;;  %v1580_v23 = vadd.f32 0.18741608, %v1579_v58  ;;  %v1502_v22 = vadd.f32 1.1283791, %v1501_v57  ;;  %vm1519_vm4 = vweird.f32 %v1513_v20 }
 0x1e5   : > { %2807 = vrcp.f32 %v1553_v35  ;;  %v1523_v11 = vand.u32 2147483647, %v1513_v20  ;;  %v1541_v33 = vmul.f32 %v1540_v1, %v3828_v0  ;;  %v1526_v61 = vor.u32 1.1754944e-38, %v1525_v53 }
 0x1e6   : > { %v1632_v60 = vmul.f32 %v1619_v31, %v1073_v42  ;;  %2809 = vrcp.f32 %v1593_v55  ;;  %v1581_v30 = vmul.f32 %v1580_v23, %v3837_v7  ;;  %v1503_v41 = vmul.f32 %v1502_v22, %v3778_v43 }
 0x1e7   : > { %vm1524_vm6 = vcmp.eq.f32.partialorder %v1523_v11, 8.507059e+37  ;;  %v1542_v37 = vadd.f32 1.1283791, %v1541_v33  ;;  %v1565_v0 = vand.u32 2147483648, %v1553_v35  ;;  %v1563_v7 = vand.u32 2147483647, %v1553_v35 }
 0x1e8   : > { %v2806_v9 = vpop.eup %2805  ;;  %1697 = vmatmul.f32.gmra.mxu2 %v1632_v60  ;;  %v1582_v50 = vadd.f32 1.1283791, %v1581_v30  ;;  %v1605_v3 = vand.u32 2147483648, %v1593_v55  ;;  %v1603_v62 = vand.u32 2147483647, %v1593_v55  ;;  %v1075_v43 = vmul.f32 0.5, %v3770_v6 }
 0x1e9   : > { %v1515_v56 = vmul.f32 %v2806_v9, %v1513_v20  ;;  %vm1520_vm3 = vweird.f32 %v2806_v9  ;;  %v1543_v24 = vmul.f32 %v1542_v37, %v3798_v17  ;;  %vm1559_vm9 = vweird.f32 %v1553_v35  ;;  %v3893_v6 = vld [vmem:[%s4355_s6] ss:$0 sm:$0xff] }
 0x1ea   : > { %vm1521_vm5 = vmor %vm1519_vm4, %vm1520_vm3  ;;  %v1566_v20 = vor.u32 1.1754944e-38, %v1565_v0  ;;  %vm1599_vm11 = vweird.f32 %v1593_v55  ;;  %v1583_v27 = vmul.f32 %v1582_v50, %v3823_v26  ;;  %vm1564_vm12 = vcmp.eq.f32.partialorder %v1563_v7, 8.507059e+37 }
 0x1eb   : > { %v1516_v45 = vsub.f32 1.0, %v1515_v56  ;;  %v2808_v4 = vpop.eup %2807  ;;  %v1606_v47 = vor.u32 1.1754944e-38, %v1605_v3  ;;  %vm1604_vm14 = vcmp.eq.f32.partialorder %v1603_v62, 8.507059e+37  ;;  %v1076_v49 = vmul.f32 0.5, %v3783_v15 }
 0x1ec   : > { %v2810_v8 = vpop.eup %2809  ;;  %v1555_v19 = vmul.f32 %v2808_v4, %v1553_v35  ;;  %vm1560_vm7 = vweird.f32 %v2808_v4 }
 0x1ed   : > { %v1517_v59 = vmul.f32 %v2806_v9, %v1516_v45  ;;  %v1595_v34 = vmul.f32 %v2810_v8, %v1593_v55  ;;  %vm1600_vm8 = vweird.f32 %v2810_v8  ;;  %vm1561_vm10 = vmor %vm1559_vm9, %vm1560_vm7  ;;  %v1077_v55 = vmul.f32 0.5, %v3809_v44 }
 0x1ee   : > { %v1556_v10 = vsub.f32 1.0, %v1555_v19  ;;  %vm1601_vm13 = vmor %vm1599_vm11, %vm1600_vm8 }
 0x1ef   : > { %v1518_v5 = vadd.f32 %v2806_v9, %v1517_v59  ;;  %v1596_v51 = vsub.f32 1.0, %v1595_v34 }
 0x1f0   : > { %v1557_v52 = vmul.f32 %v2808_v4, %v1556_v10 }
 0x1f1   : > { %v1522_v54 = vsel %vm1521_vm5, %v2806_v9, %v1518_v5  ;;  %v1597_v63 = vmul.f32 %v2810_v8, %v1596_v51 }
 0x1f2   : > { %v1527_v36 = vsel %vm1524_vm6, %v1526_v61, %v1522_v54  ;;  %v1558_v39 = vadd.f32 %v2808_v4, %v1557_v52 }
 0x1f3   : > { %v1528_v18 = vmul.f32 %v1527_v36, %v1503_v41  ;;  %v1598_v14 = vadd.f32 %v2810_v8, %v1597_v63 }
 0x1f4   : > { %v1562_v2 = vsel %vm1561_vm10, %v2808_v4, %v1558_v39 }
 0x1f5   : > { %v2605_v25 = vclamps-f32 %v1528_v18, 1.0  ;;  %v1567_v48 = vsel %vm1564_vm12, %v1566_v20, %v1562_v2  ;;  %v1602_v12 = vsel %vm1601_vm13, %v2810_v8, %v1598_v14 }
 0x1f6   : > { %v1568_v17 = vmul.f32 %v1567_v48, %v1543_v24  ;;  %v1607_v32 = vsel %vm1604_vm14, %v1606_v47, %v1602_v12 }
 0x1f7   : > { %v1621_v40 = vadd.f32 1.0, %v2605_v25  ;;  %v1608_v21 = vmul.f32 %v1607_v32, %v1583_v27 }
 0x1f8   : > { %v2606_v38 = vclamps-f32 %v1568_v17, 1.0 }
 0x1f9   : > { %v1634_v46 = vmul.f32 %v1621_v40, %v1075_v43  ;;  %v2607_v13 = vclamps-f32 %v1608_v21, 1.0 }
 0x1fa   : > { %v1622_v16 = vadd.f32 1.0, %v2606_v38 }
 0x1fb   : > { %1703 = vmatmul.f32.gmra.mxu3 %v1634_v46  ;;  %v1623_v31 = vadd.f32 1.0, %v2607_v13 }
 0x1fc   : > { %v1635_v29 = vmul.f32 %v1622_v16, %v1076_v49 }
 0x1fd   : > { %v1636_v60 = vmul.f32 %v1623_v31, %v1077_v55 }
 0x201   : > { %v1674_v28 = vpop.f32.mrf.mxu2 }
 0x202   : > { %v3896_v26 = vadd.f32 %v3893_v6, %v1674_v28 }
 0x203   : > { %1706 = vmatmul.f32.gmra.mxu3 %v1635_v29 }
 0x204   : > { %v1726_v42 = vmul.f32 0.70710677, %v3896_v26 }
 0x206   : > { %v1739_v58 = vmul.f32 %v1726_v42, %v1726_v42 }
 0x208   : > { %v1740_v35 = vmin.f32 %v1739_v58, 16.0 }
 0x20a   : > { %v1741_v9 = vmul.f32 2.1237322e-06, %v1740_v35  ;;  %v1752_v57 = vmul.f32 3.8918573e-05, %v1740_v35  ;;  %v1677_v4 = vpop.f32.mrf.mxu2 }
 0x20b   : > { %1709 = vmatmul.f32.gmra.mxu3 %v1636_v60  ;;  %v3902_v8 = vadd.f32 %v3893_v6, %v1677_v4 }
 0x20c   : > { %v1742_v56 = vadd.f32 0.00028619796, %v1741_v9  ;;  %v1753_v1 = vadd.f32 0.001143296, %v1752_v57 }
 0x20d   : > { %v3905_v61 = vmul.f32 0.70710677, %v3902_v8 }
 0x20e   : > { %v1743_v23 = vmul.f32 %v1742_v56, %v1740_v35  ;;  %v1754_v45 = vmul.f32 %v1753_v1, %v1740_v35 }
 0x20f   : > { %v1779_v54 = vmul.f32 %v3905_v61, %v3905_v61 }
 0x210   : > { %v1744_v15 = vadd.f32 0.0036580483, %v1743_v23  ;;  %v1755_v53 = vadd.f32 0.014752088, %v1754_v45 }
 0x211   : > { %v3909_v34 = vmin.f32 %v1779_v54, 16.0 }
 0x212   : > { %v1756_v22 = vmul.f32 %v1755_v53, %v1740_v35  ;;  %v1745_v59 = vmul.f32 %v1744_v15, %v1740_v35  ;;  %v1713_v53 = vmul.f32 0.5, %v3896_v26 }
 0x213   : > { %v1781_v36 = vmul.f32 2.1237322e-06, %v3909_v34  ;;  %v1792_v10 = vmul.f32 3.8918573e-05, %v3909_v34  ;;  %v1680_v52 = vpop.f32.mrf.mxu2 }
 0x214   : > { %v1757_v11 = vadd.f32 0.112945676, %v1756_v22  ;;  %v1746_v30 = vadd.f32 0.05243302, %v1745_v59  ;;  %v3916_v63 = vadd.f32 %v3893_v6, %v1680_v52 }
 0x215   : > { %v1782_v50 = vadd.f32 0.00028619796, %v1781_v36  ;;  %v1793_v18 = vadd.f32 0.001143296, %v1792_v10 }
 0x216   : > { %v1758_v33 = vmul.f32 %v1757_v11, %v1740_v35  ;;  %v1747_v19 = vmul.f32 %v1746_v30, %v1740_v35  ;;  %v3919_v20 = vmul.f32 0.70710677, %v3916_v63 }
 0x217   : > { %v1783_v3 = vmul.f32 %v1782_v50, %v3909_v34  ;;  %v1794_v25 = vmul.f32 %v1793_v18, %v3909_v34 }
 0x218   : > { %v1759_v5 = vadd.f32 0.4994258, %v1758_v33  ;;  %v1748_v37 = vadd.f32 0.18741608, %v1747_v19  ;;  %v1819_v46 = vmul.f32 %v3919_v20, %v3919_v20 }
 0x219   : > { %v1784_v43 = vadd.f32 0.0036580483, %v1783_v3  ;;  %v1795_v24 = vadd.f32 0.014752088, %v1794_v25 }
 0x21a   : > { %v1760_v44 = vmul.f32 %v1759_v5, %v1740_v35  ;;  %v1749_v51 = vmul.f32 %v1748_v37, %v1740_v35  ;;  %v3926_v21 = vmin.f32 %v1819_v46, 16.0 }
 0x21b   : > { %v1796_v2 = vmul.f32 %v1795_v24, %v3909_v34  ;;  %v1785_v47 = vmul.f32 %v1784_v43, %v3909_v34 }
 0x21c   : > { %v1761_v41 = vadd.f32 1.0, %v1760_v44  ;;  %v1750_v39 = vadd.f32 1.1283791, %v1749_v51  ;;  %v1821_v58 = vmul.f32 2.1237322e-06, %v3926_v21 }
 0x21d   : > { %v1797_v12 = vadd.f32 0.112945676, %v1796_v2  ;;  %v1786_v29 = vadd.f32 0.05243302, %v1785_v47  ;;  %v1832_v31 = vmul.f32 3.8918573e-05, %v3926_v21 }
 0x21e   : > { %2811 = vrcp.f32 %v1761_v41  ;;  %v1773_v40 = vand.u32 2147483648, %v1761_v41  ;;  %v1771_v27 = vand.u32 2147483647, %v1761_v41  ;;  %vm1767_vm1 = vweird.f32 %v1761_v41 }
 0x21f   : > { %v1751_v17 = vmul.f32 %v1750_v39, %v1726_v42  ;;  %v1798_v49 = vmul.f32 %v1797_v12, %v3909_v34  ;;  %v1822_v55 = vadd.f32 0.00028619796, %v1821_v58  ;;  %v1833_v9 = vadd.f32 0.001143296, %v1832_v31 }
 0x220   : > { %v1774_v32 = vor.u32 1.1754944e-38, %v1773_v40  ;;  %vm1772_vm3 = vcmp.eq.f32.partialorder %v1771_v27, 8.507059e+37  ;;  %v1787_v1 = vmul.f32 %v1786_v29, %v3909_v34 }
 0x221   : > { %v1799_v35 = vadd.f32 0.4994258, %v1798_v49  ;;  %v1823_v23 = vmul.f32 %v1822_v55, %v3926_v21  ;;  %v1834_v45 = vmul.f32 %v1833_v9, %v3926_v21 }
 0x222   : > { %v1683_v38 = vpop.f32.mrf.mxu2  ;;  %v1788_v44 = vadd.f32 0.18741608, %v1787_v1 }
 0x223   : > { %v3930_v16 = vadd.f32 %v3893_v6, %v1683_v38  ;;  %v1800_v56 = vmul.f32 %v1799_v35, %v3909_v34  ;;  %v1824_v11 = vadd.f32 0.0036580483, %v1823_v23  ;;  %v1835_v33 = vadd.f32 0.014752088, %v1834_v45 }
 0x224   : > { %v2812_v0 = vpop.eup %2811  ;;  %v1789_v18 = vmul.f32 %v1788_v44, %v3909_v34 }
 0x225   : > { %v1763_v7 = vmul.f32 %v2812_v0, %v1761_v41  ;;  %vm1768_vm15 = vweird.f32 %v2812_v0  ;;  %v3935_v57 = vmul.f32 0.70710677, %v3930_v16  ;;  %v1801_v59 = vadd.f32 1.0, %v1800_v56 }
 0x226   : > { %vm1769_vm2 = vmor %vm1767_vm1, %vm1768_vm15  ;;  %v1836_v19 = vmul.f32 %v1835_v33, %v3926_v21  ;;  %v1825_v41 = vmul.f32 %v1824_v11, %v3926_v21 }
 0x227   : > { %v1764_v62 = vsub.f32 1.0, %v1763_v7  ;;  %v1859_v15 = vmul.f32 %v3935_v57, %v3935_v57  ;;  %2813 = vrcp.f32 %v1801_v59  ;;  %v1813_v2 = vand.u32 2147483648, %v1801_v59 }
 0x228   : > { %v1837_v36 = vadd.f32 0.112945676, %v1836_v19  ;;  %v1826_v7 = vadd.f32 0.05243302, %v1825_v41  ;;  %vm1807_vm5 = vweird.f32 %v1801_v59 }
 0x229   : > { %v1765_v14 = vmul.f32 %v2812_v0, %v1764_v62  ;;  %v3944_v4 = vmin.f32 %v1859_v15, 16.0  ;;  %v1814_v31 = vor.u32 1.1754944e-38, %v1813_v2 }
 0x22a   : > { %v1827_v47 = vmul.f32 %v1826_v7, %v3926_v21 }
 0x22b   : > { %v1766_v48 = vadd.f32 %v2812_v0, %v1765_v14  ;;  %v1861_v26 = vmul.f32 2.1237322e-06, %v3944_v4  ;;  %v1872_v54 = vmul.f32 3.8918573e-05, %v3944_v4  ;;  %v1790_v14 = vadd.f32 1.1283791, %v1789_v18 }
 0x22d   : > { %v1770_v28 = vsel %vm1769_vm2, %v2812_v0, %v1766_v48  ;;  %v1862_v10 = vadd.f32 0.00028619796, %v1861_v26  ;;  %v1873_v50 = vadd.f32 0.001143296, %v1872_v54  ;;  %v1838_v0 = vmul.f32 %v1837_v36, %v3926_v21  ;;  %v2814_v52 = vpop.eup %2813 }
 0x22e   : > { %v1775_v13 = vsel %vm1772_vm3, %v1774_v32, %v1770_v28  ;;  %v1803_v62 = vmul.f32 %v2814_v52, %v1801_v59  ;;  %vm1808_vm4 = vweird.f32 %v2814_v52  ;;  %v1791_v29 = vmul.f32 %v1790_v14, %v3905_v61 }
 0x22f   : > { %v1776_v42 = vmul.f32 %v1775_v13, %v1751_v17  ;;  %v1686_v30 = vpop.f32.mrf.mxu2  ;;  %v1863_v3 = vmul.f32 %v1862_v10, %v3944_v4  ;;  %v1874_v25 = vmul.f32 %v1873_v50, %v3944_v4  ;;  %v1839_v43 = vadd.f32 0.4994258, %v1838_v0  ;;  %vm1809_vm6 = vmor %vm1807_vm5, %vm1808_vm4 }
 0x230   : > { %v3955_v37 = vadd.f32 %v3893_v6, %v1686_v30  ;;  %v1804_v34 = vsub.f32 1.0, %v1803_v62  ;;  %v1811_v17 = vand.u32 2147483647, %v1801_v59 }
 0x231   : > { %v2608_v60 = vclamps-f32 %v1776_v42, 1.0  ;;  %v1864_v24 = vadd.f32 0.0036580483, %v1863_v3  ;;  %v1875_v39 = vadd.f32 0.014752088, %v1874_v25  ;;  %v1840_v27 = vmul.f32 %v1839_v43, %v3926_v21 }
 0x232   : > { %v3960_v51 = vmul.f32 0.70710677, %v3955_v37  ;;  %v1805_v12 = vmul.f32 %v2814_v52, %v1804_v34  ;;  %v1828_v42 = vadd.f32 0.18741608, %v1827_v47  ;;  %vm1812_vm7 = vcmp.eq.f32.partialorder %v1811_v17, 8.507059e+37 }
 0x233   : > { %v2259_v22 = vadd.f32 1.0, %v2608_v60  ;;  %v1876_v46 = vmul.f32 %v1875_v39, %v3944_v4  ;;  %v3971_v32 = vadd.f32 1.0, %v1840_v27  ;;  %v1865_v28 = vmul.f32 %v1864_v24, %v3944_v4 }
 0x234   : > { %v1899_v40 = vmul.f32 %v3960_v51, %v3960_v51  ;;  %v1806_v58 = vadd.f32 %v2814_v52, %v1805_v12 }
 0x235   : > { %v2272_v5 = vmul.f32 %v2259_v22, %v1713_v53  ;;  %v1877_v49 = vadd.f32 0.112945676, %v1876_v46  ;;  %2815 = vrcp.f32 %v3971_v32  ;;  %v1866_v23 = vadd.f32 0.05243302, %v1865_v28 }
 0x236   : > { %v3969_v48 = vmin.f32 %v1899_v40, 16.0  ;;  %v1810_v9 = vsel %vm1809_vm6, %v2814_v52, %v1806_v58  ;;  %v1829_v53 = vmul.f32 %v1828_v42, %v3926_v21  ;;  %v1714_v21 = vmul.f32 0.5, %v3902_v8 }
 0x237   : > { %2285 = vst.msk [vmem:[%s3947_s15] sm:$0xff] %vm321_vm0, %v2272_v5  ;;  %v1878_v35 = vmul.f32 %v1877_v49, %v3944_v4  ;;  %v1815_v1 = vsel %vm1812_vm7, %v1814_v31, %v1810_v9  ;;  %v1867_v19 = vmul.f32 %v1866_v23, %v3944_v4  ;;  %v1851_v7 = vand.u32 2147483647, %v3971_v32 }
 0x238   : > { %v1901_v13 = vmul.f32 2.1237322e-06, %v3969_v48  ;;  %v1912_v56 = vmul.f32 3.8918573e-05, %v3969_v48  ;;  %v1816_v61 = vmul.f32 %v1815_v1, %v1791_v29  ;;  %v1830_v10 = vadd.f32 1.1283791, %v1829_v53 }
 0x239   : > { %v1879_v45 = vadd.f32 0.4994258, %v1878_v35  ;;  %v1853_v3 = vand.u32 2147483648, %v3971_v32  ;;  %v1868_v8 = vadd.f32 0.18741608, %v1867_v19  ;;  %vm1847_vm9 = vweird.f32 %v3971_v32 }
 0x23a   : > { %v1902_v60 = vadd.f32 0.00028619796, %v1901_v13  ;;  %v1913_v15 = vadd.f32 0.001143296, %v1912_v56  ;;  %v2609_v33 = vclamps-f32 %v1816_v61, 1.0  ;;  %v1831_v34 = vmul.f32 %v1830_v10, %v3919_v20 }
 0x23b   : > { %v2816_v11 = vpop.eup %2815  ;;  %v1880_v30 = vmul.f32 %v1879_v45, %v3944_v4  ;;  %v1854_v27 = vor.u32 1.1754944e-38, %v1853_v3  ;;  %vm1852_vm11 = vcmp.eq.f32.partialorder %v1851_v7, 8.507059e+37  ;;  %v1869_v12 = vmul.f32 %v1868_v8, %v3944_v4 }
 0x23c   : > { %v1689_v38 = vpop.f32.mrf.mxu2  ;;  %v1903_v22 = vmul.f32 %v1902_v60, %v3969_v48  ;;  %v1914_v5 = vmul.f32 %v1913_v15, %v3969_v48  ;;  %v1843_v44 = vmul.f32 %v2816_v11, %v3971_v32  ;;  %v2260_v26 = vadd.f32 1.0, %v2609_v33 }
 0x23d   : > { %v3979_v55 = vadd.f32 %v3893_v6, %v1689_v38  ;;  %v3994_v54 = vadd.f32 1.0, %v1880_v30  ;;  %vm1848_vm8 = vweird.f32 %v2816_v11  ;;  %v1715_v13 = vmul.f32 0.5, %v3916_v63 }
 0x23e   : > { %v1915_v36 = vadd.f32 0.014752088, %v1914_v5  ;;  %v1844_v50 = vsub.f32 1.0, %v1843_v44  ;;  %v1904_v18 = vadd.f32 0.0036580483, %v1903_v22  ;;  %v2273_v52 = vmul.f32 %v2260_v26, %v1714_v21  ;;  %vm1849_vm10 = vmor %vm1847_vm9, %vm1848_vm8 }
 0x23f   : > { %v3985_v59 = vmul.f32 0.70710677, %v3979_v55  ;;  %2817 = vrcp.f32 %v3994_v54  ;;  %v1870_v60 = vadd.f32 1.1283791, %v1869_v12  ;;  %v1891_v56 = vand.u32 2147483647, %v3994_v54 }
 0x240   : > { %v1845_v25 = vmul.f32 %v2816_v11, %v1844_v50  ;;  %v1916_v62 = vmul.f32 %v1915_v36, %v3969_v48  ;;  %2286 = vst.msk [vmem:[%s3947_s15 + $0x8] sm:$0xff] %vm321_vm0, %v2273_v52  ;;  %v1905_v40 = vmul.f32 %v1904_v18, %v3969_v48  ;;  %v1893_v1 = vand.u32 2147483648, %v3994_v54 }
 0x241   : > { %v1939_v41 = vmul.f32 %v3985_v59, %v3985_v59  ;;  %vm1887_vm13 = vweird.f32 %v3994_v54  ;;  %vm1892_vm15 = vcmp.eq.f32.partialorder %v1891_v56, 8.507059e+37 }
 0x242   : > { %v1846_v39 = vadd.f32 %v2816_v11, %v1845_v25  ;;  %v1917_v14 = vadd.f32 0.112945676, %v1916_v62  ;;  %v1906_v58 = vadd.f32 0.05243302, %v1905_v40  ;;  %v1894_v21 = vor.u32 1.1754944e-38, %v1893_v1 }
 0x243   : > { %v3996_v0 = vmin.f32 %v1939_v41, 16.0  ;;  %v1871_v41 = vmul.f32 %v1870_v60, %v3935_v57 }
 0x244   : > { %v1850_v46 = vsel %vm1849_vm10, %v2816_v11, %v1846_v39  ;;  %v1918_v17 = vmul.f32 %v1917_v14, %v3969_v48  ;;  %v1907_v11 = vmul.f32 %v1906_v58, %v3969_v48  ;;  %v1716_v14 = vmul.f32 0.5, %v3930_v16 }
 0x245   : > { %v1941_v43 = vmul.f32 2.1237322e-06, %v3996_v0  ;;  %v1952_v24 = vmul.f32 3.8918573e-05, %v3996_v0  ;;  %v2818_v38 = vpop.eup %2817  ;;  %v1855_v28 = vsel %vm1852_vm11, %v1854_v27, %v1850_v46 }
 0x246   : > { %v1856_v29 = vmul.f32 %v1855_v28, %v1831_v34  ;;  %v1883_v20 = vmul.f32 %v2818_v38, %v3994_v54  ;;  %v1919_v31 = vadd.f32 0.4994258, %v1918_v17  ;;  %vm1888_vm12 = vweird.f32 %v2818_v38 }
 0x247   : > { %v1942_v2 = vadd.f32 0.00028619796, %v1941_v43  ;;  %v1953_v47 = vadd.f32 0.001143296, %v1952_v24  ;;  %vm1889_vm14 = vmor %vm1887_vm13, %vm1888_vm12  ;;  %v1908_v18 = vadd.f32 0.18741608, %v1907_v11 }
 0x248   : > { %v2610_v9 = vclamps-f32 %v1856_v29, 1.0  ;;  %v1884_v4 = vsub.f32 1.0, %v1883_v20  ;;  %v1920_v23 = vmul.f32 %v1919_v31, %v3969_v48 }
 0x249   : > { %v1943_v49 = vmul.f32 %v1942_v2, %v3996_v0  ;;  %v1954_v32 = vmul.f32 %v1953_v47, %v3996_v0  ;;  %v1909_v24 = vmul.f32 %v1908_v18, %v3969_v48 }
 0x24a   : > { %v2261_v45 = vadd.f32 1.0, %v2610_v9  ;;  %v1885_v15 = vmul.f32 %v2818_v38, %v1884_v4  ;;  %v4024_v33 = vadd.f32 1.0, %v1920_v23 }
 0x24b   : > { %v1944_v42 = vadd.f32 0.0036580483, %v1943_v49  ;;  %v1955_v35 = vadd.f32 0.014752088, %v1954_v32  ;;  %v1910_v48 = vadd.f32 1.1283791, %v1909_v24 }
 0x24c   : > { %v2274_v5 = vmul.f32 %v2261_v45, %v1715_v13  ;;  %v1886_v44 = vadd.f32 %v2818_v38, %v1885_v15  ;;  %2819 = vrcp.f32 %v4024_v33  ;;  %v1931_v49 = vand.u32 2147483647, %v4024_v33 }
 0x24d   : > { %v1956_v61 = vmul.f32 %v1955_v35, %v3996_v0  ;;  %v1945_v53 = vmul.f32 %v1944_v42, %v3996_v0  ;;  %v1933_v32 = vand.u32 2147483648, %v4024_v33  ;;  %vm1927_vm2 = vweird.f32 %v4024_v33 }
 0x24e   : > { %2287 = vst.msk [vmem:[%s3947_s15 + $0x10] sm:$0xff] %vm321_vm0, %v2274_v5  ;;  %v1890_v26 = vsel %vm1889_vm14, %v2818_v38, %v1886_v44  ;;  %v1911_v4 = vmul.f32 %v1910_v48, %v3960_v51  ;;  %vm1932_vm4 = vcmp.eq.f32.partialorder %v1931_v49, 8.507059e+37 }
 0x24f   : > { %v1957_v30 = vadd.f32 0.112945676, %v1956_v61  ;;  %v1946_v36 = vadd.f32 0.05243302, %v1945_v53  ;;  %v1895_v50 = vsel %vm1892_vm15, %v1894_v21, %v1890_v26  ;;  %v1934_v56 = vor.u32 1.1754944e-38, %v1933_v32 }
 0x250   : > { %v1896_v52 = vmul.f32 %v1895_v50, %v1871_v41 }
 0x251   : > { %v1692_v63 = vpop.f32.mrf.mxu2  ;;  %v1958_v10 = vmul.f32 %v1957_v30, %v3996_v0  ;;  %v1947_v25 = vmul.f32 %v1946_v36, %v3996_v0 }
 0x252   : > { %v4021_v22 = vadd.f32 %v3893_v6, %v1692_v63  ;;  %v2611_v3 = vclamps-f32 %v1896_v52, 1.0  ;;  %v2820_v43 = vpop.eup %2819 }
 0x253   : > { %v1959_v7 = vadd.f32 0.4994258, %v1958_v10  ;;  %v1923_v27 = vmul.f32 %v2820_v43, %v4024_v33  ;;  %v1948_v28 = vadd.f32 0.18741608, %v1947_v25  ;;  %vm1928_vm1 = vweird.f32 %v2820_v43 }
 0x254   : > { %v4028_v19 = vmul.f32 0.70710677, %v4021_v22  ;;  %v2262_v34 = vadd.f32 1.0, %v2611_v3  ;;  %vm1929_vm3 = vmor %vm1927_vm2, %vm1928_vm1 }
 0x255   : > { %v1960_v8 = vmul.f32 %v1959_v7, %v3996_v0  ;;  %v1924_v38 = vsub.f32 1.0, %v1923_v27  ;;  %v1949_v35 = vmul.f32 %v1948_v28, %v3996_v0  ;;  %v1717_v0 = vmul.f32 0.5, %v3955_v37 }
 0x256   : > { %v1979_v54 = vmul.f32 %v4028_v19, %v4028_v19  ;;  %v2275_v17 = vmul.f32 %v2262_v34, %v1716_v14 }
 0x257   : > { %v4047_v2 = vadd.f32 1.0, %v1960_v8  ;;  %v1925_v16 = vmul.f32 %v2820_v43, %v1924_v38  ;;  %v1950_v30 = vadd.f32 1.1283791, %v1949_v35 }
 0x258   : > { %v4038_v57 = vmin.f32 %v1979_v54, 16.0  ;;  %2288 = vst.msk [vmem:[%s3947_s15 + $0x18] sm:$0xff] %vm321_vm0, %v2275_v17 }
 0x259   : > { %v1695_v40 = vpop.f32.mrf.mxu2  ;;  %2821 = vrcp.f32 %v4047_v2  ;;  %v1926_v42 = vadd.f32 %v2820_v43, %v1925_v16  ;;  %vm1967_vm5 = vweird.f32 %v4047_v2  ;;  %v1971_v10 = vand.u32 2147483647, %v4047_v2 }
 0x25a   : > { %v1981_v62 = vmul.f32 2.1237322e-06, %v4038_v57  ;;  %v1992_v39 = vmul.f32 3.8918573e-05, %v4038_v57  ;;  %v4050_v12 = vadd.f32 %v3893_v6, %v1695_v40  ;;  %v1973_v50 = vand.u32 2147483648, %v4047_v2 }
 0x25b   : > { %v1930_v61 = vsel %vm1929_vm3, %v2820_v43, %v1926_v42  ;;  %vm1972_vm8 = vcmp.eq.f32.partialorder %v1971_v10, 8.507059e+37 }
 0x25c   : > { %v1982_v47 = vadd.f32 0.00028619796, %v1981_v62  ;;  %v1993_v46 = vadd.f32 0.001143296, %v1992_v39  ;;  %v4061_v58 = vmul.f32 0.70710677, %v4050_v12  ;;  %v1935_v53 = vsel %vm1932_vm4, %v1934_v56, %v1930_v61 }
 0x25d   : > { %v1936_v33 = vmul.f32 %v1935_v53, %v1911_v4  ;;  %v1718_v56 = vmul.f32 0.5, %v3979_v55 }
 0x25e   : > { %v1983_v13 = vmul.f32 %v1982_v47, %v4038_v57  ;;  %v1994_v29 = vmul.f32 %v1993_v46, %v4038_v57  ;;  %v2019_v1 = vmul.f32 %v4061_v58, %v4061_v58  ;;  %v1951_v47 = vmul.f32 %v1950_v30, %v3985_v59 }
 0x25f   : > { %v2822_v15 = vpop.eup %2821  ;;  %v2612_v36 = vclamps-f32 %v1936_v33, 1.0  ;;  %v1974_v46 = vor.u32 1.1754944e-38, %v1973_v50 }
 0x260   : > { %v1984_v9 = vadd.f32 0.0036580483, %v1983_v13  ;;  %v1995_v60 = vadd.f32 0.014752088, %v1994_v29  ;;  %v4076_v11 = vmin.f32 %v2019_v1, 16.0  ;;  %v1963_v5 = vmul.f32 %v2822_v15, %v4047_v2 }
 0x261   : > { %v2263_v3 = vadd.f32 1.0, %v2612_v36  ;;  %vm1968_vm6 = vweird.f32 %v2822_v15 }
 0x262   : > { %v1985_v63 = vmul.f32 %v1984_v9, %v4038_v57  ;;  %v1996_v45 = vmul.f32 %v1995_v60, %v4038_v57  ;;  %v2021_v21 = vmul.f32 2.1237322e-06, %v4076_v11  ;;  %v2032_v26 = vmul.f32 3.8918573e-05, %v4076_v11  ;;  %vm1969_vm7 = vmor %vm1967_vm5, %vm1968_vm6 }
 0x263   : > { %v1964_v37 = vsub.f32 1.0, %v1963_v5  ;;  %v2276_v40 = vmul.f32 %v2263_v3, %v1717_v0 }
 0x264   : > { %v1986_v44 = vadd.f32 0.05243302, %v1985_v63  ;;  %v1997_v41 = vadd.f32 0.112945676, %v1996_v45  ;;  %v2022_v52 = vadd.f32 0.00028619796, %v2021_v21 }
 0x265   : > { %v1701_v20 = vpop.f32.mrf.mxu3  ;;  %v2033_v7 = vadd.f32 0.001143296, %v2032_v26  ;;  %v1965_v25 = vmul.f32 %v2822_v15, %v1964_v37  ;;  %2289 = vst.msk [vmem:[%s3947_s15 + $0x20] sm:$0xff] %vm321_vm0, %v2276_v40 }
 0x266   : > { %v4064_v31 = vadd.f32 %v3893_v6, %v1701_v20  ;;  %v1998_v18 = vmul.f32 %v1997_v41, %v4038_v57  ;;  %v1987_v62 = vmul.f32 %v1986_v44, %v4038_v57  ;;  %v2023_v24 = vmul.f32 %v2022_v52, %v4076_v11 }
 0x267   : > { %v2034_v39 = vmul.f32 %v2033_v7, %v4076_v11  ;;  %v1966_v14 = vadd.f32 %v2822_v15, %v1965_v25 }
 0x268   : > { %v4071_v23 = vmul.f32 0.70710677, %v4064_v31  ;;  %v1999_v43 = vadd.f32 0.4994258, %v1998_v18  ;;  %v2024_v48 = vadd.f32 0.0036580483, %v2023_v24 }
 0x269   : > { %v2035_v38 = vadd.f32 0.014752088, %v2034_v39  ;;  %v1970_v28 = vsel %vm1969_vm7, %v2822_v15, %v1966_v14  ;;  %v1988_v20 = vadd.f32 0.18741608, %v1987_v62 }
 0x26a   : > { %v2099_v51 = vmul.f32 %v4071_v23, %v4071_v23  ;;  %v2000_v17 = vmul.f32 %v1999_v43, %v4038_v57  ;;  %v1975_v16 = vsel %vm1972_vm8, %v1974_v46, %v1970_v28  ;;  %v2025_v60 = vmul.f32 %v2024_v48, %v4076_v11 }
 0x26b   : > { %v1698_v49 = vpop.f32.mrf.mxu2  ;;  %v2036_v29 = vmul.f32 %v2035_v38, %v4076_v11  ;;  %v1976_v59 = vmul.f32 %v1975_v16, %v1951_v47  ;;  %v1989_v63 = vmul.f32 %v1988_v20, %v4038_v57 }
 0x26c   : > { %v4085_v54 = vmin.f32 %v2099_v51, 16.0  ;;  %v2001_v13 = vadd.f32 1.0, %v2000_v17  ;;  %v4103_v2 = vadd.f32 %v3893_v6, %v1698_v49  ;;  %v2026_v33 = vadd.f32 0.05243302, %v2025_v60 }
 0x26d   : > { %v2613_v9 = vclamps-f32 %v1976_v59, 1.0  ;;  %v2037_v4 = vadd.f32 0.112945676, %v2036_v29  ;;  %v1990_v41 = vadd.f32 1.1283791, %v1989_v63 }
 0x26e   : > { %v2101_v8 = vmul.f32 2.1237322e-06, %v4085_v54  ;;  %v2112_v27 = vmul.f32 3.8918573e-05, %v4085_v54  ;;  %2823 = vrcp.f32 %v2001_v13  ;;  %v4108_v1 = vmul.f32 0.70710677, %v4103_v2 }
 0x26f   : > { %v2264_v61 = vadd.f32 1.0, %v2613_v9  ;;  %v2038_v45 = vmul.f32 %v2037_v4, %v4076_v11  ;;  %v2013_v18 = vand.u32 2147483648, %v2001_v13  ;;  %v2027_v52 = vmul.f32 %v2026_v33, %v4076_v11 }
 0x270   : > { %v2102_v34 = vadd.f32 0.00028619796, %v2101_v8  ;;  %v2113_v42 = vadd.f32 0.001143296, %v2112_v27  ;;  %v2059_v0 = vmul.f32 %v4108_v1, %v4108_v1  ;;  %v2011_v43 = vand.u32 2147483647, %v2001_v13 }
 0x271   : > { %v2277_v51 = vmul.f32 %v2264_v61, %v1718_v56  ;;  %v2039_v30 = vadd.f32 0.4994258, %v2038_v45  ;;  %vm2007_vm10 = vweird.f32 %v2001_v13  ;;  %v1991_v46 = vmul.f32 %v1990_v41, %v4028_v19 }
 0x272   : > { %v2103_v32 = vmul.f32 %v2102_v34, %v4085_v54  ;;  %v2114_v15 = vmul.f32 %v2113_v42, %v4085_v54  ;;  %v4116_v44 = vmin.f32 %v2059_v0, 16.0  ;;  %v2028_v34 = vadd.f32 0.18741608, %v2027_v52 }
 0x273   : > { %2290 = vst.msk [vmem:[%s3947_s15 + $0x28] sm:$0xff] %vm321_vm0, %v2277_v51  ;;  %v2040_v21 = vmul.f32 %v2039_v30, %v4076_v11  ;;  %v2014_v17 = vor.u32 1.1754944e-38, %v2013_v18  ;;  %vm2012_vm12 = vcmp.eq.f32.partialorder %v2011_v43, 8.507059e+37  ;;  %v1719_v61 = vmul.f32 0.5, %v4021_v22 }
 0x274   : > { %v2104_v35 = vadd.f32 0.0036580483, %v2103_v32  ;;  %v2115_v5 = vadd.f32 0.014752088, %v2114_v15  ;;  %v2824_v55 = vpop.eup %2823  ;;  %v2061_v26 = vmul.f32 2.1237322e-06, %v4116_v44  ;;  %v2029_v19 = vmul.f32 %v2028_v34, %v4076_v11 }
 0x275   : > { %v2003_v57 = vmul.f32 %v2824_v55, %v2001_v13  ;;  %v2072_v36 = vmul.f32 3.8918573e-05, %v4116_v44  ;;  %v4125_v7 = vadd.f32 1.0, %v2040_v21  ;;  %vm2008_vm9 = vweird.f32 %v2824_v55 }
 0x276   : > { %v2105_v53 = vmul.f32 %v2104_v35, %v4085_v54  ;;  %v2116_v10 = vmul.f32 %v2115_v5, %v4085_v54  ;;  %v2062_v3 = vadd.f32 0.00028619796, %v2061_v26  ;;  %vm2009_vm11 = vmor %vm2007_vm10, %vm2008_vm9  ;;  %v2030_v30 = vadd.f32 1.1283791, %v2029_v19 }
 0x277   : > { %v2004_v50 = vsub.f32 1.0, %v2003_v57  ;;  %v2073_v25 = vadd.f32 0.001143296, %v2072_v36  ;;  %2825 = vrcp.f32 %v4125_v7  ;;  %v2053_v5 = vand.u32 2147483648, %v4125_v7 }
 0x278   : > { %v2106_v37 = vadd.f32 0.05243302, %v2105_v53  ;;  %v2117_v8 = vadd.f32 0.112945676, %v2116_v10  ;;  %v2063_v24 = vmul.f32 %v2062_v3, %v4116_v44  ;;  %v2051_v41 = vand.u32 2147483647, %v4125_v7 }
 0x279   : > { %v2005_v62 = vmul.f32 %v2824_v55, %v2004_v50  ;;  %v2074_v39 = vmul.f32 %v2073_v25, %v4116_v44  ;;  %vm2047_vm14 = vweird.f32 %v4125_v7  ;;  %v2031_v18 = vmul.f32 %v2030_v30, %v4061_v58 }
 0x27a   : > { %v2107_v40 = vmul.f32 %v2106_v37, %v4085_v54  ;;  %v2118_v27 = vmul.f32 %v2117_v8, %v4085_v54  ;;  %v2064_v38 = vadd.f32 0.0036580483, %v2063_v24  ;;  %v2054_v52 = vor.u32 1.1754944e-38, %v2053_v5 }
 0x27b   : > { %v2006_v14 = vadd.f32 %v2824_v55, %v2005_v62  ;;  %v2075_v28 = vadd.f32 0.014752088, %v2074_v39  ;;  %vm2052_vm1 = vcmp.eq.f32.partialorder %v2051_v41, 8.507059e+37  ;;  %v1720_v58 = vmul.f32 0.5, %v4050_v12 }
 0x27c   : > { %v2119_v49 = vadd.f32 0.4994258, %v2118_v27  ;;  %v2065_v29 = vmul.f32 %v2064_v38, %v4116_v44  ;;  %v2108_v59 = vadd.f32 0.18741608, %v2107_v40 }
 0x27d   : > { %v2010_v48 = vsel %vm2009_vm11, %v2824_v55, %v2006_v14  ;;  %v2076_v13 = vmul.f32 %v2075_v28, %v4116_v44  ;;  %v2826_v20 = vpop.eup %2825 }
 0x27e   : > { %v1704_v47 = vpop.f32.mrf.mxu3  ;;  %v2015_v16 = vsel %vm2012_vm12, %v2014_v17, %v2010_v48  ;;  %v2120_v35 = vmul.f32 %v2119_v49, %v4085_v54  ;;  %v2043_v60 = vmul.f32 %v2826_v20, %v4125_v7  ;;  %v2066_v4 = vadd.f32 0.05243302, %v2065_v29 }
 0x27f   : > { %v4134_v32 = vadd.f32 %v3893_v6, %v1704_v47  ;;  %v2016_v42 = vmul.f32 %v2015_v16, %v1991_v46  ;;  %v2077_v56 = vadd.f32 0.112945676, %v2076_v13  ;;  %v2109_v51 = vmul.f32 %v2108_v59, %v4085_v54 }
 0x280   : > { %v4145_v45 = vadd.f32 1.0, %v2120_v35  ;;  %v2044_v0 = vsub.f32 1.0, %v2043_v60  ;;  %v2067_v11 = vmul.f32 %v2066_v4, %v4116_v44  ;;  %vm2048_vm13 = vweird.f32 %v2826_v20 }
 0x281   : > { %v4141_v9 = vmul.f32 0.70710677, %v4134_v32  ;;  %v2614_v63 = vclamps-f32 %v2016_v42, 1.0  ;;  %v2078_v53 = vmul.f32 %v2077_v56, %v4116_v44  ;;  %v2110_v50 = vadd.f32 1.1283791, %v2109_v51  ;;  %vm2049_vm15 = vmor %vm2047_vm14, %vm2048_vm13 }
 0x282   : > { %2827 = vrcp.f32 %v4145_v45  ;;  %v2045_v55 = vmul.f32 %v2826_v20, %v2044_v0  ;;  %v2068_v37 = vadd.f32 0.18741608, %v2067_v11  ;;  %v2131_v39 = vand.u32 2147483647, %v4145_v45 }
 0x283   : > { %v2139_v15 = vmul.f32 %v4141_v9, %v4141_v9  ;;  %v2265_v33 = vadd.f32 1.0, %v2614_v63  ;;  %v2079_v57 = vadd.f32 0.4994258, %v2078_v53  ;;  %v2111_v47 = vmul.f32 %v2110_v50, %v4071_v23 }
 0x284   : > { %v2046_v36 = vadd.f32 %v2826_v20, %v2045_v55  ;;  %v2069_v27 = vmul.f32 %v2068_v37, %v4116_v44  ;;  %v2133_v17 = vand.u32 2147483648, %v4145_v45  ;;  %vm2127_vm2 = vweird.f32 %v4145_v45 }
 0x285   : > { %v2278_v21 = vmul.f32 %v2265_v33, %v1719_v61  ;;  %v4156_v26 = vmin.f32 %v2139_v15, 16.0  ;;  %v2080_v10 = vmul.f32 %v2079_v57, %v4116_v44  ;;  %vm4184_vm3 = vcmp.eq.f32.partialorder %v2131_v39, 8.507059e+37 }
 0x286   : > { %v1707_v22 = vpop.f32.mrf.mxu3  ;;  %v2050_v25 = vsel %vm2049_vm15, %v2826_v20, %v2046_v36  ;;  %v2134_v19 = vor.u32 1.1754944e-38, %v2133_v17  ;;  %v2070_v56 = vadd.f32 1.1283791, %v2069_v27 }
 0x287   : > { %v4159_v54 = vadd.f32 %v3893_v6, %v1707_v22  ;;  %2291 = vst.msk [vmem:[%s3947_s15 + $0x30] sm:$0xff] %vm321_vm0, %v2278_v21  ;;  %v2141_v3 = vmul.f32 2.1237322e-06, %v4156_v26  ;;  %v2152_v7 = vmul.f32 3.8918573e-05, %v4156_v26  ;;  %v4167_v8 = vadd.f32 1.0, %v2080_v10 }
 0x288   : > { %v2828_v43 = vpop.eup %2827  ;;  %v2055_v24 = vsel %vm2052_vm1, %v2054_v52, %v2050_v25  ;;  %v2071_v39 = vmul.f32 %v2070_v56, %v4108_v1 }
 0x289   : > { %v4170_v62 = vmul.f32 0.70710677, %v4159_v54  ;;  %v2142_v40 = vadd.f32 0.00028619796, %v2141_v3  ;;  %v2153_v14 = vadd.f32 0.001143296, %v2152_v7  ;;  %v2056_v34 = vmul.f32 %v2055_v24, %v2031_v18 }
 0x28a   : > { %2829 = vrcp.f32 %v4167_v8  ;;  %v2123_v46 = vmul.f32 %v2828_v43, %v4145_v45  ;;  %vm2128_vm4 = vweird.f32 %v2828_v43  ;;  %v2091_v15 = vand.u32 2147483647, %v4167_v8 }
 0x28b   : > { %v2615_v28 = vclamps-f32 %v2056_v34, 1.0  ;;  %v2143_v48 = vmul.f32 %v2142_v40, %v4156_v26  ;;  %v2154_v49 = vmul.f32 %v2153_v14, %v4156_v26  ;;  %v2179_v12 = vmul.f32 %v4170_v62, %v4170_v62  ;;  %vm2129_vm5 = vmor %vm2127_vm2, %vm2128_vm4 }
 0x28c   : > { %v2124_v16 = vsub.f32 1.0, %v2123_v46  ;;  %v2093_v53 = vand.u32 2147483648, %v4167_v8  ;;  %vm2087_vm7 = vweird.f32 %v4167_v8  ;;  %v1722_v18 = vmul.f32 0.5, %v4064_v31 }
 0x28d   : > { %v2266_v29 = vadd.f32 1.0, %v2615_v28  ;;  %v2144_v13 = vadd.f32 0.0036580483, %v2143_v48  ;;  %v2155_v59 = vadd.f32 0.014752088, %v2154_v49  ;;  %v4191_v20 = vmin.f32 %v2179_v12, 16.0 }
 0x28e   : > { %v1710_v38 = vpop.f32.mrf.mxu3  ;;  %v2125_v42 = vmul.f32 %v2828_v43, %v2124_v16  ;;  %v2094_v40 = vor.u32 1.1754944e-38, %v2093_v53  ;;  %vm2092_vm9 = vcmp.eq.f32.partialorder %v2091_v15, 8.507059e+37 }
 0x28f   : > { %v4189_v23 = vadd.f32 %v3893_v6, %v1710_v38  ;;  %v2279_v4 = vmul.f32 %v2266_v29, %v1720_v58  ;;  %v2156_v61 = vmul.f32 %v2155_v59, %v4156_v26  ;;  %v2181_v6 = vmul.f32 2.1237322e-06, %v4191_v20 }
 0x290   : > { %v2830_v60 = vpop.eup %2829  ;;  %v2126_v0 = vadd.f32 %v2828_v43, %v2125_v42  ;;  %v2192_v11 = vmul.f32 3.8918573e-05, %v4191_v20  ;;  %v2145_v51 = vmul.f32 %v2144_v13, %v4156_v26  ;;  %v1721_v13 = vmul.f32 0.5, %v4103_v2 }
 0x291   : > { %v4194_v35 = vmul.f32 0.70710677, %v4189_v23  ;;  %v2083_v63 = vmul.f32 %v2830_v60, %v4167_v8  ;;  %2292 = vst.msk [vmem:[%s3947_s15 + $0x38] sm:$0xff] %vm321_vm0, %v2279_v4  ;;  %v2157_v33 = vadd.f32 0.112945676, %v2156_v61  ;;  %vm2088_vm6 = vweird.f32 %v2830_v60 }
 0x292   : > { %v2130_v22 = vsel %vm2129_vm5, %v2828_v43, %v2126_v0  ;;  %v2182_v55 = vadd.f32 0.00028619796, %v2181_v6  ;;  %v2193_v41 = vadd.f32 0.001143296, %v2192_v11  ;;  %v2146_v52 = vadd.f32 0.05243302, %v2145_v51  ;;  %vm2089_vm8 = vmor %vm2087_vm7, %vm2088_vm6 }
 0x293   : > { %v2219_v30 = vmul.f32 %v4194_v35, %v4194_v35  ;;  %v2084_v5 = vsub.f32 1.0, %v2083_v63  ;;  %v2135_v57 = vsel %vm4184_vm3, %v2134_v19, %v2130_v22  ;;  %v2158_v21 = vmul.f32 %v2157_v33, %v4156_v26 }
 0x294   : > { %v2136_v37 = vmul.f32 %v2135_v57, %v2111_v47  ;;  %v2183_v10 = vmul.f32 %v2182_v55, %v4191_v20  ;;  %v2194_v50 = vmul.f32 %v2193_v41, %v4191_v20  ;;  %v2147_v47 = vmul.f32 %v2146_v52, %v4156_v26 }
 0x295   : > { %v4212_v36 = vmin.f32 %v2219_v30, 16.0  ;;  %v2085_v45 = vmul.f32 %v2830_v60, %v2084_v5  ;;  %v2159_v3 = vadd.f32 0.4994258, %v2158_v21 }
 0x296   : > { %v2617_v25 = vclamps-f32 %v2136_v37, 1.0  ;;  %v2195_v43 = vadd.f32 0.014752088, %v2194_v50  ;;  %v2184_v58 = vadd.f32 0.0036580483, %v2183_v10 }
 0x297   : > { %v2086_v7 = vadd.f32 %v2830_v60, %v2085_v45  ;;  %v2221_v24 = vmul.f32 2.1237322e-06, %v4212_v36  ;;  %v2160_v14 = vmul.f32 %v2159_v3, %v4156_v26  ;;  %v2232_v17 = vmul.f32 3.8918573e-05, %v4212_v36 }
 0x298   : > { %v2268_v8 = vadd.f32 1.0, %v2617_v25  ;;  %v2196_v31 = vmul.f32 %v2195_v43, %v4191_v20  ;;  %v2185_v49 = vmul.f32 %v2184_v58, %v4191_v20  ;;  %v2148_v44 = vadd.f32 0.18741608, %v2147_v47 }
 0x299   : > { %v2090_v34 = vsel %vm2089_vm8, %v2830_v60, %v2086_v7  ;;  %v2161_v46 = vadd.f32 1.0, %v2160_v14  ;;  %v2222_v48 = vadd.f32 0.00028619796, %v2221_v24  ;;  %v2233_v29 = vadd.f32 0.001143296, %v2232_v17 }
 0x29a   : > { %v2095_v27 = vsel %vm2092_vm9, %v2094_v40, %v2090_v34  ;;  %v2281_v1 = vmul.f32 %v2268_v8, %v1722_v18  ;;  %v2197_v28 = vadd.f32 0.112945676, %v2196_v31  ;;  %v2186_v60 = vadd.f32 0.05243302, %v2185_v49 }
 0x29b   : > { %v2096_v38 = vmul.f32 %v2095_v27, %v2071_v39  ;;  %2831 = vrcp.f32 %v2161_v46  ;;  %v2223_v19 = vmul.f32 %v2222_v48, %v4212_v36  ;;  %v2234_v4 = vmul.f32 %v2233_v29, %v4212_v36 }
 0x29c   : > { %2294 = vst.msk [vmem:[%s3947_s15 + $0x48] sm:$0xff] %vm321_vm0, %v2281_v1  ;;  %v2198_v16 = vmul.f32 %v2197_v28, %v4191_v20  ;;  %v2149_v63 = vmul.f32 %v2148_v44, %v4156_v26  ;;  %v2187_v2 = vmul.f32 %v2186_v60, %v4191_v20  ;;  %v2171_v5 = vand.u32 2147483647, %v2161_v46 }
 0x29d   : > { %v2616_v12 = vclamps-f32 %v2096_v38, 1.0  ;;  %v2235_v15 = vadd.f32 0.014752088, %v2234_v4  ;;  %v2224_v53 = vadd.f32 0.0036580483, %v2223_v19  ;;  %v2173_v22 = vand.u32 2147483648, %v2161_v46 }
 0x29e   : > { %v2199_v42 = vadd.f32 0.4994258, %v2198_v16  ;;  %v2150_v30 = vadd.f32 1.1283791, %v2149_v63  ;;  %v2188_v57 = vadd.f32 0.18741608, %v2187_v2  ;;  %vm2167_vm11 = vweird.f32 %v2161_v46 }
 0x29f   : > { %v2267_v59 = vadd.f32 1.0, %v2616_v12  ;;  %v2236_v51 = vmul.f32 %v2235_v15, %v4212_v36  ;;  %v2225_v41 = vmul.f32 %v2224_v53, %v4212_v36  ;;  %v2174_v10 = vor.u32 1.1754944e-38, %v2173_v22 }
 0x2a0   : > { %v2200_v61 = vmul.f32 %v2199_v42, %v4191_v20  ;;  %v2151_v37 = vmul.f32 %v2150_v30, %v4141_v9  ;;  %vm2172_vm13 = vcmp.eq.f32.partialorder %v2171_v5, 8.507059e+37  ;;  %v2189_v25 = vmul.f32 %v2188_v57, %v4191_v20 }
 0x2a1   : > { %v2280_v56 = vmul.f32 %v2267_v59, %v1721_v13  ;;  %v2832_v6 = vpop.eup %2831  ;;  %v2237_v26 = vadd.f32 0.112945676, %v2236_v51  ;;  %v2226_v52 = vadd.f32 0.05243302, %v2225_v41  ;;  %v1723_v47 = vmul.f32 0.5, %v4134_v32 }
 0x2a2   : > { %v2163_v0 = vmul.f32 %v2832_v6, %v2161_v46  ;;  %v2201_v11 = vadd.f32 1.0, %v2200_v61  ;;  %vm2168_vm10 = vweird.f32 %v2832_v6  ;;  %v2190_v8 = vadd.f32 1.1283791, %v2189_v25 }
 0x2a3   : > { %2293 = vst.msk [vmem:[%s3947_s15 + $0x40] sm:$0xff] %vm321_vm0, %v2280_v56  ;;  %v2238_v45 = vmul.f32 %v2237_v26, %v4212_v36  ;;  %vm2169_vm12 = vmor %vm2167_vm11, %vm2168_vm10  ;;  %v2227_v34 = vmul.f32 %v2226_v52, %v4212_v36  ;;  %v1724_v13 = vmul.f32 0.5, %v4159_v54 }
 0x2a4   : > { %v2164_v33 = vsub.f32 1.0, %v2163_v0  ;;  %2833 = vrcp.f32 %v2201_v11  ;;  %v2213_v58 = vand.u32 2147483648, %v2201_v11  ;;  %v2211_v27 = vand.u32 2147483647, %v2201_v11 }
 0x2a5   : > { %v2239_v3 = vadd.f32 0.4994258, %v2238_v45  ;;  %vm2207_vm15 = vweird.f32 %v2201_v11  ;;  %v2228_v1 = vadd.f32 0.18741608, %v2227_v34  ;;  %v2191_v28 = vmul.f32 %v2190_v8, %v4170_v62 }
 0x2a6   : > { %v2165_v55 = vmul.f32 %v2832_v6, %v2164_v33  ;;  %v2214_v38 = vor.u32 1.1754944e-38, %v2213_v58  ;;  %vm2212_vm2 = vcmp.eq.f32.partialorder %v2211_v27, 8.507059e+37 }
 0x2a7   : > { %v2240_v39 = vmul.f32 %v2239_v3, %v4212_v36  ;;  %v2229_v32 = vmul.f32 %v2228_v1, %v4212_v36 }
 0x2a8   : > { %v2166_v21 = vadd.f32 %v2832_v6, %v2165_v55 }
 0x2a9   : > { %v2241_v9 = vadd.f32 1.0, %v2240_v39  ;;  %v2230_v19 = vadd.f32 1.1283791, %v2229_v32 }
 0x2aa   : > { %v2834_v50 = vpop.eup %2833  ;;  %v2170_v18 = vsel %vm2169_vm12, %v2832_v6, %v2166_v21 }
 0x2ab   : > { %v2175_v7 = vsel %vm2172_vm13, %v2174_v10, %v2170_v18  ;;  %v2203_v43 = vmul.f32 %v2834_v50, %v2201_v11  ;;  %vm2208_vm14 = vweird.f32 %v2834_v50  ;;  %2835 = vrcp.f32 %v2241_v9 }
 0x2ac   : > { %v2176_v24 = vmul.f32 %v2175_v7, %v2151_v37  ;;  %vm2209_vm1 = vmor %vm2207_vm15, %vm2208_vm14  ;;  %v2253_v60 = vand.u32 2147483648, %v2241_v9  ;;  %v2251_v56 = vand.u32 2147483647, %v2241_v9  ;;  %vm2247_vm4 = vweird.f32 %v2241_v9 }
 0x2ad   : > { %v2204_v40 = vsub.f32 1.0, %v2203_v43  ;;  %v2231_v36 = vmul.f32 %v2230_v19, %v4194_v35  ;;  %v1725_v11 = vmul.f32 0.5, %v4189_v23 }
 0x2ae   : > { %v2618_v14 = vclamps-f32 %v2176_v24, 1.0  ;;  %v2254_v6 = vor.u32 1.1754944e-38, %v2253_v60  ;;  %vm2252_vm6 = vcmp.eq.f32.partialorder %v2251_v56, 8.507059e+37 }
 0x2af   : > { %v2205_v31 = vmul.f32 %v2834_v50, %v2204_v40 }
 0x2b0   : > { %v2269_v46 = vadd.f32 1.0, %v2618_v14 }
 0x2b1   : > { %v2206_v20 = vadd.f32 %v2834_v50, %v2205_v31  ;;  %v2836_v16 = vpop.eup %2835 }
 0x2b2   : > { %v2282_v17 = vmul.f32 %v2269_v46, %v1723_v47  ;;  %v2243_v29 = vmul.f32 %v2836_v16, %v2241_v9  ;;  %vm2248_vm3 = vweird.f32 %v2836_v16 }
 0x2b3   : > { %v2210_v48 = vsel %vm2209_vm1, %v2834_v50, %v2206_v20  ;;  %vm2249_vm5 = vmor %vm2247_vm4, %vm2248_vm3 }
 0x2b4   : > { %2295 = vst.msk [vmem:[%s3947_s15 + $0x50] sm:$0xff] %vm321_vm0, %v2282_v17  ;;  %v2215_v49 = vsel %vm2212_vm2, %v2214_v38, %v2210_v48  ;;  %v2244_v42 = vsub.f32 1.0, %v2243_v29 }
 0x2b5   : > { %v2216_v12 = vmul.f32 %v2215_v49, %v2191_v28 }
 0x2b6   : > { %v2245_v62 = vmul.f32 %v2836_v16, %v2244_v42 }
 0x2b7   : > { %v2619_v44 = vclamps-f32 %v2216_v12, 1.0 }
 0x2b8   : > { %v2246_v61 = vadd.f32 %v2836_v16, %v2245_v62 }
 0x2b9   : > { %v2270_v59 = vadd.f32 1.0, %v2619_v44 }
 0x2ba   : > { %v2250_v63 = vsel %vm2249_vm5, %v2836_v16, %v2246_v61 }
 0x2bb   : > { %v2283_v4 = vmul.f32 %v2270_v59, %v1724_v13  ;;  %v2255_v54 = vsel %vm2252_vm6, %v2254_v6, %v2250_v63 }
 0x2bc   : > { %v2256_v15 = vmul.f32 %v2255_v54, %v2231_v36 }
 0x2bd   : > { %2296 = vst.msk [vmem:[%s3947_s15 + $0x58] sm:$0xff] %vm321_vm0, %v2283_v4 }
 0x2be   : > { %v2620_v0 = vclamps-f32 %v2256_v15, 1.0 }
 0x2c0   : > { %v2271_v53 = vadd.f32 1.0, %v2620_v0  ;;  %2304 = sbr.rel (!%p2996_p4) target bundleno = 769 (0x301), region = 52 }
 0x2c2   : > { %v2284_v2 = vmul.f32 %v2271_v53, %v1725_v11 }
 0x2c4   : > { %2297 = vst.msk [vmem:[%s3947_s15 + $0x60] sm:$0xff] %vm321_vm0, %v2284_v2 }
 0x2c5   : > { %s4373_s16 = smov (!%p2307_p8, %s2306_s16), 13 }
 0x2c6   : > { %s2621_s21 = sshll.u32 %s4373_s16, 3 }
 0x2c7   : > { %p2624_p9 = scmp.eq.s32.totalorder %s2621_s21, 0 }
 0x2c8   : > { %2837 = sdivrem.u32 (!%p2624_p9), %s4373_s16, 13 }
 0x2c9   : > { %2315 = sbr.rel (%p2624_p9) target bundleno = 769 (0x301), region = 56 }
 0x2d1   : > { %s4269_s9 = spop.drf %2837 }
 0x2d2   : > { %s2839_s22 = spop.drf %2837  ;;  %p2625_p10 = scmp.le.s32.totalorder %s4269_s9, 0 }
 0x2d3   : > { %s4364_s27 = smov (!%p2625_p10), %s4263_s20  ;;  %s4365_s14 = smov (!%p2625_p10), %s3947_s15 }
 0x2d4   : > { %2520 = sbr.rel (%p2625_p10) target bundleno = 743 (0x2e7), region = 132  ;;  %s4278_s23 = smov (!%p2625_p10), 0  }
 0x2d5   : > { %s4280_s26 = smov (!%p2625_p10), 0  }
 0x2d9 LB: >> { %v2404_v23 = vld [vmem:[%s2905_s14] sm:$0xff]  ;;  %v2406_v35 = vld [vmem:[%s2905_s14 + $0x8] sm:$0xff]  ;;  %v2408_v51 = vld [vmem:[%s2905_s14 + $0x10] sm:$0xff]  ;;  %s2430_s29 = sadd.s32 1, %s2909_s23  ;;  %s2398_s26 = sadd.s32 1, %s2913_s26   ;;  %s2913_s26 = sphi %s4280_s26, %s2398_s26   ;;  %s2909_s23 = sphi %s4278_s23, %s4368_s23   ;;  %s2905_s14 = sphi %s4365_s14, %s4367_s14   ;;  %s2901_s27 = sphi %s4364_s27, %s4366_s27  }
 0x2da   : >> { %2405 = vst [vmem:[%s2901_s27] sm:$0xff] %v2404_v23  ;;  %v2410_v33 = vld [vmem:[%s2905_s14 + $0x18] sm:$0xff]  ;;  %p2431_p11 = scmp.ge.s32.totalorder %s2430_s29, %s4269_s9  ;;  %v2412_v30 = vld [vmem:[%s2905_s14 + $0x20] sm:$0xff]  ;;  %v2414_v5 = vld [vmem:[%s2905_s14 + $0x28] sm:$0xff]  ;;  %p2397_p12 = scmp.ge.s32.totalorder %s2398_s26, %s4269_s9 }
 0x2db   : >> { %2407 = vst [vmem:[%s2901_s27 + $0x8] sm:$0xff] %v2406_v35  ;;  %v2416_v22 = vld [vmem:[%s2905_s14 + $0x30] sm:$0xff]  ;;  %v2418_v55 = vld [vmem:[%s2905_s14 + $0x38] sm:$0xff]  ;;  %v2420_v41 = vld [vmem:[%s2905_s14 + $0x40] sm:$0xff] }
 0x2dc   : >> { %2409 = vst [vmem:[%s2901_s27 + $0x10] sm:$0xff] %v2408_v51  ;;  %s4375_s29 = smov (%p2431_p11, %s2430_s29), 0  ;;  %v2422_v26 = vld [vmem:[%s2905_s14 + $0x48] sm:$0xff]  ;;  %v2424_v57 = vld [vmem:[%s2905_s14 + $0x50] sm:$0xff]  ;;  %v2426_v21 = vld [vmem:[%s2905_s14 + $0x58] sm:$0xff] }
 0x2dd   : >> { %2411 = vst [vmem:[%s2901_s27 + $0x18] sm:$0xff] %v2410_v33  ;;  %s2433_s30 = smul.u32 104, %s4375_s29  ;;  %v2428_v45 = vld [vmem:[%s2905_s14 + $0x60] sm:$0xff]  ;;  %s4368_s23 = smov %s4375_s29 }
 0x2de   : >> { %2413 = vst [vmem:[%s2901_s27 + $0x20] sm:$0xff] %v2412_v30 }
 0x2df   : >> { %2415 = vst [vmem:[%s2901_s27 + $0x28] sm:$0xff] %v2414_v5  ;;  %s2435_s10 = scalar_lea.vmem %s3947_s15, %s2433_s30 [#allocation2]   ;;  %s2436_s11 = scalar_lea.vmem %s4263_s20, %s2433_s30  }
 0x2e0   : >> { %2417 = vst [vmem:[%s2901_s27 + $0x30] sm:$0xff] %v2416_v22  ;;  %s4367_s14 = smov %s2435_s10 }
 0x2e1   : >> { %2419 = vst [vmem:[%s2901_s27 + $0x38] sm:$0xff] %v2418_v55 }
 0x2e2   : >> { %2421 = vst [vmem:[%s2901_s27 + $0x40] sm:$0xff] %v2420_v41  ;;  %2400 = sbr.rel (!%p2397_p12) target bundleno = 729 (0x2d9), region = 138 }
 0x2e3   : >> { %2423 = vst [vmem:[%s2901_s27 + $0x48] sm:$0xff] %v2422_v26 }
 0x2e4   : >> { %2425 = vst [vmem:[%s2901_s27 + $0x50] sm:$0xff] %v2424_v57 }
 0x2e5   : >> { %2427 = vst [vmem:[%s2901_s27 + $0x58] sm:$0xff] %v2426_v21 }
 0x2e6   : >> { %2429 = vst [vmem:[%s2901_s27 + $0x60] sm:$0xff] %v2428_v45  ;;  %s4366_s27 = smov %s2436_s11 }
 0x2e7 PF: > { %2840 = sdivrem.u32 %s4373_s16, 13 }
 0x2e8   : > { %s2626_s12 = smul.u32 104, %s4269_s9 }
 0x2ea   : > { %s4334_s13 = scalar_lea.vmem %s3947_s15, %s2626_s12 [#allocation2]   ;;  %s2443_s24 = scalar_lea.vmem %s4263_s20, %s2626_s12  }
 0x2f0   : > { %s2841_s17 = spop.drf %2840 }
 0x2f1   : > { %s2842_s18 = spop.drf %2840 }
 0x2f2   : > { %p2628_p13 = scmp.le.s32.totalorder %s2842_s18, 0 }
 0x2f3   : > { %s2915_s19 = smov (!%p2628_p13), %s2443_s24   ;;  %s2919_s21 = smov (!%p2628_p13), %s4334_s13  }
 0x2f4   : > { %2534 = sbr.rel (%p2628_p13) target bundleno = 769 (0x301), region = 143  ;;  %s2923_s22 = smov (!%p2628_p13), 0  }
 0x2f5   : > { %s2927_s26 = smov (!%p2628_p13), 0  }
 0x2f9 LB: >> { %v2453_v37 = vld [vmem:[%s2921_s21] sm:$0xff]  ;;  %s2455_s15 = sadd.s32 1, %s2925_s22  ;;  %s2447_s26 = sadd.s32 1, %s2929_s26   ;;  %s2929_s26 = sphi %s2927_s26, %s2447_s26   ;;  %s2925_s22 = sphi %s2923_s22, %s2924_s22   ;;  %s2921_s21 = sphi %s2919_s21, %s2460_s21   ;;  %s2917_s19 = sphi %s2915_s19, %s2461_s19  }
 0x2fa   : >> { %2454 = vst [vmem:[%s2917_s19] sm:$0xff] %v2453_v37  ;;  %p2456_p0 = scmp.ge.s32.totalorder %s2455_s15, %s2842_s18  ;;  %p2446_p1 = scmp.ge.s32.totalorder %s2447_s26, %s2842_s18 }
 0x2fc   : >> { %s4377_s15 = smov (%p2456_p0, %s2455_s15), 0  ;;  %2449 = sbr.rel (!%p2446_p1) target bundleno = 761 (0x2f9), region = 149 }
 0x2fd   : >> { %s2629_s16 = sshll.u32 %s4377_s15, 3  ;;  %s2924_s22 = smov %s4377_s15  }
 0x2fe   : >> { %s2460_s21 = scalar_lea.vmem %s4334_s13, %s2629_s16 [#allocation2]   ;;  %s2461_s19 = scalar_lea.vmem %s2443_s24, %s2629_s16  }
 0x301 PF: > { %p14_p2 = scmp.ge.s32.totalorder %s2986_s28, 4   ;;  %s4369_s24 = smov %s2893_s25 }
 0x302   : > { %s4370_s25 = smov %s2994_s8  ;;  %s4371_s26 = smov %s2986_s28 }
 0x303   :  { %16 = sbr.rel (!%p14_p2) target bundleno = 2 (0x2), region = 160 }

</bundles_post_ra>
